<compile_context>
chip_gen: v7x
topology: tpu7x:2x2x1
jax: 0.10.0
libtpu: 0.0.40
codegen_flags: <defaults>
</compile_context>

<pallas_src>
import functools

import jax
import jax.numpy as jnp
from jax.experimental import pallas as pl
from jax.experimental.pallas import tpu as pltpu

NUM_LAYERS = 4
LEAKY_SLOPE = 0.2


def _leaky_relu(x, slope=LEAKY_SLOPE):
    return jnp.where(x >= 0, x, slope * x)


def _round_up(x, m):
    return (x + m - 1) // m * m


# --------------------------------------------------------------------------
# Fused Pallas kernel (one batch element per grid step)
# --------------------------------------------------------------------------
def _spp_kernel(x_ref, pool_ref, up_ref, lw_ref, lb_ref, wf_ref, bf_ref,
                o_ref, catp_ref, taps_ref, *, W, pad, offs, sizes):
    """Fused SPP forward, channel-sublane / flat-spatial-lane layout.

    x_ref    : (1, C, HW)        input (flattened spatial on lanes)
    pool_ref : (HW, Stot)        all-level avg-pool operator (column blocks per level)
    up_ref   : (Stot, HW)        all-level bilinear-upsample operator (row blocks)
    lw_ref   : (L, C, C)         1x1 conv weights, [level, out, in]
    lb_ref   : (L, C, 1)         1x1 conv biases
    wf_ref   : (Co, 9*Ccat)      3x3 fusion conv, flattened over (tap, channel)
    bf_ref   : (Co, 1)           fusion bias
    o_ref    : (1, Co, HW)       output (lane-dense store)
    catp_ref : (Ccat, HW+2*pad)  scratch: branch concat + reflect halo rows
    taps_ref : (9*Ccat, HW)      scratch: im2col taps for the single fused matmul
    """
    C = x_ref.shape[1]
    HW = x_ref.shape[2]
    Ccat = catp_ref.shape[0]

    x = x_ref[0]                                                   # (C, HW)

    # ---- all 4 pyramid levels' average pooling in one matmul ---------------
    pooled_all = jnp.dot(x, pool_ref[...],
                         preferred_element_type=jnp.float32)       # (C, Stot)

    # ---- per level: 1x1 conv + LeakyReLU(0.2) + bilinear upsample ----------
    for l in range(NUM_LAYERS):
        off, sz = offs[l], sizes[l]
        pooled = pooled_all[:, off:off + sz]                        # (C, sz)
        feat = jnp.dot(lw_ref[l], pooled,
                       preferred_element_type=jnp.float32) + lb_ref[l]
        feat = _leaky_relu(feat)
        up = jnp.dot(feat, up_ref[off:off + sz, :],
                     preferred_element_type=jnp.float32)            # (C, HW)
        catp_ref[l * C:(l + 1) * C, pad:pad + HW] = up
    # identity branch (out.append(x))
    catp_ref[NUM_LAYERS * C:(NUM_LAYERS + 1) * C, pad:pad + HW] = x

    # ---- reflect halo rows: in flat layout a +-1 row shift is +-W lanes ----
    # row -1 -> row 1 ; row H -> row H-2  (ReflectionPad2d(1) along H)
    catp_ref[:, pad - W:pad] = catp_ref[:, pad + W:pad + 2 * W]
    catp_ref[:, pad + HW:pad + HW + W] = \
        catp_ref[:, pad + HW - 2 * W:pad + HW - W]

    # ---- build the 9 reflect-padded taps (im2col) into the taps scratch ----
    w_idx = jax.lax.broadcasted_iota(jnp.int32, (Ccat, HW), 1) % W
    at_left = w_idx == 0
    at_right = w_idx == W - 1
    for dy in (-1, 0, 1):
        base = pad + dy * W
        r_m1 = catp_ref[:, base - 1:base - 1 + HW]
        r_00 = catp_ref[:, base:base + HW]
        r_p1 = catp_ref[:, base + 1:base + 1 + HW]
        # reflect fix along W at every image-row boundary (ReflectionPad2d(1))
        taps = {
            -1: jnp.where(at_left, r_p1, r_m1),
            0: r_00,
            1: jnp.where(at_right, r_m1, r_p1),
        }
        for dx in (-1, 0, 1):
            t = (dy + 1) * 3 + (dx + 1)
            taps_ref[t * Ccat:(t + 1) * Ccat, :] = taps[dx]

    # ---- fusion: single K = 9*Ccat matmul + bias + LeakyReLU ---------------
    out = jnp.dot(wf_ref[...], taps_ref[...],
                  preferred_element_type=jnp.float32) + bf_ref[...]
    o_ref[0] = _leaky_relu(out)                                     # (Co, HW)


# --------------------------------------------------------------------------
# Constant linear operators (built once in the wrapper)
# --------------------------------------------------------------------------
def _avgpool_matrix(size, k):
    n_out = size // k
    idx = jnp.arange(size) // k
    return (idx[None, :] == jnp.arange(n_out)[:, None]).astype(jnp.float32) / k


def _bilinear_matrix(out_size, in_size):
    # F.interpolate(mode='bilinear', align_corners=False) 1-D weights.
    scale = in_size / out_size
    dst = jnp.arange(out_size, dtype=jnp.float32)
    src = jnp.clip((dst + 0.5) * scale - 0.5, 0.0, None)
    i0 = jnp.minimum(jnp.floor(src).astype(jnp.int32), in_size - 1)
    i1 = jnp.minimum(i0 + 1, in_size - 1)
    w1 = src - i0.astype(jnp.float32)
    w0 = 1.0 - w1
    m = jnp.zeros((out_size, in_size), jnp.float32)
    r = jnp.arange(out_size)
    return m.at[r, i0].add(w0).at[r, i1].add(w1)


def _build_operators(H, W):
    """Combined (all levels) pool / upsample operators over the flat spatial axis."""
    HW = H * W
    pool_blocks, up_blocks, offs, sizes = [], [], [], []
    off = 0
    for l in range(NUM_LAYERS):
        k = 2 * 2 ** (l + 1)                     # 4, 8, 16, 32 ; padding = k % 2 == 0
        hL, wL = H // k, W // k
        S = hL * wL
        Sp = max(8, _round_up(S, 8))             # pad tiny pooled dims (zero rows/cols)
        pool = jnp.kron(_avgpool_matrix(H, k), _avgpool_matrix(W, k))     # (S, HW)
        up = jnp.kron(_bilinear_matrix(H, hL), _bilinear_matrix(W, wL))   # (HW, S)
        pool_blocks.append(jnp.zeros((Sp, HW), jnp.float32).at[:S].set(pool))
        up_blocks.append(jnp.zeros((HW, Sp), jnp.float32).at[:, :S].set(up))
        offs.append(off)
        sizes.append(Sp)
        off += Sp
    pool_all = jnp.concatenate(pool_blocks, axis=0).T      # (HW, Stot)
    up_all = jnp.concatenate(up_blocks, axis=1).T          # (Stot, HW)
    return pool_all, up_all, tuple(offs), tuple(sizes)


# --------------------------------------------------------------------------
# SPP forward (wrapper, NCHW in / NCHW out)
# --------------------------------------------------------------------------
def spp_forward(x_nchw, params):
    N, C, H, W = x_nchw.shape
    assert H % 32 == 0 and W % 32 == 0, "level-3 avg_pool2d uses kernel=stride=32"
    HW = H * W
    L = NUM_LAYERS
    Ccat = C * (L + 1)
    Co = params["fusion_w"].shape[0]
    pad = _round_up(W + 1, 128)                  # halo width (lane-tile aligned body)

    x_flat = x_nchw.reshape(N, C, HW).astype(jnp.float32)
    pool_all, up_all, offs, sizes = _build_operators(H, W)

    lw = params["level_w"].astype(jnp.float32)                       # (L, C, C) [out, in]
    lb = params["level_b"].reshape(L, C, 1).astype(jnp.float32)
    wf = params["fusion_w"].transpose(0, 2, 3, 1).reshape(Co, 9 * Ccat).astype(jnp.float32)
    bf = params["fusion_b"].reshape(Co, 1).astype(jnp.float32)

    def _full(shape):
        nd = len(shape)
        return pl.BlockSpec(shape, lambda n, _nd=nd: (0,) * _nd)

    kernel = functools.partial(_spp_kernel, W=W, pad=pad, offs=offs, sizes=sizes)

    out_flat = pl.pallas_call(
        kernel,
        out_shape=jax.ShapeDtypeStruct((N, Co, HW), jnp.float32),
        grid=(N,),
        in_specs=[
            pl.BlockSpec((1, C, HW), lambda n: (n, 0, 0)),
            _full(pool_all.shape),
            _full(up_all.shape),
            _full(lw.shape),
            _full(lb.shape),
            _full(wf.shape),
            _full(bf.shape),
        ],
        out_specs=pl.BlockSpec((1, Co, HW), lambda n: (n, 0, 0)),
        scratch_shapes=[
            pltpu.VMEM((Ccat, HW + 2 * pad), jnp.float32),   # branch concat + halo
            pltpu.VMEM((9 * Ccat, HW), jnp.float32),         # im2col taps
        ],
        compiler_params=pltpu.CompilerParams(
            dimension_semantics=("parallel",),
        ),
    )(x_flat, pool_all, up_all, lw, lb, wf, bf)

    return out_flat.reshape(N, Co, H, W)


# --------------------------------------------------------------------------
# Pure-JAX reference (same parameters / PyTorch semantics), for a sanity check
# --------------------------------------------------------------------------
def spp_reference(x, params):
    hi = jax.lax.Precision.HIGHEST
    N, C, H, W = x.shape
    x = x.astype(jnp.float32)
    outs = []
    for l in range(NUM_LAYERS):
        k = 2 * 2 ** (l + 1)
        hL, wL = H // k, W // k
        pooled = x.reshape(N, C, hL, k, wL, k).mean(axis=(3, 5))
        feat = jnp.einsum("ncpq,dc->ndpq", pooled, params["level_w"][l],
                          precision=hi)
        feat = feat + params["level_b"][l][None, :, None, None]
        feat = _leaky_relu(feat)
        uh = _bilinear_matrix(H, hL)
        uw = _bilinear_matrix(W, wL)
        up = jnp.einsum("Hp,ndpq->ndHq", uh, feat, precision=hi)
        up = jnp.einsum("Wq,ndHq->ndHW", uw, up, precision=hi)
        outs.append(up)
    outs.append(x)
    cat = jnp.concatenate(outs, axis=1)                       # (N, Ccat, H, W)
    padded = jnp.pad(cat, ((0, 0), (0, 0), (1, 1), (1, 1)), mode="reflect")
    wfull, bfull = params["fusion_w"], params["fusion_b"]
    out = jnp.zeros((N, wfull.shape[0], H, W), jnp.float32) + bfull[None, :, None, None]
    for i in range(3):
        for j in range(3):
            out = out + jnp.einsum("nchw,dc->ndhw",
                                   padded[:, :, i:i + H, j:j + W],
                                   wfull[:, :, i, j], precision=hi)
    return _leaky_relu(out)


def make_params(key, C, Co):
    k1, k2, k3, k4 = jax.random.split(key, 4)
    Ccat = C * (NUM_LAYERS + 1)
    return dict(
        level_w=0.2 * jax.random.normal(k1, (NUM_LAYERS, C, C), jnp.float32),
        level_b=0.1 * jax.random.normal(k2, (NUM_LAYERS, C), jnp.float32),
        fusion_w=0.05 * jax.random.normal(k3, (Co, Ccat, 3, 3), jnp.float32),
        fusion_b=0.1 * jax.random.normal(k4, (Co,), jnp.float32),
    )


if __name__ == "__main__":
    # H = W = 32 is the smallest spatial size valid for all 4 pyramid levels
    # (level 3 is avg_pool2d with kernel_size = stride = 32).
    N, C, H, W, Co = 2, 4, 32, 32, 8
    key = jax.random.PRNGKey(0)
    kx, kp = jax.random.split(key)
    x = jax.random.normal(kx, (N, C, H, W), jnp.float32)
    params = make_params(kp, C, Co)

    out = jax.block_until_ready(jax.jit(spp_forward)(x, params))
    ref = jax.block_until_ready(spp_reference(x, params))

    assert out.shape == (N, Co, H, W), out.shape
    max_err = float(jnp.max(jnp.abs(out - ref)))
    assert max_err < 2e-3, f"mismatch vs reference: max abs err = {max_err}"
    print("KERNEL_OK")
</pallas_src>

<mosaic_0001>
module attributes {stable_mosaic.version = 11 : i64} {
  func.func private @main(%arg0: i32) attributes {dimension_semantics = [#tpu.dimension_semantics<core_parallel>], iteration_bounds = array<i64: 2>, tpu.core_type = #tpu.core_type<sc_scalar_subcore>, window_params = []} {
    return
  }
}

module attributes {stable_mosaic.version = 11 : i64} {
  func.func private @main(%arg0: i32) attributes {dimension_semantics = [#tpu.dimension_semantics<core_parallel>], iteration_bounds = array<i64: 2>, tpu.core_type = #tpu.core_type<sc_scalar_subcore>, window_params = []} {
    return
  }
}

module attributes {stable_mosaic.version = 11 : i64} {
  func.func @_spp_kernel(%arg0: i32, %arg1: memref<1x4x1024xf32, #tpu.memory_space<vmem>>, %arg2: memref<1024x96xf32, #tpu.memory_space<vmem>>, %arg3: memref<96x1024xf32, #tpu.memory_space<vmem>>, %arg4: memref<4x4x4xf32, #tpu.memory_space<vmem>>, %arg5: memref<4x4x1xf32, #tpu.memory_space<vmem>>, %arg6: memref<8x180xf32, #tpu.memory_space<vmem>>, %arg7: memref<8x1xf32, #tpu.memory_space<vmem>>, %arg8: memref<1x8x1024xf32, #tpu.memory_space<vmem>>, %arg9: memref<20x1280xf32, #tpu.memory_space<vmem>>, %arg10: memref<180x1024xf32, #tpu.memory_space<vmem>>) attributes {dimension_semantics = [#tpu.dimension_semantics<parallel>], iteration_bounds = array<i64: 2>, scalar_prefetch = 0 : i64, scratch_operands = 2 : i64, tpu.core_type = #tpu.core_type<tc>, window_params = [{transform_indices = @transform_0, window_bounds = array<i64: 1, 4, 1024>}, {pipeline_mode = #tpu.pipeline_mode<synchronous>, transform_indices = @transform_1, window_bounds = array<i64: 1024, 96>}, {pipeline_mode = #tpu.pipeline_mode<synchronous>, transform_indices = @transform_2, window_bounds = array<i64: 96, 1024>}, {pipeline_mode = #tpu.pipeline_mode<synchronous>, transform_indices = @transform_3, window_bounds = array<i64: 4, 4, 4>}, {pipeline_mode = #tpu.pipeline_mode<synchronous>, transform_indices = @transform_4, window_bounds = array<i64: 4, 4, 1>}, {pipeline_mode = #tpu.pipeline_mode<synchronous>, transform_indices = @transform_5, window_bounds = array<i64: 8, 180>}, {pipeline_mode = #tpu.pipeline_mode<synchronous>, transform_indices = @transform_6, window_bounds = array<i64: 8, 1>}, {transform_indices = @transform_7, window_bounds = array<i64: 1, 8, 1024>}]} {
    %c0 = arith.constant 0 : index
    %c0_0 = arith.constant 0 : index
    %c0_1 = arith.constant 0 : index
    %0 = vector.load %arg1[%c0, %c0_0, %c0_1] : memref<1x4x1024xf32, #tpu.memory_space<vmem>>, vector<1x4x1024xf32>
    %1 = vector.shape_cast %0 : vector<1x4x1024xf32> to vector<4x1024xf32>
    %c0_2 = arith.constant 0 : index
    %c0_3 = arith.constant 0 : index
    %2 = vector.load %arg2[%c0_2, %c0_3] : memref<1024x96xf32, #tpu.memory_space<vmem>>, vector<1024x96xf32>
    %cst = arith.constant dense<0.000000e+00> : vector<4x96xf32>
    %3 = tpu.matmul %1, %2, %cst {dimension_numbers = #tpu.dot_dimension_numbers<[1], [0], [0], [1], [0, 0, 1, 1], [], []>} : vector<4x1024xf32>, vector<1024x96xf32>, vector<4x96xf32> -> vector<4x96xf32>
    %4 = vector.extract_strided_slice %3 {offsets = [0, 0], sizes = [4, 64], strides = [1, 1]} : vector<4x96xf32> to vector<4x64xf32>
    %c0_4 = arith.constant 0 : index
    %c0_5 = arith.constant 0 : index
    %c0_6 = arith.constant 0 : index
    %5 = vector.load %arg4[%c0_4, %c0_5, %c0_6] : memref<4x4x4xf32, #tpu.memory_space<vmem>>, vector<1x4x4xf32>
    %6 = vector.shape_cast %5 : vector<1x4x4xf32> to vector<4x4xf32>
    %cst_7 = arith.constant dense<0.000000e+00> : vector<4x64xf32>
    %7 = tpu.matmul %6, %4, %cst_7 {dimension_numbers = #tpu.dot_dimension_numbers<[1], [0], [0], [1], [0, 0, 1, 1], [], []>} : vector<4x4xf32>, vector<4x64xf32>, vector<4x64xf32> -> vector<4x64xf32>
    %c0_8 = arith.constant 0 : index
    %c0_9 = arith.constant 0 : index
    %c0_10 = arith.constant 0 : index
    %8 = vector.load %arg5[%c0_8, %c0_9, %c0_10] : memref<4x4x1xf32, #tpu.memory_space<vmem>>, vector<1x4x1xf32>
    %9 = vector.shape_cast %8 : vector<1x4x1xf32> to vector<4x1xf32>
    %10 = vector.broadcast %9 : vector<4x1xf32> to vector<4x64xf32>
    %11 = arith.addf %7, %10 : vector<4x64xf32>
    %cst_11 = arith.constant 0.000000e+00 : f32
    %12 = vector.broadcast %cst_11 : f32 to vector<4x64xf32>
    %13 = arith.cmpf oge, %11, %12 : vector<4x64xf32>
    %cst_12 = arith.constant 2.000000e-01 : f32
    %14 = vector.broadcast %cst_12 : f32 to vector<4x64xf32>
    %15 = arith.mulf %14, %11 : vector<4x64xf32>
    %16 = arith.select %13, %11, %15 : vector<4x64xi1>, vector<4x64xf32>
    %c0_13 = arith.constant 0 : index
    %c0_14 = arith.constant 0 : index
    %17 = vector.load %arg3[%c0_13, %c0_14] : memref<96x1024xf32, #tpu.memory_space<vmem>>, vector<64x1024xf32>
    %cst_15 = arith.constant dense<0.000000e+00> : vector<4x1024xf32>
    %18 = tpu.matmul %16, %17, %cst_15 {dimension_numbers = #tpu.dot_dimension_numbers<[1], [0], [0], [1], [0, 0, 1, 1], [], []>} : vector<4x64xf32>, vector<64x1024xf32>, vector<4x1024xf32> -> vector<4x1024xf32>
    %c0_16 = arith.constant 0 : index
    %c128 = arith.constant 128 : index
    %19 = vector.load %arg9[%c0_16, %c128] : memref<20x1280xf32, #tpu.memory_space<vmem>>, vector<4x1024xf32>
    tpu.vector_store %arg9[%c0_16, %c128], %18 {strides = array<i32>} : memref<20x1280xf32, #tpu.memory_space<vmem>>, vector<4x1024xf32>,
    %20 = vector.extract_strided_slice %3 {offsets = [0, 64], sizes = [4, 16], strides = [1, 1]} : vector<4x96xf32> to vector<4x16xf32>
    %c1 = arith.constant 1 : index
    %c0_17 = arith.constant 0 : index
    %c0_18 = arith.constant 0 : index
    %21 = vector.load %arg4[%c1, %c0_17, %c0_18] : memref<4x4x4xf32, #tpu.memory_space<vmem>>, vector<1x4x4xf32>
    %22 = vector.shape_cast %21 : vector<1x4x4xf32> to vector<4x4xf32>
    %cst_19 = arith.constant dense<0.000000e+00> : vector<4x16xf32>
    %23 = tpu.matmul %22, %20, %cst_19 {dimension_numbers = #tpu.dot_dimension_numbers<[1], [0], [0], [1], [0, 0, 1, 1], [], []>} : vector<4x4xf32>, vector<4x16xf32>, vector<4x16xf32> -> vector<4x16xf32>
    %c1_20 = arith.constant 1 : index
    %c0_21 = arith.constant 0 : index
    %c0_22 = arith.constant 0 : index
    %24 = vector.load %arg5[%c1_20, %c0_21, %c0_22] : memref<4x4x1xf32, #tpu.memory_space<vmem>>, vector<1x4x1xf32>
    %25 = vector.shape_cast %24 : vector<1x4x1xf32> to vector<4x1xf32>
    %26 = vector.broadcast %25 : vector<4x1xf32> to vector<4x16xf32>
    %27 = arith.addf %23, %26 : vector<4x16xf32>
    %cst_23 = arith.constant 0.000000e+00 : f32
    %28 = vector.broadcast %cst_23 : f32 to vector<4x16xf32>
    %29 = arith.cmpf oge, %27, %28 : vector<4x16xf32>
    %cst_24 = arith.constant 2.000000e-01 : f32
    %30 = vector.broadcast %cst_24 : f32 to vector<4x16xf32>
    %31 = arith.mulf %30, %27 : vector<4x16xf32>
    %32 = arith.select %29, %27, %31 : vector<4x16xi1>, vector<4x16xf32>
    %c64 = arith.constant 64 : index
    %c0_25 = arith.constant 0 : index
    %33 = vector.load %arg3[%c64, %c0_25] : memref<96x1024xf32, #tpu.memory_space<vmem>>, vector<16x1024xf32>
    %cst_26 = arith.constant dense<0.000000e+00> : vector<4x1024xf32>
    %34 = tpu.matmul %32, %33, %cst_26 {dimension_numbers = #tpu.dot_dimension_numbers<[1], [0], [0], [1], [0, 0, 1, 1], [], []>} : vector<4x16xf32>, vector<16x1024xf32>, vector<4x1024xf32> -> vector<4x1024xf32>
    %c4 = arith.constant 4 : index
    %c128_27 = arith.constant 128 : index
    %35 = vector.load %arg9[%c4, %c128_27] : memref<20x1280xf32, #tpu.memory_space<vmem>>, vector<4x1024xf32>
    tpu.vector_store %arg9[%c4, %c128_27], %34 {strides = array<i32>} : memref<20x1280xf32, #tpu.memory_space<vmem>>, vector<4x1024xf32>,
    %36 = vector.extract_strided_slice %3 {offsets = [0, 80], sizes = [4, 8], strides = [1, 1]} : vector<4x96xf32> to vector<4x8xf32>
    %c2 = arith.constant 2 : index
    %c0_28 = arith.constant 0 : index
    %c0_29 = arith.constant 0 : index
    %37 = vector.load %arg4[%c2, %c0_28, %c0_29] : memref<4x4x4xf32, #tpu.memory_space<vmem>>, vector<1x4x4xf32>
    %38 = vector.shape_cast %37 : vector<1x4x4xf32> to vector<4x4xf32>
    %cst_30 = arith.constant dense<0.000000e+00> : vector<4x8xf32>
    %39 = tpu.matmul %38, %36, %cst_30 {dimension_numbers = #tpu.dot_dimension_numbers<[1], [0], [0], [1], [0, 0, 1, 1], [], []>} : vector<4x4xf32>, vector<4x8xf32>, vector<4x8xf32> -> vector<4x8xf32>
    %c2_31 = arith.constant 2 : index
    %c0_32 = arith.constant 0 : index
    %c0_33 = arith.constant 0 : index
    %40 = vector.load %arg5[%c2_31, %c0_32, %c0_33] : memref<4x4x1xf32, #tpu.memory_space<vmem>>, vector<1x4x1xf32>
    %41 = vector.shape_cast %40 : vector<1x4x1xf32> to vector<4x1xf32>
    %42 = vector.broadcast %41 : vector<4x1xf32> to vector<4x8xf32>
    %43 = arith.addf %39, %42 : vector<4x8xf32>
    %cst_34 = arith.constant 0.000000e+00 : f32
    %44 = vector.broadcast %cst_34 : f32 to vector<4x8xf32>
    %45 = arith.cmpf oge, %43, %44 : vector<4x8xf32>
    %cst_35 = arith.constant 2.000000e-01 : f32
    %46 = vector.broadcast %cst_35 : f32 to vector<4x8xf32>
    %47 = arith.mulf %46, %43 : vector<4x8xf32>
    %48 = arith.select %45, %43, %47 : vector<4x8xi1>, vector<4x8xf32>
    %c80 = arith.constant 80 : index
    %c0_36 = arith.constant 0 : index
    %49 = vector.load %arg3[%c80, %c0_36] : memref<96x1024xf32, #tpu.memory_space<vmem>>, vector<8x1024xf32>
    %cst_37 = arith.constant dense<0.000000e+00> : vector<4x1024xf32>
    %50 = tpu.matmul %48, %49, %cst_37 {dimension_numbers = #tpu.dot_dimension_numbers<[1], [0], [0], [1], [0, 0, 1, 1], [], []>} : vector<4x8xf32>, vector<8x1024xf32>, vector<4x1024xf32> -> vector<4x1024xf32>
    %c8 = arith.constant 8 : index
    %c128_38 = arith.constant 128 : index
    %51 = vector.load %arg9[%c8, %c128_38] : memref<20x1280xf32, #tpu.memory_space<vmem>>, vector<4x1024xf32>
    tpu.vector_store %arg9[%c8, %c128_38], %50 {strides = array<i32>} : memref<20x1280xf32, #tpu.memory_space<vmem>>, vector<4x1024xf32>,
    %52 = vector.extract_strided_slice %3 {offsets = [0, 88], sizes = [4, 8], strides = [1, 1]} : vector<4x96xf32> to vector<4x8xf32>
    %c3 = arith.constant 3 : index
    %c0_39 = arith.constant 0 : index
    %c0_40 = arith.constant 0 : index
    %53 = vector.load %arg4[%c3, %c0_39, %c0_40] : memref<4x4x4xf32, #tpu.memory_space<vmem>>, vector<1x4x4xf32>
    %54 = vector.shape_cast %53 : vector<1x4x4xf32> to vector<4x4xf32>
    %cst_41 = arith.constant dense<0.000000e+00> : vector<4x8xf32>
    %55 = tpu.matmul %54, %52, %cst_41 {dimension_numbers = #tpu.dot_dimension_numbers<[1], [0], [0], [1], [0, 0, 1, 1], [], []>} : vector<4x4xf32>, vector<4x8xf32>, vector<4x8xf32> -> vector<4x8xf32>
    %c3_42 = arith.constant 3 : index
    %c0_43 = arith.constant 0 : index
    %c0_44 = arith.constant 0 : index
    %56 = vector.load %arg5[%c3_42, %c0_43, %c0_44] : memref<4x4x1xf32, #tpu.memory_space<vmem>>, vector<1x4x1xf32>
    %57 = vector.shape_cast %56 : vector<1x4x1xf32> to vector<4x1xf32>
    %58 = vector.broadcast %57 : vector<4x1xf32> to vector<4x8xf32>
    %59 = arith.addf %55, %58 : vector<4x8xf32>
    %cst_45 = arith.constant 0.000000e+00 : f32
    %60 = vector.broadcast %cst_45 : f32 to vector<4x8xf32>
    %61 = arith.cmpf oge, %59, %60 : vector<4x8xf32>
    %cst_46 = arith.constant 2.000000e-01 : f32
    %62 = vector.broadcast %cst_46 : f32 to vector<4x8xf32>
    %63 = arith.mulf %62, %59 : vector<4x8xf32>
    %64 = arith.select %61, %59, %63 : vector<4x8xi1>, vector<4x8xf32>
    %c88 = arith.constant 88 : index
    %c0_47 = arith.constant 0 : index
    %65 = vector.load %arg3[%c88, %c0_47] : memref<96x1024xf32, #tpu.memory_space<vmem>>, vector<8x1024xf32>
    %cst_48 = arith.constant dense<0.000000e+00> : vector<4x1024xf32>
    %66 = tpu.matmul %64, %65, %cst_48 {dimension_numbers = #tpu.dot_dimension_numbers<[1], [0], [0], [1], [0, 0, 1, 1], [], []>} : vector<4x8xf32>, vector<8x1024xf32>, vector<4x1024xf32> -> vector<4x1024xf32>
    %c12 = arith.constant 12 : index
    %c128_49 = arith.constant 128 : index
    %67 = vector.load %arg9[%c12, %c128_49] : memref<20x1280xf32, #tpu.memory_space<vmem>>, vector<4x1024xf32>
    tpu.vector_store %arg9[%c12, %c128_49], %66 {strides = array<i32>} : memref<20x1280xf32, #tpu.memory_space<vmem>>, vector<4x1024xf32>,
    %c16 = arith.constant 16 : index
    %c128_50 = arith.constant 128 : index
    %68 = vector.load %arg9[%c16, %c128_50] : memref<20x1280xf32, #tpu.memory_space<vmem>>, vector<4x1024xf32>
    tpu.vector_store %arg9[%c16, %c128_50], %1 {strides = array<i32>} : memref<20x1280xf32, #tpu.memory_space<vmem>>, vector<4x1024xf32>,
    %c0_51 = arith.constant 0 : index
    %c160 = arith.constant 160 : index
    %69 = vector.load %arg9[%c0_51, %c160] : memref<20x1280xf32, #tpu.memory_space<vmem>>, vector<20x32xf32>
    %c0_52 = arith.constant 0 : index
    %c96 = arith.constant 96 : index
    %70 = vector.load %arg9[%c0_52, %c96] : memref<20x1280xf32, #tpu.memory_space<vmem>>, vector<20x32xf32>
    tpu.vector_store %arg9[%c0_52, %c96], %69 {strides = array<i32>} : memref<20x1280xf32, #tpu.memory_space<vmem>>, vector<20x32xf32>,
    %c0_53 = arith.constant 0 : index
    %c1088 = arith.constant 1088 : index
    %71 = vector.load %arg9[%c0_53, %c1088] : memref<20x1280xf32, #tpu.memory_space<vmem>>, vector<20x32xf32>
    %c0_54 = arith.constant 0 : index
    %c1152 = arith.constant 1152 : index
    %72 = vector.load %arg9[%c0_54, %c1152] : memref<20x1280xf32, #tpu.memory_space<vmem>>, vector<20x32xf32>
    tpu.vector_store %arg9[%c0_54, %c1152], %71 {strides = array<i32>} : memref<20x1280xf32, #tpu.memory_space<vmem>>, vector<20x32xf32>,
    %73 = tpu.iota {dimensions = array<i32: 1>} : vector<20x1024xi32>
    %c32_i32 = arith.constant 32 : i32
    %c0_i32 = arith.constant 0 : i32
    %74 = arith.cmpi eq, %c32_i32, %c0_i32 : i32
    %c1_i32 = arith.constant 1 : i32
    %75 = arith.select %74, %c1_i32, %c32_i32 : i32
    %76 = vector.broadcast %75 : i32 to vector<20x1024xi32>
    %77 = arith.remsi %73, %76 : vector<20x1024xi32>
    %c0_i32_55 = arith.constant 0 : i32
    %78 = vector.broadcast %c0_i32_55 : i32 to vector<20x1024xi32>
    %79 = arith.cmpi ne, %77, %78 : vector<20x1024xi32>
    %c0_i32_56 = arith.constant 0 : i32
    %80 = vector.broadcast %c0_i32_56 : i32 to vector<20x1024xi32>
    %81 = arith.cmpi slt, %77, %80 : vector<20x1024xi32>
    %c0_i32_57 = arith.constant 0 : i32
    %82 = arith.cmpi slt, %75, %c0_i32_57 : i32
    %83 = vector.broadcast %82 : i1 to vector<20x1024xi1>
    %84 = vector.broadcast %83 : vector<20x1024xi1> to vector<20x1024xi1>
    %85 = arith.xori %81, %84 : vector<20x1024xi1>
    %86 = arith.andi %85, %79 : vector<20x1024xi1>
    %87 = vector.broadcast %75 : i32 to vector<20x1024xi32>
    %88 = arith.addi %77, %87 : vector<20x1024xi32>
    %89 = arith.select %86, %88, %77 : vector<20x1024xi1>, vector<20x1024xi32>
    %c0_i32_58 = arith.constant 0 : i32
    %90 = vector.broadcast %c0_i32_58 : i32 to vector<20x1024xi32>
    %91 = arith.cmpi eq, %89, %90 : vector<20x1024xi32>
    %c31_i32 = arith.constant 31 : i32
    %92 = vector.broadcast %c31_i32 : i32 to vector<20x1024xi32>
    %93 = arith.cmpi eq, %89, %92 : vector<20x1024xi32>
    %c0_59 = arith.constant 0 : index
    %c95 = arith.constant 95 : index
    %94 = vector.load %arg9[%c0_59, %c95] : memref<20x1280xf32, #tpu.memory_space<vmem>>, vector<20x1024xf32>
    %c0_60 = arith.constant 0 : index
    %c96_61 = arith.constant 96 : index
    %95 = vector.load %arg9[%c0_60, %c96_61] : memref<20x1280xf32, #tpu.memory_space<vmem>>, vector<20x1024xf32>
    %c0_62 = arith.constant 0 : index
    %c97 = arith.constant 97 : index
    %96 = vector.load %arg9[%c0_62, %c97] : memref<20x1280xf32, #tpu.memory_space<vmem>>, vector<20x1024xf32>
    %97 = arith.select %91, %96, %94 : vector<20x1024xi1>, vector<20x1024xf32>
    %98 = arith.select %93, %94, %96 : vector<20x1024xi1>, vector<20x1024xf32>
    %c0_63 = arith.constant 0 : index
    %c0_64 = arith.constant 0 : index
    %99 = vector.load %arg10[%c0_63, %c0_64] : memref<180x1024xf32, #tpu.memory_space<vmem>>, vector<20x1024xf32>
    tpu.vector_store %arg10[%c0_63, %c0_64], %97 {strides = array<i32>} : memref<180x1024xf32, #tpu.memory_space<vmem>>, vector<20x1024xf32>,
    %c20 = arith.constant 20 : index
    %c0_65 = arith.constant 0 : index
    %100 = vector.load %arg10[%c20, %c0_65] : memref<180x1024xf32, #tpu.memory_space<vmem>>, vector<20x1024xf32>
    tpu.vector_store %arg10[%c20, %c0_65], %95 {strides = array<i32>} : memref<180x1024xf32, #tpu.memory_space<vmem>>, vector<20x1024xf32>,
    %c40 = arith.constant 40 : index
    %c0_66 = arith.constant 0 : index
    %101 = vector.load %arg10[%c40, %c0_66] : memref<180x1024xf32, #tpu.memory_space<vmem>>, vector<20x1024xf32>
    tpu.vector_store %arg10[%c40, %c0_66], %98 {strides = array<i32>} : memref<180x1024xf32, #tpu.memory_space<vmem>>, vector<20x1024xf32>,
    %c0_67 = arith.constant 0 : index
    %c127 = arith.constant 127 : index
    %102 = vector.load %arg9[%c0_67, %c127] : memref<20x1280xf32, #tpu.memory_space<vmem>>, vector<20x1024xf32>
    %c0_68 = arith.constant 0 : index
    %c128_69 = arith.constant 128 : index
    %103 = vector.load %arg9[%c0_68, %c128_69] : memref<20x1280xf32, #tpu.memory_space<vmem>>, vector<20x1024xf32>
    %c0_70 = arith.constant 0 : index
    %c129 = arith.constant 129 : index
    %104 = vector.load %arg9[%c0_70, %c129] : memref<20x1280xf32, #tpu.memory_space<vmem>>, vector<20x1024xf32>
    %105 = arith.select %91, %104, %102 : vector<20x1024xi1>, vector<20x1024xf32>
    %106 = arith.select %93, %102, %104 : vector<20x1024xi1>, vector<20x1024xf32>
    %c60 = arith.constant 60 : index
    %c0_71 = arith.constant 0 : index
    %107 = vector.load %arg10[%c60, %c0_71] : memref<180x1024xf32, #tpu.memory_space<vmem>>, vector<20x1024xf32>
    tpu.vector_store %arg10[%c60, %c0_71], %105 {strides = array<i32>} : memref<180x1024xf32, #tpu.memory_space<vmem>>, vector<20x1024xf32>,
    %c80_72 = arith.constant 80 : index
    %c0_73 = arith.constant 0 : index
    %108 = vector.load %arg10[%c80_72, %c0_73] : memref<180x1024xf32, #tpu.memory_space<vmem>>, vector<20x1024xf32>
    tpu.vector_store %arg10[%c80_72, %c0_73], %103 {strides = array<i32>} : memref<180x1024xf32, #tpu.memory_space<vmem>>, vector<20x1024xf32>,
    %c100 = arith.constant 100 : index
    %c0_74 = arith.constant 0 : index
    %109 = vector.load %arg10[%c100, %c0_74] : memref<180x1024xf32, #tpu.memory_space<vmem>>, vector<20x1024xf32>
    tpu.vector_store %arg10[%c100, %c0_74], %106 {strides = array<i32>} : memref<180x1024xf32, #tpu.memory_space<vmem>>, vector<20x1024xf32>,
    %c0_75 = arith.constant 0 : index
    %c159 = arith.constant 159 : index
    %110 = vector.load %arg9[%c0_75, %c159] : memref<20x1280xf32, #tpu.memory_space<vmem>>, vector<20x1024xf32>
    %c0_76 = arith.constant 0 : index
    %c160_77 = arith.constant 160 : index
    %111 = vector.load %arg9[%c0_76, %c160_77] : memref<20x1280xf32, #tpu.memory_space<vmem>>, vector<20x1024xf32>
    %c0_78 = arith.constant 0 : index
    %c161 = arith.constant 161 : index
    %112 = vector.load %arg9[%c0_78, %c161] : memref<20x1280xf32, #tpu.memory_space<vmem>>, vector<20x1024xf32>
    %113 = arith.select %91, %112, %110 : vector<20x1024xi1>, vector<20x1024xf32>
    %114 = arith.select %93, %110, %112 : vector<20x1024xi1>, vector<20x1024xf32>
    %c120 = arith.constant 120 : index
    %c0_79 = arith.constant 0 : index
    %115 = vector.load %arg10[%c120, %c0_79] : memref<180x1024xf32, #tpu.memory_space<vmem>>, vector<20x1024xf32>
    tpu.vector_store %arg10[%c120, %c0_79], %113 {strides = array<i32>} : memref<180x1024xf32, #tpu.memory_space<vmem>>, vector<20x1024xf32>,
    %c140 = arith.constant 140 : index
    %c0_80 = arith.constant 0 : index
    %116 = vector.load %arg10[%c140, %c0_80] : memref<180x1024xf32, #tpu.memory_space<vmem>>, vector<20x1024xf32>
    tpu.vector_store %arg10[%c140, %c0_80], %111 {strides = array<i32>} : memref<180x1024xf32, #tpu.memory_space<vmem>>, vector<20x1024xf32>,
    %c160_81 = arith.constant 160 : index
    %c0_82 = arith.constant 0 : index
    %117 = vector.load %arg10[%c160_81, %c0_82] : memref<180x1024xf32, #tpu.memory_space<vmem>>, vector<20x1024xf32>
    tpu.vector_store %arg10[%c160_81, %c0_82], %114 {strides = array<i32>} : memref<180x1024xf32, #tpu.memory_space<vmem>>, vector<20x1024xf32>,
    %c0_83 = arith.constant 0 : index
    %c0_84 = arith.constant 0 : index
    %118 = vector.load %arg6[%c0_83, %c0_84] : memref<8x180xf32, #tpu.memory_space<vmem>>, vector<8x180xf32>
    %c0_85 = arith.constant 0 : index
    %c0_86 = arith.constant 0 : index
    %119 = vector.load %arg10[%c0_85, %c0_86] : memref<180x1024xf32, #tpu.memory_space<vmem>>, vector<180x1024xf32>
    %cst_87 = arith.constant dense<0.000000e+00> : vector<8x1024xf32>
    %120 = tpu.matmul %118, %119, %cst_87 {dimension_numbers = #tpu.dot_dimension_numbers<[1], [0], [0], [1], [0, 0, 1, 1], [], []>} : vector<8x180xf32>, vector<180x1024xf32>, vector<8x1024xf32> -> vector<8x1024xf32>
    %c0_88 = arith.constant 0 : index
    %c0_89 = arith.constant 0 : index
    %121 = vector.load %arg7[%c0_88, %c0_89] : memref<8x1xf32, #tpu.memory_space<vmem>>, vector<8x1xf32>
    %122 = vector.broadcast %121 : vector<8x1xf32> to vector<8x1024xf32>
    %123 = arith.addf %120, %122 : vector<8x1024xf32>
    %cst_90 = arith.constant 0.000000e+00 : f32
    %124 = vector.broadcast %cst_90 : f32 to vector<8x1024xf32>
    %125 = arith.cmpf oge, %123, %124 : vector<8x1024xf32>
    %cst_91 = arith.constant 2.000000e-01 : f32
    %126 = vector.broadcast %cst_91 : f32 to vector<8x1024xf32>
    %127 = arith.mulf %126, %123 : vector<8x1024xf32>
    %128 = arith.select %125, %123, %127 : vector<8x1024xi1>, vector<8x1024xf32>
    %c0_92 = arith.constant 0 : index
    %c0_93 = arith.constant 0 : index
    %c0_94 = arith.constant 0 : index
    %129 = vector.load %arg8[%c0_92, %c0_93, %c0_94] : memref<1x8x1024xf32, #tpu.memory_space<vmem>>, vector<1x8x1024xf32>
    %130 = vector.shape_cast %129 : vector<1x8x1024xf32> to vector<8x1024xf32>
    %131 = vector.shape_cast %128 : vector<8x1024xf32> to vector<1x8x1024xf32>
    tpu.vector_store %arg8[%c0_92, %c0_93, %c0_94], %131 {strides = array<i32>} : memref<1x8x1024xf32, #tpu.memory_space<vmem>>, vector<1x8x1024xf32>,
    return
  }
  func.func @transform_0(%arg0: i32) -> (i32, i32, i32) {
    %c0_i32 = arith.constant 0 : i32
    %c0_i32_0 = arith.constant 0 : i32
    %c0_i32_1 = arith.constant 0 : i32
    return %arg0, %c0_i32, %c0_i32_0 : i32, i32, i32
  }
  func.func @transform_1(%arg0: i32) -> (i32, i32) {
    %c0_i32 = arith.constant 0 : i32
    %c0_i32_0 = arith.constant 0 : i32
    %c0_i32_1 = arith.constant 0 : i32
    return %c0_i32, %c0_i32_0 : i32, i32
  }
  func.func @transform_2(%arg0: i32) -> (i32, i32) {
    %c0_i32 = arith.constant 0 : i32
    %c0_i32_0 = arith.constant 0 : i32
    %c0_i32_1 = arith.constant 0 : i32
    return %c0_i32, %c0_i32_0 : i32, i32
  }
  func.func @transform_3(%arg0: i32) -> (i32, i32, i32) {
    %c0_i32 = arith.constant 0 : i32
    %c0_i32_0 = arith.constant 0 : i32
    %c0_i32_1 = arith.constant 0 : i32
    %c0_i32_2 = arith.constant 0 : i32
    return %c0_i32, %c0_i32_0, %c0_i32_1 : i32, i32, i32
  }
  func.func @transform_4(%arg0: i32) -> (i32, i32, i32) {
    %c0_i32 = arith.constant 0 : i32
    %c0_i32_0 = arith.constant 0 : i32
    %c0_i32_1 = arith.constant 0 : i32
    %c0_i32_2 = arith.constant 0 : i32
    return %c0_i32, %c0_i32_0, %c0_i32_1 : i32, i32, i32
  }
  func.func @transform_5(%arg0: i32) -> (i32, i32) {
    %c0_i32 = arith.constant 0 : i32
    %c0_i32_0 = arith.constant 0 : i32
    %c0_i32_1 = arith.constant 0 : i32
    return %c0_i32, %c0_i32_0 : i32, i32
  }
  func.func @transform_6(%arg0: i32) -> (i32, i32) {
    %c0_i32 = arith.constant 0 : i32
    %c0_i32_0 = arith.constant 0 : i32
    %c0_i32_1 = arith.constant 0 : i32
    return %c0_i32, %c0_i32_0 : i32, i32
  }
  func.func @transform_7(%arg0: i32) -> (i32, i32, i32) {
    %c0_i32 = arith.constant 0 : i32
    %c0_i32_0 = arith.constant 0 : i32
    %c0_i32_1 = arith.constant 0 : i32
    return %arg0, %c0_i32, %c0_i32_0 : i32, i32, i32
  }
}

</mosaic_0001>

<bundles_post_ra>
// kernel: mul.190
= control target key start
LH: loop header
LB: loop body
LE: loop exit
PB: predicated region body
PF: predicated region fallthrough
CT: control target
= control target key end

     0   :  { %s188_s0 = inlined_call_operand.vmem [shape: f32[1,1024], index: 0, kind: input, shape index: {}]   ;;  %s189_s1 = inlined_call_operand.vmem [shape: f32[1,1024], index: 1, kind: input, shape index: {}]   ;;  %s190_s2 = inlined_call_operand.vmem [shape: f32[1,1024], index: 2, kind: output, shape index: {}]  }
   0x1   :  { %v3_v0 = vld [vmem:[%s188_s0] sm:$0x1]  ;;  %v80_v2 = vld [vmem:[%s188_s0 + $0x1] sm:$0x1]  ;;  %v83_v5 = vld [vmem:[%s188_s0 + $0x2] sm:$0x1] }
   0x2   :  { %v4_v1 = vld [vmem:[%s189_s1] sm:$0x1]  ;;  %v81_v4 = vld [vmem:[%s189_s1 + $0x1] sm:$0x1]  ;;  %v84_v6 = vld [vmem:[%s189_s1 + $0x2] sm:$0x1] }
   0x3   :  { %v7_v3 = vmul.f32 %v4_v1, %v3_v0  ;;  %v16_v7 = vmul.f32 %v81_v4, %v80_v2  ;;  %v26_v8 = vmul.f32 %v84_v6, %v83_v5  ;;  %v86_v9 = vld [vmem:[%s188_s0 + $0x3] sm:$0x1]  ;;  %v89_v11 = vld [vmem:[%s188_s0 + $0x4] sm:$0x1]  ;;  %v92_v14 = vld [vmem:[%s188_s0 + $0x5] sm:$0x1] }
   0x4   :  { %v87_v10 = vld [vmem:[%s189_s1 + $0x3] sm:$0x1]  ;;  %v90_v13 = vld [vmem:[%s189_s1 + $0x4] sm:$0x1]  ;;  %v93_v15 = vld [vmem:[%s189_s1 + $0x5] sm:$0x1] }
   0x5   :  { %9 = vst [vmem:[%s190_s2] sm:$0x1] %v7_v3  ;;  %v36_v12 = vmul.f32 %v87_v10, %v86_v9  ;;  %82 = vst [vmem:[%s190_s2 + $0x1] sm:$0x1] %v16_v7  ;;  %v46_v16 = vmul.f32 %v90_v13, %v89_v11  ;;  %v56_v17 = vmul.f32 %v93_v15, %v92_v14  ;;  %v95_v18 = vld [vmem:[%s188_s0 + $0x6] sm:$0x1] }
   0x6   :  { %85 = vst [vmem:[%s190_s2 + $0x2] sm:$0x1] %v26_v8  ;;  %v96_v19 = vld [vmem:[%s189_s1 + $0x6] sm:$0x1]  ;;  %v98_v20 = vld [vmem:[%s188_s0 + $0x7] sm:$0x1] }
   0x7   :  { %88 = vst [vmem:[%s190_s2 + $0x3] sm:$0x1] %v36_v12  ;;  %v66_v21 = vmul.f32 %v96_v19, %v95_v18  ;;  %v99_v22 = vld [vmem:[%s189_s1 + $0x7] sm:$0x1]  ;;  %91 = vst [vmem:[%s190_s2 + $0x4] sm:$0x1] %v46_v16 }
   0x8   :  { %94 = vst [vmem:[%s190_s2 + $0x5] sm:$0x1] %v56_v17  ;;  %v76_v23 = vmul.f32 %v99_v22, %v98_v20 }
   0x9   :  { %97 = vst [vmem:[%s190_s2 + $0x6] sm:$0x1] %v66_v21 }
   0xa   :  { %100 = vst [vmem:[%s190_s2 + $0x7] sm:$0x1] %v76_v23 }

// kernel: spp_forward.1
= control target key start
LH: loop header
LB: loop body
LE: loop exit
PB: predicated region body
PF: predicated region fallthrough
CT: control target
= control target key end

     0   :  { %s5474_s24 = smov 0   ;;  %s8265_s0 = inlined_call_operand.vmem [shape: f32[2,4,1024], index: 0, kind: input, shape index: {}]   ;;  %s8266_s1 = inlined_call_operand.vmem [shape: f32[1024,96], index: 1, kind: input, shape index: {}]   ;;  %s8267_s2 = inlined_call_operand.vmem [shape: f32[96,1024], index: 2, kind: input, shape index: {}]   ;;  %s8268_s3 = inlined_call_operand.vmem [shape: f32[4,4,4], index: 3, kind: input, shape index: {}]   ;;  %s8269_s4 = inlined_call_operand.vmem [shape: f32[4,4,1], index: 4, kind: input, shape index: {}]   ;;  %s8270_s5 = inlined_call_operand.vmem [shape: f32[8,180], index: 5, kind: input, shape index: {}]   ;;  %s8271_s6 = inlined_call_operand.vmem [shape: f32[8,1], index: 6, kind: input, shape index: {}]   ;;  %s8272_s7 = inlined_call_operand.vmem [shape: f32[2,8,1024], index: 7, kind: output, shape index: {}]  }
   0x1 LB: > { %s4762_s25 = sadd.s32 4294967295, %s5418_s24   ;;  %p4766_p0 = scmp.ge.s32.totalorder %s5418_s24, 1  ;;  %s5418_s24 = sphi %s5474_s24, %s17_s24  }
   0x2   : > { %p237_p1 = scmp.lt.s32.totalorder %s5418_s24, 3 }
   0x4   : > { %p238_p2 = pnand %p4766_p0, %p237_p1 }
   0x6   : > { %241 = sbr.rel (%p238_p2) target bundleno = 2031 (0x7ef), region = 48 }
   0xd   : > { %v299_v0 = vld [vmem:[%s8266_s1 + $0x80] sm:$0xff]  ;;  %v300_v1 = vld [vmem:[%s8266_s1 + $0x88] sm:$0xff]  ;;  %v301_v11 = vld [vmem:[%s8266_s1 + $0x90] sm:$0xff]  ;;  %p5556_p3 = scmp.lt.s32.totalorder %s4762_s25, 1  ;;  %vm8276_vm0 = vmmov 0   ;;  %vm8277_vm1 = vcmask 1043456  }
   0xe   : > { %v331_v2 = vld [vmem:[%s8266_s1 + $0x180] sm:$0xff]  ;;  %v4985_v3 = vpack.c.bf16 %v300_v1, %v299_v0  ;;  %v332_v4 = vld [vmem:[%s8266_s1 + $0x188] sm:$0xff]  ;;  %v302_v13 = vld [vmem:[%s8266_s1 + $0x98] sm:$0xff]  ;;  %vm8275_vm2 = vcmask 31744   ;;  %s5423_s17 = smov 48   ;;  %s5424_s18 = smov 64  }
   0xf   : > { %v283_v5 = vld [vmem:[%s8266_s1] sm:$0xff]  ;;  %v284_v6 = vld [vmem:[%s8266_s1 + $0x8] sm:$0xff]  ;;  %v5017_v7 = vpack.c.bf16 %v332_v4, %v331_v2  ;;  %v333_v14 = vld [vmem:[%s8266_s1 + $0x190] sm:$0xff]  ;;  %v4989_v16 = vpack.c.bf16 %v302_v13, %v301_v11  ;;  %s8798_s25 = smov (!%p5556_p3, %s4762_s25), 1  ;;  %s5425_s30 = smov 40   ;;  %vm855_vm4 = vcmask 523264  }
  0x10   : > { %v4987_v8 = vpack.c.bf16 %v284_v6, %v283_v5  ;;  %v315_v9 = vld [vmem:[%s8266_s1 + $0x100] sm:$0xff]  ;;  %v316_v10 = vld [vmem:[%s8266_s1 + $0x108] sm:$0xff]  ;;  %4986 = vmatprep.subr.bf16.mxu0 %v4985_v3  ;;  %v334_v15 = vld [vmem:[%s8266_s1 + $0x198] sm:$0xff]  ;;  %s4815_s8 = sshll.u32 %s8798_s25, 5  ;;  %s5426_s21 = smov 31   ;;  %vm2411_vm5 = vcmask 1044224  }
  0x11   : > { %v5019_v12 = vpack.c.bf16 %v316_v10, %v315_v9  ;;  %5018 = vmatprep.subr.bf16.mxu1 %v5017_v7  ;;  %v5021_v17 = vpack.c.bf16 %v334_v15, %v333_v14  ;;  %v285_v18 = vld [vmem:[%s8266_s1 + $0x10] sm:$0xff]  ;;  %v286_v19 = vld [vmem:[%s8266_s1 + $0x18] sm:$0xff]  ;;  %v303_v23 = vld [vmem:[%s8266_s1 + $0xa0] sm:$0xff]  ;;  %s5648_s23 = scalar_lea.vmem %s8265_s0, %s4815_s8  ;;  %s5427_s22 = smov 33   ;;  %vm2431_vm6 = vcmask 257024   ;;  %vm1256_vm8 = vcmask 130048  }
  0x12   : > { %4988 = vmatpush3.bf16.msra.mxu0 %v4987_v8  ;;  %v317_v20 = vld [vmem:[%s8266_s1 + $0x110] sm:$0xff]  ;;  %v4991_v21 = vpack.c.bf16 %v286_v19, %v285_v18  ;;  %v318_v22 = vld [vmem:[%s8266_s1 + $0x118] sm:$0xff]  ;;  %v304_v24 = vld [vmem:[%s8266_s1 + $0xa8] sm:$0xff]  ;;  %s5428_s13 = smov 127   ;;  %s5429_s14 = smov 1   ;;  %vm8280_vm9 = vcmask 252928  }
  0x13   : > { %5020 = vmatpush3.bf16.msra.mxu1 %v5019_v12  ;;  %4990 = vmatprep.subr.bf16.mxu0 %v4989_v16  ;;  %v5023_v25 = vpack.c.bf16 %v318_v22, %v317_v20  ;;  %v4993_v26 = vpack.c.bf16 %v304_v24, %v303_v23  ;;  %v335_v27 = vld [vmem:[%s8266_s1 + $0x1a0] sm:$0xff]  ;;  %v336_v28 = vld [vmem:[%s8266_s1 + $0x1a8] sm:$0xff]  ;;  %v305_v35 = vld [vmem:[%s8266_s1 + $0xb0] sm:$0xff]  ;;  %s5430_s15 = smov 95   ;;  %s5431_s16 = smov 97   ;;  %vm8281_vm10 = vcmask 269312  }
  0x14   : > { %5022 = vmatprep.subr.bf16.mxu1 %v5021_v17  ;;  %v287_v29 = vld [vmem:[%s8266_s1 + $0x20] sm:$0xff]  ;;  %v5025_v30 = vpack.c.bf16 %v336_v28, %v335_v27  ;;  %v288_v31 = vld [vmem:[%s8266_s1 + $0x28] sm:$0xff]  ;;  %v306_v36 = vld [vmem:[%s8266_s1 + $0xb8] sm:$0xff]  ;;  %s5432_s26 = smov 32   ;;  %s5433_s27 = smov 96  }
  0x15   : > { %v319_v32 = vld [vmem:[%s8266_s1 + $0x120] sm:$0xff]  ;;  %v320_v33 = vld [vmem:[%s8266_s1 + $0x128] sm:$0xff]  ;;  %v4995_v34 = vpack.c.bf16 %v288_v31, %v287_v29  ;;  %v337_v37 = vld [vmem:[%s8266_s1 + $0x1b0] sm:$0xff]  ;;  %v4997_v39 = vpack.c.bf16 %v306_v36, %v305_v35 }
  0x16   : > { %4992 = vmatpush3.bf16.msra.mxu0 %v4991_v21  ;;  %v5027_v38 = vpack.c.bf16 %v320_v33, %v319_v32  ;;  %v338_v40 = vld [vmem:[%s8266_s1 + $0x1b8] sm:$0xff]  ;;  %v289_v41 = vld [vmem:[%s8266_s1 + $0x30] sm:$0xff]  ;;  %v307_v46 = vld [vmem:[%s8266_s1 + $0xc0] sm:$0xff] }
  0x17   : > { %5024 = vmatpush3.bf16.msra.mxu1 %v5023_v25  ;;  %4994 = vmatprep.subr.bf16.mxu0 %v4993_v26  ;;  %v290_v42 = vld [vmem:[%s8266_s1 + $0x38] sm:$0xff]  ;;  %v5029_v43 = vpack.c.bf16 %v338_v40, %v337_v37  ;;  %v321_v44 = vld [vmem:[%s8266_s1 + $0x130] sm:$0xff]  ;;  %v308_v47 = vld [vmem:[%s8266_s1 + $0xc8] sm:$0xff] }
  0x18   : > { %5026 = vmatprep.subr.bf16.mxu1 %v5025_v30  ;;  %v322_v45 = vld [vmem:[%s8266_s1 + $0x138] sm:$0xff]  ;;  %v339_v48 = vld [vmem:[%s8266_s1 + $0x1c0] sm:$0xff]  ;;  %v340_v49 = vld [vmem:[%s8266_s1 + $0x1c8] sm:$0xff]  ;;  %v4999_v50 = vpack.c.bf16 %v290_v42, %v289_v41  ;;  %v5001_v52 = vpack.c.bf16 %v308_v47, %v307_v46 }
  0x19   : > { %v5031_v51 = vpack.c.bf16 %v322_v45, %v321_v44  ;;  %v291_v53 = vld [vmem:[%s8266_s1 + $0x40] sm:$0xff]  ;;  %v292_v54 = vld [vmem:[%s8266_s1 + $0x48] sm:$0xff]  ;;  %v5033_v56 = vpack.c.bf16 %v340_v49, %v339_v48  ;;  %v309_v58 = vld [vmem:[%s8266_s1 + $0xd0] sm:$0xff] }
  0x1a   : > { %4996 = vmatpush3.bf16.msra.mxu0 %v4995_v34  ;;  %v323_v55 = vld [vmem:[%s8266_s1 + $0x140] sm:$0xff]  ;;  %v324_v57 = vld [vmem:[%s8266_s1 + $0x148] sm:$0xff]  ;;  %v310_v59 = vld [vmem:[%s8266_s1 + $0xd8] sm:$0xff]  ;;  %v5003_v62 = vpack.c.bf16 %v292_v54, %v291_v53 }
  0x1b   : > { %5028 = vmatpush3.bf16.msra.mxu1 %v5027_v38  ;;  %4998 = vmatprep.subr.bf16.mxu0 %v4997_v39  ;;  %v341_v60 = vld [vmem:[%s8266_s1 + $0x1d0] sm:$0xff]  ;;  %v342_v61 = vld [vmem:[%s8266_s1 + $0x1d8] sm:$0xff]  ;;  %v5035_v63 = vpack.c.bf16 %v324_v57, %v323_v55  ;;  %v5005_v0 = vpack.c.bf16 %v310_v59, %v309_v58  ;;  %v311_v6 = vld [vmem:[%s8266_s1 + $0xe0] sm:$0xff] }
  0x1c   : > { %5030 = vmatprep.subr.bf16.mxu1 %v5029_v43  ;;  %v293_v1 = vld [vmem:[%s8266_s1 + $0x50] sm:$0xff]  ;;  %v294_v2 = vld [vmem:[%s8266_s1 + $0x58] sm:$0xff]  ;;  %v5037_v4 = vpack.c.bf16 %v342_v61, %v341_v60  ;;  %v312_v7 = vld [vmem:[%s8266_s1 + $0xe8] sm:$0xff] }
  0x1d   : > { %v325_v3 = vld [vmem:[%s8266_s1 + $0x150] sm:$0xff]  ;;  %v326_v5 = vld [vmem:[%s8266_s1 + $0x158] sm:$0xff]  ;;  %v343_v8 = vld [vmem:[%s8266_s1 + $0x1e0] sm:$0xff]  ;;  %v5007_v10 = vpack.c.bf16 %v294_v2, %v293_v1  ;;  %v5009_v14 = vpack.c.bf16 %v312_v7, %v311_v6 }
  0x1e   : > { %5000 = vmatpush3.bf16.msra.mxu0 %v4999_v50  ;;  %v344_v9 = vld [vmem:[%s8266_s1 + $0x1e8] sm:$0xff]  ;;  %v295_v11 = vld [vmem:[%s8266_s1 + $0x60] sm:$0xff]  ;;  %v5039_v13 = vpack.c.bf16 %v326_v5, %v325_v3  ;;  %v313_v20 = vld [vmem:[%s8266_s1 + $0xf0] sm:$0xff] }
  0x1f   : > { %5032 = vmatpush3.bf16.msra.mxu1 %v5031_v51  ;;  %5002 = vmatprep.subr.bf16.mxu0 %v5001_v52  ;;  %v296_v12 = vld [vmem:[%s8266_s1 + $0x68] sm:$0xff]  ;;  %v327_v15 = vld [vmem:[%s8266_s1 + $0x160] sm:$0xff]  ;;  %v5041_v18 = vpack.c.bf16 %v344_v9, %v343_v8  ;;  %v314_v21 = vld [vmem:[%s8266_s1 + $0xf8] sm:$0xff] }
  0x20   : > { %5034 = vmatprep.subr.bf16.mxu1 %v5033_v56  ;;  %v279_v16 = vld [vmem:[%s5648_s23] sm:$0xff]  ;;  %v5667_v17 = vld [vmem:[%s5648_s23 + $0x8] sm:$0xff]  ;;  %v345_v24 = vld [vmem:[%s8266_s1 + $0x1f0] sm:$0xff]  ;;  %v5011_v26 = vpack.c.bf16 %v296_v12, %v295_v11  ;;  %v5013_v28 = vpack.c.bf16 %v314_v21, %v313_v20 }
  0x21   : > { %v328_v19 = vld [vmem:[%s8266_s1 + $0x168] sm:$0xff]  ;;  %v415_v22 = vcombine.high %v279_v16, %v279_v16  ;;  %2385 = vst [vmem:[#allocation2 + $0xa8] sm:$0xf] %v279_v16  ;;  %v416_v23 = vcombine.high %v5667_v17, %v5667_v17  ;;  %2387 = vst [vmem:[#allocation2 + $0xb8] sm:$0xf] %v5667_v17  ;;  %v346_v25 = vld [vmem:[%s8266_s1 + $0x1f8] sm:$0xff] }
  0x22   : > { %5004 = vmatpush3.bf16.msra.mxu0 %v5003_v62  ;;  %v5043_v27 = vpack.c.bf16 %v328_v19, %v327_v15  ;;  %v297_v29 = vld [vmem:[%s8266_s1 + $0x70] sm:$0xff]  ;;  %v298_v30 = vld [vmem:[%s8266_s1 + $0x78] sm:$0xff]  ;;  %v5045_v32 = vpack.c.bf16 %v346_v25, %v345_v24  ;;  %v363_v34 = vld [vmem:[%s8266_s1 + $0x280] sm:$0xff] }
  0x23   : > { %5036 = vmatpush3.bf16.msra.mxu1 %v5035_v63  ;;  %5006 = vmatprep.subr.bf16.mxu0 %v5005_v0  ;;  %2386 = vst [vmem:[#allocation2 + $0xb0] sm:$0xf] %v415_v22  ;;  %2388 = vst [vmem:[#allocation2 + $0xc0] sm:$0xf] %v416_v23  ;;  %v329_v31 = vld [vmem:[%s8266_s1 + $0x170] sm:$0xff]  ;;  %v330_v33 = vld [vmem:[%s8266_s1 + $0x178] sm:$0xff]  ;;  %v5015_v38 = vpack.c.bf16 %v298_v30, %v297_v29 }
  0x24   : > { %5038 = vmatprep.subr.bf16.mxu1 %v5037_v4  ;;  %487 = vmatprep.mubr.f32.mxu0 %v415_v22  ;;  %v364_v35 = vld [vmem:[%s8266_s1 + $0x288] sm:$0xff]  ;;  %v395_v36 = vld [vmem:[%s8266_s1 + $0x380] sm:$0xff]  ;;  %v5047_v39 = vpack.c.bf16 %v330_v33, %v329_v31  ;;  %v365_v46 = vld [vmem:[%s8266_s1 + $0x290] sm:$0xff] }
  0x25   : > { %557 = vmatprep.mubr.f32.mxu1 %v416_v23  ;;  %v396_v37 = vld [vmem:[%s8266_s1 + $0x388] sm:$0xff]  ;;  %v5049_v40 = vpack.c.bf16 %v364_v35, %v363_v34  ;;  %v347_v41 = vld [vmem:[%s8266_s1 + $0x200] sm:$0xff]  ;;  %v366_v47 = vld [vmem:[%s8266_s1 + $0x298] sm:$0xff] }
  0x26   : > { %5008 = vmatpush3.bf16.msra.mxu0 %v5007_v10  ;;  %v348_v42 = vld [vmem:[%s8266_s1 + $0x208] sm:$0xff]  ;;  %v379_v43 = vld [vmem:[%s8266_s1 + $0x300] sm:$0xff]  ;;  %v5081_v44 = vpack.c.bf16 %v396_v37, %v395_v36  ;;  %v397_v48 = vld [vmem:[%s8266_s1 + $0x390] sm:$0xff]  ;;  %v5053_v52 = vpack.c.bf16 %v366_v47, %v365_v46 }
  0x27   : > { %5040 = vmatpush3.bf16.msra.mxu1 %v5039_v13  ;;  %5010 = vmatprep.subr.bf16.mxu0 %v5009_v14  ;;  %v380_v45 = vld [vmem:[%s8266_s1 + $0x308] sm:$0xff]  ;;  %v398_v49 = vld [vmem:[%s8266_s1 + $0x398] sm:$0xff]  ;;  %v5051_v50 = vpack.c.bf16 %v348_v42, %v347_v41  ;;  %v349_v53 = vld [vmem:[%s8266_s1 + $0x210] sm:$0xff] }
  0x28   : > { %5042 = vmatprep.subr.bf16.mxu1 %v5041_v18  ;;  %v5083_v51 = vpack.c.bf16 %v380_v45, %v379_v43  ;;  %v350_v54 = vld [vmem:[%s8266_s1 + $0x218] sm:$0xff]  ;;  %v381_v55 = vld [vmem:[%s8266_s1 + $0x310] sm:$0xff]  ;;  %v5085_v56 = vpack.c.bf16 %v398_v49, %v397_v48  ;;  %v367_v58 = vld [vmem:[%s8266_s1 + $0x2a0] sm:$0xff] }
  0x29   : > { %v382_v57 = vld [vmem:[%s8266_s1 + $0x318] sm:$0xff]  ;;  %v368_v59 = vld [vmem:[%s8266_s1 + $0x2a8] sm:$0xff]  ;;  %v399_v60 = vld [vmem:[%s8266_s1 + $0x3a0] sm:$0xff]  ;;  %v5055_v62 = vpack.c.bf16 %v350_v54, %v349_v53 }
  0x2a   : > { %5012 = vmatpush3.bf16.msra.mxu0 %v5011_v26  ;;  %v400_v61 = vld [vmem:[%s8266_s1 + $0x3a8] sm:$0xff]  ;;  %v5087_v63 = vpack.c.bf16 %v382_v57, %v381_v55  ;;  %v5057_v0 = vpack.c.bf16 %v368_v59, %v367_v58  ;;  %v351_v1 = vld [vmem:[%s8266_s1 + $0x220] sm:$0xff]  ;;  %v369_v6 = vld [vmem:[%s8266_s1 + $0x2b0] sm:$0xff] }
  0x2b   : > { %5044 = vmatpush3.bf16.msra.mxu1 %v5043_v27  ;;  %5014 = vmatprep.subr.bf16.mxu0 %v5013_v28  ;;  %v352_v2 = vld [vmem:[%s8266_s1 + $0x228] sm:$0xff]  ;;  %v383_v3 = vld [vmem:[%s8266_s1 + $0x320] sm:$0xff]  ;;  %v5089_v4 = vpack.c.bf16 %v400_v61, %v399_v60  ;;  %v370_v7 = vld [vmem:[%s8266_s1 + $0x2b8] sm:$0xff] }
  0x2c   : > { %5046 = vmatprep.subr.bf16.mxu1 %v5045_v32  ;;  %v384_v5 = vld [vmem:[%s8266_s1 + $0x328] sm:$0xff]  ;;  %v401_v8 = vld [vmem:[%s8266_s1 + $0x3b0] sm:$0xff]  ;;  %v402_v9 = vld [vmem:[%s8266_s1 + $0x3b8] sm:$0xff]  ;;  %v5059_v10 = vpack.c.bf16 %v352_v2, %v351_v1  ;;  %v5061_v13 = vpack.c.bf16 %v370_v7, %v369_v6 }
  0x2d   : > { %v353_v11 = vld [vmem:[%s8266_s1 + $0x230] sm:$0xff]  ;;  %v5091_v12 = vpack.c.bf16 %v384_v5, %v383_v3  ;;  %v354_v14 = vld [vmem:[%s8266_s1 + $0x238] sm:$0xff]  ;;  %v371_v18 = vld [vmem:[%s8266_s1 + $0x2c0] sm:$0xff] }
  0x2e   : > { %5016 = vmatpush3.bf16.msra.mxu0 %v5015_v38  ;;  %v385_v15 = vld [vmem:[%s8266_s1 + $0x330] sm:$0xff]  ;;  %v372_v19 = vld [vmem:[%s8266_s1 + $0x2c8] sm:$0xff]  ;;  %v403_v20 = vld [vmem:[%s8266_s1 + $0x3c0] sm:$0xff]  ;;  %v5063_v24 = vpack.c.bf16 %v354_v14, %v353_v11  ;;  %v8291_v11 = vmov 0.0  }
  0x2f   : > { %5048 = vmatpush3.bf16.msra.mxu1 %v5047_v39  ;;  %5050 = vmatprep.subr.bf16.mxu0 %v5049_v40  ;;  %v404_v21 = vld [vmem:[%s8266_s1 + $0x3c8] sm:$0xff]  ;;  %v5809_v22 = vld [vmem:[%s5648_s23 + $0x10] sm:$0xff]  ;;  %v5812_v23 = vld [vmem:[%s5648_s23 + $0x18] sm:$0xff]  ;;  %v5065_v28 = vpack.c.bf16 %v372_v19, %v371_v18 }
  0x30   : > { %5082 = vmatprep.subr.bf16.mxu1 %v5081_v44  ;;  %v417_v25 = vcombine.high %v5809_v22, %v5809_v22  ;;  %2389 = vst [vmem:[#allocation2 + $0xc8] sm:$0xf] %v5809_v22  ;;  %v418_v26 = vcombine.high %v5812_v23, %v5812_v23  ;;  %2391 = vst [vmem:[#allocation2 + $0xd8] sm:$0xf] %v5812_v23  ;;  %v355_v29 = vld [vmem:[%s8266_s1 + $0x240] sm:$0xff]  ;;  %v356_v30 = vld [vmem:[%s8266_s1 + $0x248] sm:$0xff]  ;;  %v5097_v32 = vpack.c.bf16 %v404_v21, %v403_v20 }
  0x31   : > { %488 = vmatmul.mubr.f32.vlgmr.msra.gmra.mrb[0].mxu0 %v279_v16  ;;  %v386_v16 = vld [vmem:[%s8266_s1 + $0x338] sm:$0xff]  ;;  %v387_v31 = vld [vmem:[%s8266_s1 + $0x340] sm:$0xff]  ;;  %v388_v33 = vld [vmem:[%s8266_s1 + $0x348] sm:$0xff]  ;;  %v5067_v38 = vpack.c.bf16 %v356_v30, %v355_v29 }
  0x32   : > { %558 = vmatmul.mubr.f32.vlgmr.msra.gmra.mrb[0].mxu1 %v5667_v17  ;;  %5052 = vmatpush3.bf16.msra.mxu0 %v5051_v50  ;;  %v5093_v17 = vpack.c.bf16 %v402_v9, %v401_v8  ;;  %v5095_v27 = vpack.c.bf16 %v386_v16, %v385_v15  ;;  %v373_v34 = vld [vmem:[%s8266_s1 + $0x2d0] sm:$0xff]  ;;  %v374_v35 = vld [vmem:[%s8266_s1 + $0x2d8] sm:$0xff]  ;;  %2390 = vst [vmem:[#allocation2 + $0xd0] sm:$0xf] %v417_v25  ;;  %2392 = vst [vmem:[#allocation2 + $0xe0] sm:$0xf] %v418_v26 }
  0x33   : > { %5084 = vmatpush3.bf16.msra.mxu1 %v5083_v51  ;;  %5054 = vmatprep.subr.bf16.mxu0 %v5053_v52  ;;  %v405_v36 = vld [vmem:[%s8266_s1 + $0x3d0] sm:$0xff]  ;;  %v406_v37 = vld [vmem:[%s8266_s1 + $0x3d8] sm:$0xff]  ;;  %v5099_v39 = vpack.c.bf16 %v388_v33, %v387_v31  ;;  %v5069_v40 = vpack.c.bf16 %v374_v35, %v373_v34  ;;  %v375_v46 = vld [vmem:[%s8266_s1 + $0x2e0] sm:$0xff] }
  0x34   : > { %5086 = vmatprep.subr.bf16.mxu1 %v5085_v56  ;;  %627 = vmatprep.mubr.f32.mxu0 %v417_v25  ;;  %v357_v41 = vld [vmem:[%s8266_s1 + $0x250] sm:$0xff]  ;;  %v358_v42 = vld [vmem:[%s8266_s1 + $0x258] sm:$0xff]  ;;  %v5101_v44 = vpack.c.bf16 %v406_v37, %v405_v36  ;;  %v376_v47 = vld [vmem:[%s8266_s1 + $0x2e8] sm:$0xff] }
  0x35   : > { %697 = vmatprep.mubr.f32.mxu1 %v418_v26  ;;  %v389_v43 = vld [vmem:[%s8266_s1 + $0x350] sm:$0xff]  ;;  %v390_v45 = vld [vmem:[%s8266_s1 + $0x358] sm:$0xff]  ;;  %v407_v48 = vld [vmem:[%s8266_s1 + $0x3e0] sm:$0xff]  ;;  %v5071_v50 = vpack.c.bf16 %v358_v42, %v357_v41  ;;  %v5073_v52 = vpack.c.bf16 %v376_v47, %v375_v46 }
  0x36   : > { %5056 = vmatpush3.bf16.msra.mxu0 %v5055_v62  ;;  %v408_v49 = vld [vmem:[%s8266_s1 + $0x3e8] sm:$0xff]  ;;  %v5103_v51 = vpack.c.bf16 %v390_v45, %v389_v43  ;;  %v359_v53 = vld [vmem:[%s8266_s1 + $0x260] sm:$0xff]  ;;  %v377_v58 = vld [vmem:[%s8266_s1 + $0x2f0] sm:$0xff] }
  0x37   : > { %5088 = vmatpush3.bf16.msra.mxu1 %v5087_v63  ;;  %5058 = vmatprep.subr.bf16.mxu0 %v5057_v0  ;;  %v360_v54 = vld [vmem:[%s8266_s1 + $0x268] sm:$0xff]  ;;  %v391_v55 = vld [vmem:[%s8266_s1 + $0x360] sm:$0xff]  ;;  %v5105_v56 = vpack.c.bf16 %v408_v49, %v407_v48  ;;  %v378_v59 = vld [vmem:[%s8266_s1 + $0x2f8] sm:$0xff] }
  0x38   : > { %5090 = vmatprep.subr.bf16.mxu1 %v5089_v4  ;;  %v392_v57 = vld [vmem:[%s8266_s1 + $0x368] sm:$0xff]  ;;  %v409_v60 = vld [vmem:[%s8266_s1 + $0x3f0] sm:$0xff]  ;;  %v410_v61 = vld [vmem:[%s8266_s1 + $0x3f8] sm:$0xff]  ;;  %v5075_v62 = vpack.c.bf16 %v360_v54, %v359_v53  ;;  %v5077_v0 = vpack.c.bf16 %v378_v59, %v377_v58 }
  0x39   : > { %v5107_v63 = vpack.c.bf16 %v392_v57, %v391_v55  ;;  %v361_v1 = vld [vmem:[%s8266_s1 + $0x270] sm:$0xff]  ;;  %v362_v2 = vld [vmem:[%s8266_s1 + $0x278] sm:$0xff]  ;;  %v5109_v3 = vpack.c.bf16 %v410_v61, %v409_v60  ;;  %v4778_v8 = vld [vmem:[%s8269_s4 + $0x4] sm:$0xf] }
  0x3a   : > { %5060 = vmatpush3.bf16.msra.mxu0 %v5059_v10  ;;  %v393_v4 = vld [vmem:[%s8266_s1 + $0x370] sm:$0xff]  ;;  %v394_v5 = vld [vmem:[%s8266_s1 + $0x378] sm:$0xff]  ;;  %v5079_v6 = vpack.c.bf16 %v362_v2, %v361_v1  ;;  %v704_v9 = vld [vmem:[%s8269_s4] sm:$0xf]  ;;  %v5420_v10 = vmov 0  }
  0x3b   : > { %5092 = vmatpush3.bf16.msra.mxu1 %v5091_v12  ;;  %5062 = vmatprep.subr.bf16.mxu0 %v5061_v13  ;;  %v5111_v7 = vpack.c.bf16 %v394_v5, %v393_v4  ;;  %v792_v19 = vld [vmem:[%s8267_s2 + $0x8] sm:$0xff]  ;;  %v807_v34 = vld [vmem:[%s8267_s2 + $0x80] sm:$0xff]  ;;  %v802_v37 = vld [vmem:[%s8267_s2 + $0x58] sm:$0xff] }
  0x3c   : > { %5094 = vmatprep.subr.bf16.mxu1 %v5093_v17  ;;  %5392 = vset.pattern.permute.xlu1 %v5420_v10  ;;  %v800_v20 = vld [vmem:[%s8267_s2 + $0x48] sm:$0xff]  ;;  %v815_v35 = vld [vmem:[%s8267_s2 + $0xc0] sm:$0xff]  ;;  %v793_v42 = vld [vmem:[%s8267_s2 + $0x10] sm:$0xff] }
  0x3d   : > { %5391 = vset.pattern.permute.xlu0 %v5420_v10  ;;  %1157 = vperm.xlu1 %5392, %v4778_v8   ;;  %v5113_v21 = vpack.c.bf16 %v800_v20, %v792_v19  ;;  %v808_v26 = vld [vmem:[%s8267_s2 + $0x88] sm:$0xff]  ;;  %v801_v43 = vld [vmem:[%s8267_s2 + $0x50] sm:$0xff]  ;;  %v823_v45 = vld [vmem:[%s8267_s2 + $0x100] sm:$0xff] }
  0x3e   : > { %5064 = vmatpush3.bf16.msra.mxu0 %v5063_v24  ;;  %707 = vperm.xlu0 %5391, %v704_v9   ;;  %v816_v29 = vld [vmem:[%s8267_s2 + $0xc8] sm:$0xff]  ;;  %v831_v46 = vld [vmem:[%s8267_s2 + $0x140] sm:$0xff]  ;;  %v810_v49 = vld [vmem:[%s8267_s2 + $0x98] sm:$0xff] }
  0x3f   : > { %5096 = vmatpush3.bf16.msra.mxu1 %v5095_v27  ;;  %5066 = vmatprep.subr.bf16.mxu0 %v5065_v28  ;;  %v5117_v33 = vpack.c.bf16 %v816_v29, %v808_v26  ;;  %v5123_v53 = vpack.c.bf16 %v831_v46, %v823_v45  ;;  %v809_v54 = vld [vmem:[%s8267_s2 + $0x90] sm:$0xff]  ;;  %v826_v58 = vld [vmem:[%s8267_s2 + $0x118] sm:$0xff]  ;;  %v840_v2 = vld [vmem:[%s8267_s2 + $0x188] sm:$0xff] }
  0x40   : > { %5098 = vmatprep.subr.bf16.mxu1 %v5097_v32  ;;  %v794_v32 = vld [vmem:[%s8267_s2 + $0x18] sm:$0xff]  ;;  %v817_v55 = vld [vmem:[%s8267_s2 + $0xd0] sm:$0xff]  ;;  %v847_v8 = vld [vmem:[%s8267_s2 + $0x1c0] sm:$0xff] }
  0x41   : > { %v5129_v48 = vpack.c.bf16 %v802_v37, %v794_v32  ;;  %v834_v59 = vld [vmem:[%s8267_s2 + $0x158] sm:$0xff]  ;;  %v5135_v60 = vpack.c.bf16 %v817_v55, %v809_v54  ;;  %v805_v26 = vld [vmem:[%s8267_s2 + $0x70] sm:$0xff]  ;;  %v819_v37 = vld [vmem:[%s8267_s2 + $0xe0] sm:$0xff] }
  0x42   : > { %5068 = vmatpush3.bf16.msra.mxu0 %v5067_v38  ;;  %v5119_v38 = vpack.c.bf16 %v815_v35, %v807_v34  ;;  %v5137_v61 = vpack.c.bf16 %v834_v59, %v826_v58  ;;  %v842_v4 = vld [vmem:[%s8267_s2 + $0x198] sm:$0xff]  ;;  %v837_v54 = vld [vmem:[%s8267_s2 + $0x170] sm:$0xff]  ;;  %v844_v55 = vld [vmem:[%s8267_s2 + $0x1a8] sm:$0xff] }
  0x43   : > { %5100 = vmatpush3.bf16.msra.mxu1 %v5099_v39  ;;  %5070 = vmatprep.subr.bf16.mxu0 %v5069_v40  ;;  %v824_v39 = vld [vmem:[%s8267_s2 + $0x108] sm:$0xff]  ;;  %v806_v19 = vld [vmem:[%s8267_s2 + $0x78] sm:$0xff] }
  0x44   : > { %5102 = vmatprep.subr.bf16.mxu1 %v5101_v44  ;;  %v832_v40 = vld [vmem:[%s8267_s2 + $0x148] sm:$0xff]  ;;  %v822_v32 = vld [vmem:[%s8267_s2 + $0xf8] sm:$0xff] }
  0x45   : > { %v5121_v44 = vpack.c.bf16 %v832_v40, %v824_v39  ;;  %v813_v40 = vld [vmem:[%s8267_s2 + $0xb0] sm:$0xff]  ;;  %v830_v45 = vld [vmem:[%s8267_s2 + $0x138] sm:$0xff] }
  0x46   : > { %5072 = vmatpush3.bf16.msra.mxu0 %v5071_v50  ;;  %v818_v50 = vld [vmem:[%s8267_s2 + $0xd8] sm:$0xff] }
  0x47   : > { %5104 = vmatpush3.bf16.msra.mxu1 %v5103_v51  ;;  %5074 = vmatprep.subr.bf16.mxu0 %v5073_v52  ;;  %v703_v51 = vld [vmem:[%s8268_s3] sm:$0xf]  ;;  %v5131_v52 = vpack.c.bf16 %v801_v43, %v793_v42  ;;  %v5133_v57 = vpack.c.bf16 %v818_v50, %v810_v49  ;;  %v828_v42 = vld [vmem:[%s8267_s2 + $0x128] sm:$0xff]  ;;  %v838_v46 = vld [vmem:[%s8267_s2 + $0x178] sm:$0xff] }
  0x48   : > { %5106 = vmatprep.subr.bf16.mxu1 %v5105_v56  ;;  %v4786_v56 = vld [vmem:[%s8269_s4 + $0x8] sm:$0xf]  ;;  %v827_v49 = vld [vmem:[%s8267_s2 + $0x120] sm:$0xff]  ;;  %v854_v58 = vld [vmem:[%s8267_s2 + $0x1f8] sm:$0xff] }
  0x49   : > { %v835_v50 = vld [vmem:[%s8267_s2 + $0x160] sm:$0xff] }
  0x4a   : > { %5076 = vmatpush3.bf16.msra.mxu0 %v5075_v62  ;;  %v825_v62 = vld [vmem:[%s8267_s2 + $0x110] sm:$0xff]  ;;  %v5155_v59 = vpack.c.bf16 %v835_v50, %v827_v49 }
  0x4b   : > { %5108 = vmatpush3.bf16.msra.mxu1 %v5107_v63  ;;  %5078 = vmatprep.subr.bf16.mxu0 %v5077_v0  ;;  %v833_v63 = vld [vmem:[%s8267_s2 + $0x150] sm:$0xff]  ;;  %v4794_v0 = vld [vmem:[%s8269_s4 + $0xc] sm:$0xf] }
  0x4c   : > { %5110 = vmatprep.subr.bf16.mxu1 %v5109_v3  ;;  %v5139_v1 = vpack.c.bf16 %v833_v63, %v825_v62  ;;  %v848_v3 = vld [vmem:[%s8267_s2 + $0x1c8] sm:$0xff] }
  0x4d   : > { %v5125_v5 = vpack.c.bf16 %v848_v3, %v840_v2  ;;  %v853_v2 = vld [vmem:[%s8267_s2 + $0x1f0] sm:$0xff] }
  0x4e   : > { %5080 = vmatpush3.bf16.msra.mxu0 %v5079_v6  ;;  %v850_v6 = vld [vmem:[%s8267_s2 + $0x1d8] sm:$0xff] }
  0x4f   : > { %5112 = vmatpush3.bf16.msra.mxu1 %v5111_v7  ;;  %4965 = vmatprep.subr.mxu0 %v8291_v11  ;;  %v839_v7 = vld [vmem:[%s8267_s2 + $0x180] sm:$0xff]  ;;  %v5141_v9 = vpack.c.bf16 %v850_v6, %v842_v4 }
  0x50   : > { %5114 = vmatprep.subr.bf16.mxu1 %v5113_v21  ;;  %v5127_v10 = vpack.c.bf16 %v847_v8, %v839_v7  ;;  %v795_v21 = vld [vmem:[%s8267_s2 + $0x20] sm:$0xff]  ;;  %v1241_v7 = vld [vmem:[%s8267_s2 + $0x208] sm:$0xff] }
  0x51   : > { %628 = vmatmul.mubr.f32.vlgmr.msra.gmra.mrb[2].mxu0 %v5809_v22  ;;  %v791_v22 = vld [vmem:[%s8267_s2] sm:$0xff]  ;;  %v1249_v8 = vld [vmem:[%s8267_s2 + $0x248] sm:$0xff] }
  0x52   : > { %698 = vmatmul.mubr.f32.vlgmr.msra.gmra.mrb[2].mxu1 %v5812_v23  ;;  %4967 = vmatprep.mubr.msk.f32.mxu0 %vm8276_vm0, %v8291_v11  ;;  %v799_v23 = vld [vmem:[%s8267_s2 + $0x40] sm:$0xff] }
  0x53   : > { %923 = vmatprep.mubr.f32.mxu1 %v8291_v11  ;;  %v5115_v25 = vpack.c.bf16 %v799_v23, %v791_v22  ;;  %v803_v22 = vld [vmem:[%s8267_s2 + $0x60] sm:$0xff] }
  0x54   : > { %v4777_v6 = vld [vmem:[%s8268_s3 + $0x4] sm:$0xf] }
  0x55   : > { %5116 = vmatpush1.bf16.msra.mxu1 %v5115_v25  ;;  %v797_v25 = vld [vmem:[%s8267_s2 + $0x30] sm:$0xff] }
  0x56   : > { %5118 = vmatprep.subr.bf16.mxu1 %v5117_v33  ;;  %v5147_v33 = vpack.c.bf16 %v803_v22, %v795_v21  ;;  %v5163_v35 = vpack.c.bf16 %v805_v26, %v797_v25  ;;  %v1253_v21 = vld [vmem:[%s8267_s2 + $0x268] sm:$0xff] }
  0x57   : > { %v2395_v26 = vld [vmem:[#allocation2 + $0xa8] sm:$0xf] }
  0x59   : > { %5120 = vmatpush1.bf16.msra.mxu1 %v5119_v38 }
  0x5a   : > { %5122 = vmatprep.subr.bf16.mxu1 %v5121_v44  ;;  %v836_v44 = vld [vmem:[%s8267_s2 + $0x168] sm:$0xff] }
  0x5d   : > { %5124 = vmatpush1.bf16.msra.mxu1 %v5123_v53  ;;  %v829_v53 = vld [vmem:[%s8267_s2 + $0x130] sm:$0xff] }
  0x5e   : > { %5126 = vmatprep.subr.bf16.mxu1 %v5125_v5 }
  0x61   : > { %5128 = vmatpush1.bf16.msra.mxu1 %v5127_v10  ;;  %v1240_v10 = vld [vmem:[%s8267_s2 + $0x200] sm:$0xff] }
  0xbd   : > { %v708_v23 = vpop.permute.xlu0 %707 }
 0x104   : > { %v4849_v12 = vpop.f32.mrb[0].mxu0 }
 0x105   : > { %v4884_v13 = vpop.f32.mrb[0].mxu1  ;;  %v4850_v14 = vpop.f32.mrb[1].mxu0 }
 0x106   : > { %v4851_v15 = vadd.f32 %v4850_v14, %v4849_v12  ;;  %v4885_v16 = vpop.f32.mrb[1].mxu1  ;;  %v841_v12 = vld [vmem:[%s8267_s2 + $0x190] sm:$0xff] }
 0x107   : > { %v4886_v17 = vadd.f32 %v4885_v16, %v4884_v13  ;;  %v849_v13 = vld [vmem:[%s8267_s2 + $0x1d0] sm:$0xff]  ;;  %v804_v16 = vld [vmem:[%s8267_s2 + $0x68] sm:$0xff] }
 0x108   : > { %v5143_v14 = vpack.c.bf16 %v849_v13, %v841_v12  ;;  %v1248_v12 = vld [vmem:[%s8267_s2 + $0x240] sm:$0xff]  ;;  %v1243_v13 = vld [vmem:[%s8267_s2 + $0x218] sm:$0xff] }
 0x109   : > { %v560_v18 = vadd.f32 %v4886_v17, %v4851_v15  ;;  %v796_v15 = vld [vmem:[%s8267_s2 + $0x28] sm:$0xff]  ;;  %v798_v17 = vld [vmem:[%s8267_s2 + $0x38] sm:$0xff] }
 0x10a   : > { %v5161_v20 = vpack.c.bf16 %v806_v19, %v798_v17  ;;  %v1250_v17 = vld [vmem:[%s8267_s2 + $0x250] sm:$0xff] }
 0x124   : > { %v4919_v24 = vpop.f32.mrb[2].mxu0 }
 0x125   : > { %v4920_v27 = vpop.f32.mrb[3].mxu0  ;;  %v4954_v28 = vpop.f32.mrb[2].mxu1 }
 0x126   : > { %v4921_v30 = vadd.f32 %v4920_v27, %v4919_v24  ;;  %v4955_v31 = vpop.f32.mrb[3].mxu1  ;;  %v812_v27 = vld [vmem:[%s8267_s2 + $0xa8] sm:$0xff] }
 0x127   : > { %v4956_v36 = vadd.f32 %v4955_v31, %v4954_v28  ;;  %v814_v31 = vld [vmem:[%s8267_s2 + $0xb8] sm:$0xff] }
 0x128   : > { %v630_v41 = vadd.f32 %v4921_v30, %v560_v18  ;;  %v5145_v18 = vpack.c.bf16 %v804_v16, %v796_v15  ;;  %v820_v30 = vld [vmem:[%s8267_s2 + $0xe8] sm:$0xff]  ;;  %v5165_v39 = vpack.c.bf16 %v822_v32, %v814_v31  ;;  %v1251_v15 = vld [vmem:[%s8267_s2 + $0x258] sm:$0xff]  ;;  %v1242_v16 = vld [vmem:[%s8267_s2 + $0x210] sm:$0xff] }
 0x129   : > { %v5149_v38 = vpack.c.bf16 %v820_v30, %v812_v27  ;;  %v5183_v19 = vpack.c.bf16 %v1250_v17, %v1242_v16  ;;  %v2415_v27 = vld [vmem:[#allocation2 + $0xe0] sm:$0xf]  ;;  %v6177_v30 = vld [vmem:[#allocation2 + $0xc8] sm:$0xf]  ;;  %v6179_v31 = vld [vmem:[#allocation2 + $0xb8] sm:$0xf] }
 0x12a   : > { %v700_v47 = vadd.f32 %v4956_v36, %v630_v41  ;;  %5146 = vmatprep.subr.bf16.mxu1 %v5145_v18  ;;  %v811_v36 = vld [vmem:[%s8267_s2 + $0xa0] sm:$0xff]  ;;  %v821_v41 = vld [vmem:[%s8267_s2 + $0xf0] sm:$0xff]  ;;  %v5181_v18 = vpack.c.bf16 %v1251_v15, %v1243_v13  ;;  %3525 = vst [vmem:[#allocation3 + $0x310] sm:$0xf] %v6179_v31  ;;  %v6184_v32 = vld [vmem:[#allocation2 + $0xd8] sm:$0xf] }
 0x12b   : > { %v6277_v13 = vld [vmem:[#allocation2 + $0xd8] sm:$0xf]  ;;  %v1666_v16 = vld [vmem:[%s8267_s2 + $0x288] sm:$0xff] }
 0x12c   : > { %1585 = vrot.lane.b32.xlu1 %v700_v47, %s5423_s17  ;;  %1160 = vrot.lane.b32.xlu0 %v700_v47, %s5424_s18  ;;  %3529 = vst [vmem:[#allocation3 + $0x330] sm:$0xf] %v6277_v13  ;;  %v1668_v17 = vld [vmem:[%s8267_s2 + $0x298] sm:$0xff] }
 0x12d   : > { %4966 = vmatpush3.msk.msra.mxu0 %vm8277_vm1, %v700_v47 }
 0x12e   : > { %4968 = vmatmul.mubr.msk.f32.vlgmr.msra.gmra.mrb[4].mxu0 %vm8275_vm2, %v703_v51  ;;  %5130 = vmatprep.subr.bf16.mxu0 %v5129_v48  ;;  %v5167_v48 = vpack.c.bf16 %v821_v41, %v813_v40  ;;  %v5153_v51 = vpack.c.bf16 %v836_v44, %v828_v42  ;;  %v1158_v41 = vpop.permute.xlu1 %1157 }
 0x12f   : > { %5132 = vmatpush1.bf16.msra.mxu0 %v5131_v52  ;;  %994 = vmatprep.mubr.f32.mxu0 %v8291_v11  ;;  %v5169_v52 = vpack.c.bf16 %v838_v46, %v830_v45 }
 0x130   : > { %1978 = vrot.lane.b32.xlu1 %v700_v47, %s5425_s30  ;;  %1582 = vperm.xlu0 %5391, %v4786_v56   ;;  %v5151_v47 = vpack.c.bf16 %v819_v37, %v811_v36  ;;  %v852_v56 = vld [vmem:[%s8267_s2 + $0x1e8] sm:$0xff] }
 0x131   : > { %5134 = vmatprep.subr.bf16.mxu0 %v5133_v57  ;;  %v846_v57 = vld [vmem:[%s8267_s2 + $0x1b8] sm:$0xff]  ;;  %v5157_v62 = vpack.c.bf16 %v852_v56, %v844_v55  ;;  %v6199_v36 = vld [vmem:[#allocation2 + $0xa8] sm:$0xf]  ;;  %v1254_v55 = vld [vmem:[%s8267_s2 + $0x270] sm:$0xff] }
 0x132   : > { %v5173_v63 = vpack.c.bf16 %v854_v58, %v846_v57  ;;  %3523 = vst [vmem:[#allocation3 + $0x300] sm:$0xf] %v6199_v36 }
 0x133   : > { %5136 = vmatpush1.bf16.msra.mxu0 %v5135_v60  ;;  %v5171_v60 = vpack.c.bf16 %v837_v54, %v829_v53  ;;  %v1246_v54 = vld [vmem:[%s8267_s2 + $0x230] sm:$0xff] }
 0x134   : > { %1975 = vperm.xlu0 %5391, %v4794_v0   ;;  %5138 = vmatprep.subr.bf16.mxu0 %v5137_v61  ;;  %v843_v61 = vld [vmem:[%s8267_s2 + $0x1a0] sm:$0xff] }
 0x135   : > { %v851_v0 = vld [vmem:[%s8267_s2 + $0x1e0] sm:$0xff]  ;;  %2403 = vrot.lane.b32.xlu1 %v2395_v26, %s5424_s18 }
 0x136   : > { %v5159_v3 = vpack.c.bf16 %v851_v0, %v843_v61  ;;  %v5191_v61 = vpack.c.bf16 %v1254_v55, %v1246_v54  ;;  %v2574_v0 = vld [vmem:[#allocation2 + $0xb0] sm:$0xf] }
 0x137   : > { %5140 = vmatpush1.bf16.msra.mxu0 %v5139_v1  ;;  %v845_v1 = vld [vmem:[%s8267_s2 + $0x1b0] sm:$0xff] }
 0x138   : > { %5142 = vmatprep.subr.bf16.mxu0 %v5141_v9  ;;  %v5175_v4 = vpack.c.bf16 %v853_v2, %v845_v1  ;;  %v5177_v9 = vpack.c.bf16 %v1249_v8, %v1241_v7  ;;  %2423 = vrot.lane.b32.xlu0 %v2415_v27, %s5424_s18  ;;  %v4785_v1 = vld [vmem:[%s8268_s3 + $0x8] sm:$0xf]  ;;  %v2576_v2 = vld [vmem:[#allocation2 + $0xc0] sm:$0xf]  ;;  %v3663_v8 = vld [vmem:[#allocation2 + $0xb8] sm:$0xf] }
 0x13b   : > { %5144 = vmatpush1.bf16.msra.mxu0 %v5143_v14  ;;  %v5179_v14 = vpack.c.bf16 %v1248_v12, %v1240_v10  ;;  %v3661_v10 = vld [vmem:[#allocation2 + $0xa8] sm:$0xf]  ;;  %v6275_v12 = vld [vmem:[#allocation2 + $0xd0] sm:$0xf] }
 0x13c   : > { %5162 = vmatprep.subr.bf16.mxu0 %v5161_v20  ;;  %v1245_v20 = vld [vmem:[%s8267_s2 + $0x228] sm:$0xff]  ;;  %3528 = vst [vmem:[#allocation3 + $0x328] sm:$0xf] %v6275_v12 }
 0x13d   : > { %v5185_v22 = vpack.c.bf16 %v1253_v21, %v1245_v20  ;;  %v1670_v20 = vld [vmem:[%s8267_s2 + $0x2a8] sm:$0xff]  ;;  %v1672_v21 = vld [vmem:[%s8267_s2 + $0x2b8] sm:$0xff] }
 0x19e   : > { %v1161_v5 = vpop.permute.xlu0 %1160  ;;  %v1586_v42 = vpop.permute.xlu1 %1585 }
 0x1a2   : > { %v6204_v44 = vpop.permute.xlu1 %1978 }
 0x1a7   : > { %v2404_v50 = vpop.permute.xlu1 %2403 }
 0x1a8   : > { %2412 = vst.msk [vmem:[#allocation2 + $0xa0] sm:$0xf] %vm2411_vm5, %v2404_v50 }
 0x1af   : > { %v3099_v7 = vld [vmem:[#allocation2 + $0xa0] sm:$0xf] }
 0x201   : > { %v784_v24 = vpop.f32.mrb[4].mxu0 }
 0x202   : > { %v785_v28 = vadd.f32 %v784_v24, %v708_v23  ;;  %v4969_v29 = vpop.f32.mrb[5].mxu0  ;;  %v1247_v23 = vld [vmem:[%s8267_s2 + $0x238] sm:$0xff] }
 0x203   : > { %v1255_v24 = vld [vmem:[%s8267_s2 + $0x278] sm:$0xff] }
 0x204   : > { %vm788_vm3 = vcmp.ge.f32.partialorder %v785_v28, 0.0  ;;  %v789_v34 = vmul.f32 0.2, %v785_v28  ;;  %v5189_v25 = vpack.c.bf16 %v1255_v24, %v1247_v23  ;;  %v2575_v29 = vld [vmem:[#allocation2 + $0xb8] sm:$0xf] }
 0x206   : > { %v790_v43 = vsel %vm788_vm3, %v785_v28, %v789_v34  ;;  %v2573_v28 = vld [vmem:[#allocation2 + $0xa8] sm:$0xf]  ;;  %v6191_v34 = vld [vmem:[#allocation2 + $0xb0] sm:$0xf] }
 0x207   : > { %4773 = vmatmul.mubr.msk.f32.vlgmr.msra.gmra.mrb[4].mxu1 %vm855_vm4, %v790_v43  ;;  %4774 = vmatmul.mubr.msk.f32.vlgmr.msra.gmra.mrb[6].mxu0 %vm855_vm4, %v790_v43  ;;  %3524 = vst [vmem:[#allocation3 + $0x308] sm:$0xf] %v6191_v34 }
 0x208   : > { %5148 = vmatpush1.bf16.msra.mxu1 %v5147_v33  ;;  %5164 = vmatpush1.bf16.msra.mxu0 %v5163_v35  ;;  %v6186_v33 = vld [vmem:[#allocation2 + $0xc8] sm:$0xf]  ;;  %v6195_v35 = vld [vmem:[#allocation2 + $0xc0] sm:$0xf] }
 0x209   : > { %5150 = vmatprep.subr.bf16.mxu1 %v5149_v38  ;;  %5166 = vmatprep.subr.bf16.mxu0 %v5165_v39  ;;  %3527 = vst [vmem:[#allocation3 + $0x320] sm:$0xf] %v6186_v33  ;;  %3526 = vst [vmem:[#allocation3 + $0x318] sm:$0xf] %v6195_v35 }
 0x20a   : > { %1065 = vmatprep.mubr.f32.mxu1 %v8291_v11  ;;  %1136 = vmatprep.mubr.f32.mxu0 %v8291_v11 }
 0x20b   : > { %2646 = vrot.lane.b32.xlu0 %v2573_v28, %s5426_s21 }
 0x20c   : > { %5152 = vmatpush1.bf16.msra.mxu1 %v5151_v47  ;;  %5168 = vmatpush1.bf16.msra.mxu0 %v5167_v48 }
 0x20d   : > { %5154 = vmatprep.subr.bf16.mxu1 %v5153_v51  ;;  %5170 = vmatprep.subr.bf16.mxu0 %v5169_v52  ;;  %v1244_v51 = vld [vmem:[%s8267_s2 + $0x220] sm:$0xff] }
 0x20e   : > { %v1252_v52 = vld [vmem:[%s8267_s2 + $0x260] sm:$0xff] }
 0x20f   : > { %2650 = vrot.lane.b32.xlu0 %v2575_v29, %s5426_s21 }
 0x210   : > { %5156 = vmatpush1.bf16.msra.mxu1 %v5155_v59  ;;  %5172 = vmatpush1.bf16.msra.mxu0 %v5171_v60  ;;  %v5187_v59 = vpack.c.bf16 %v1252_v52, %v1244_v51 }
 0x211   : > { %5158 = vmatprep.subr.bf16.mxu1 %v5157_v62  ;;  %5174 = vmatprep.subr.bf16.mxu0 %v5173_v63  ;;  %v2572_v63 = vld [vmem:[#allocation2 + $0xa0] sm:$0xf] }
 0x212   : > { %2644 = vrot.lane.b32.xlu1 %v2572_v63, %s5426_s21 }
 0x213   : > { %2654 = vrot.lane.b32.xlu0 %v6177_v30, %s5426_s21 }
 0x214   : > { %5160 = vmatpush1.bf16.msra.mxu1 %v5159_v3  ;;  %5176 = vmatpush1.bf16.msra.mxu0 %v5175_v4  ;;  %v2578_v3 = vld [vmem:[#allocation2 + $0xd0] sm:$0xf]  ;;  %v2580_v4 = vld [vmem:[#allocation2 + $0xe0] sm:$0xf] }
 0x215   : > { %4970 = vmatprep.subr.mxu1 %v8291_v11  ;;  %5178 = vmatprep.subr.bf16.mxu0 %v5177_v9  ;;  %v3665_v9 = vld [vmem:[#allocation2 + $0xc8] sm:$0xf] }
 0x216   : > { %2648 = vrot.lane.b32.xlu1 %v2574_v0, %s5426_s21 }
 0x217   : > { %4775 = vmatmul.mubr.msk.f32.vlgmr.msra.gmra.mrb[6].mxu1 %vm855_vm4, %v790_v43  ;;  %4776 = vmatmul.mubr.msk.f32.vlgmr.msra.gmra.mrb[8].mxu0 %vm855_vm4, %v790_v43  ;;  %v6202_v43 = vpop.permute.xlu0 %1582 }
 0x218   : > { %4971 = vmatpush3.msk.msra.mxu1 %vm8277_vm1, %v1161_v5  ;;  %4972 = vmatprep.mubr.msk.f32.mxu1 %vm8276_vm0, %v8291_v11  ;;  %v3662_v5 = vld [vmem:[#allocation2 + $0xb0] sm:$0xf] }
 0x219   : > { %1324 = vmatprep.mubr.f32.mxu0 %v8291_v11  ;;  %5180 = vmatpush1.bf16.msra.mxu0 %v5179_v14  ;;  %v6285_v14 = vld [vmem:[#allocation2 + $0xe0] sm:$0xf] }
 0x21a   : > { %5182 = vmatprep.subr.bf16.mxu1 %v5181_v18  ;;  %5186 = vmatprep.subr.bf16.mxu0 %v5185_v22  ;;  %8378 = vst [vmem:[#allocation4_spill] sm:$0xff] %v6285_v14  ;;  %3530 = vst [vmem:[#allocation3 + $0x338] sm:$0xf] %v6285_v14  ;;  %v1665_v18 = vld [vmem:[%s8267_s2 + $0x280] sm:$0xff] }
 0x21b   : > { %4973 = vmatmul.mubr.msk.f32.vlgmr.msra.gmra.mrb[8].mxu1 %vm8275_vm2, %v4777_v6  ;;  %2658 = vrot.lane.b32.xlu0 %v6184_v32, %s5426_s21  ;;  %v6206_v45 = vpop.permute.xlu0 %1975  ;;  %v3664_v6 = vld [vmem:[#allocation2 + $0xc0] sm:$0xf] }
 0x21c   : > { %1395 = vmatprep.mubr.f32.mxu1 %v8291_v11  ;;  %5184 = vmatpush1.bf16.msra.mxu1 %v5183_v19  ;;  %v1667_v19 = vld [vmem:[%s8267_s2 + $0x290] sm:$0xff] }
 0x21d   : > { %5190 = vmatprep.subr.bf16.mxu1 %v5189_v25  ;;  %2652 = vrot.lane.b32.xlu1 %v2576_v2, %s5426_s21 }
 0x21f   : > { %2749 = vrot.lane.b32.xlu0 %v2573_v28, %s5427_s22  ;;  %v2424_v58 = vpop.permute.xlu0 %2423 }
 0x220   : > { %2432 = vst.msk [vmem:[#allocation2 + $0xe8] sm:$0xf] %vm2431_vm6, %v2424_v58  ;;  %vm8274_vm6 = vcmask 777216  }
 0x221   : > { %2656 = vrot.lane.b32.xlu1 %v2578_v3, %s5426_s21 }
 0x223   : > { %2753 = vrot.lane.b32.xlu0 %v2575_v29, %s5427_s22 }
 0x225   : > { %2660 = vrot.lane.b32.xlu1 %v2580_v4, %s5426_s21 }
 0x227   : > { %2747 = vrot.lane.b32.xlu0 %v2572_v63, %s5427_s22  ;;  %v3110_v15 = vld [vmem:[#allocation2 + $0xe8] sm:$0xf]  ;;  %v8388_v63 = vmov 0 }
 0x229   : > { %2751 = vrot.lane.b32.xlu1 %v2574_v0, %s5427_s22  ;;  %v8390_v0 = vmov 0 }
 0x22b   : > { %3176 = vrot.lane.b32.xlu0 %v6191_v34, %s5428_s13 }
 0x22d   : > { %2755 = vrot.lane.b32.xlu1 %v2576_v2, %s5427_s22 }
 0x22f   : > { %3180 = vrot.lane.b32.xlu0 %v6195_v35, %s5428_s13 }
 0x231   : > { %3178 = vrot.lane.b32.xlu1 %v6179_v31, %s5428_s13 }
 0x233   : > { %3282 = vrot.lane.b32.xlu0 %v6199_v36, %s5429_s14 }
 0x235   : > { %3182 = vrot.lane.b32.xlu1 %v6186_v33, %s5428_s13 }
 0x237   : > { %3286 = vrot.lane.b32.xlu0 %v6179_v31, %s5429_s14 }
 0x239   : > { %3284 = vrot.lane.b32.xlu1 %v6191_v34, %s5429_s14 }
 0x23b   : > { %3735 = vrot.lane.b32.xlu0 %v3662_v5, %s5430_s15 }
 0x23d   : > { %3288 = vrot.lane.b32.xlu1 %v6195_v35, %s5429_s14  ;;  %v2433_v35 = vlaneseq }
 0x23f   : > { %3739 = vrot.lane.b32.xlu0 %v3664_v6, %s5430_s15 }
 0x241   : > { %3174 = vrot.lane.b32.xlu1 %v6199_v36, %s5428_s13 }
 0x243   : > { %3838 = vrot.lane.b32.xlu0 %v3662_v5, %s5431_s16 }
 0x245   : > { %3280 = vrot.lane.b32.xlu1 %v3099_v7, %s5429_s14 }
 0x247   : > { %3842 = vrot.lane.b32.xlu0 %v3664_v6, %s5431_s16 }
 0x249   : > { %3737 = vrot.lane.b32.xlu1 %v3663_v8, %s5430_s15 }
 0x24b   : > { %2759 = vrot.lane.b32.xlu0 %v2578_v3, %s5427_s22 }
 0x24d   : > { %3741 = vrot.lane.b32.xlu1 %v3665_v9, %s5430_s15 }
 0x24f   : > { %2763 = vrot.lane.b32.xlu0 %v2580_v4, %s5427_s22 }
 0x251   : > { %3840 = vrot.lane.b32.xlu1 %v3663_v8, %s5431_s16 }
 0x253   : > { %3186 = vrot.lane.b32.xlu0 %v6277_v13, %s5428_s13 }
 0x255   : > { %3844 = vrot.lane.b32.xlu1 %v3665_v9, %s5431_s16 }
 0x257   : > { %3190 = vrot.lane.b32.xlu0 %v3110_v15, %s5428_s13  ;;  %v8397_v15 = vmov 0 }
 0x259   : > { %3733 = vrot.lane.b32.xlu1 %v3661_v10, %s5430_s15 }
 0x25d   : > { %3836 = vrot.lane.b32.xlu1 %v3661_v10, %s5431_s16  ;;  %v8394_v10 = vmov 0 }
 0x261   : > { %2757 = vrot.lane.b32.xlu1 %v6177_v30, %s5427_s22 }
 0x265   : > { %2761 = vrot.lane.b32.xlu1 %v6184_v32, %s5427_s22 }
 0x269   : > { %3184 = vrot.lane.b32.xlu1 %v6275_v12, %s5428_s13 }
 0x26d   : > { %3188 = vrot.lane.b32.xlu1 %v6285_v14, %s5428_s13 }
 0x27d   : > { %v2647_v26 = vpop.permute.xlu0 %2646 }
 0x281   : > { %v2651_v28 = vpop.permute.xlu0 %2650 }
 0x284   : > { %v2645_v22 = vpop.permute.xlu1 %2644 }
 0x285   : > { %v6315_v30 = vpop.permute.xlu0 %2654  ;;  %v2679_v6 = vsel %vm8280_vm9, %v2645_v22, %v2647_v26 }
 0x288   : > { %v2649_v23 = vpop.permute.xlu1 %2648 }
 0x289   : > { %v2681_v52 = vsel %vm8280_vm9, %v2649_v23, %v2651_v28 }
 0x28d   : > { %v6319_v32 = vpop.permute.xlu0 %2658 }
 0x28f   : > { %v6309_v24 = vpop.permute.xlu1 %2652 }
 0x291   : > { %v2750_v36 = vpop.permute.xlu0 %2749 }
 0x293   : > { %v6311_v25 = vpop.permute.xlu1 %2656 }
 0x297   : > { %v6313_v27 = vpop.permute.xlu1 %2660 }
 0x29b   : > { %v2752_v29 = vpop.permute.xlu1 %2751 }
 0x29f   : > { %v6317_v31 = vpop.permute.xlu1 %2755 }
 0x2a3   : > { %v6321_v34 = vpop.permute.xlu1 %3178 }
 0x2da   : > { %v925_v37 = vpop.f32.mrb[4].mxu1  ;;  %v996_v38 = vpop.f32.mrb[6].mxu0 }
 0x2db   : > { %1143 = vst [vmem:[#allocation2 + $0x8] sm:$0xf] %v925_v37  ;;  %1145 = vst [vmem:[#allocation2 + $0x18] sm:$0xf] %v996_v38  ;;  %v927_v39 = vpop.f32.mrb[5].mxu1  ;;  %v998_v40 = vpop.f32.mrb[7].mxu0 }
 0x2dc   : > { %1144 = vst [vmem:[#allocation2 + $0x10] sm:$0xf] %v927_v39  ;;  %1146 = vst [vmem:[#allocation2 + $0x20] sm:$0xf] %v998_v40  ;;  %v6323_v37 = vpop.permute.xlu1 %3182  ;;  %v6325_v38 = vand.u32 127, %v2433_v35 }
 0x2dd   : > { %8379 = vst [vmem:[#allocation5_spill] sm:$0xff] %v6323_v37 }
 0x2de   : > { %v2435_v39 = vadd.s32 128, %v6325_v38  ;;  %v2436_v40 = vadd.s32 256, %v6325_v38  ;;  %v2446_v7 = vand.u32 31, %v6325_v38 }
 0x2e0   : > { %v2460_v50 = vand.u32 31, %v2436_v40  ;;  %vm6383_vm4 = vcmp.eq.s32.totalorder %v2446_v7, 0  ;;  %vm6387_vm5 = vcmp.eq.s32.totalorder %v2446_v7, 31  ;;  %v2439_v7 = vadd.s32 640, %v6325_v38 }
 0x2e1   : > { %v8395_v10 = vsel %vm6383_vm4, 4294967295, %v8394_v10  ;;  %v8398_v15 = vsel %vm6387_vm5, 4294967295, %v8397_v15 }
 0x2e2   : > { %vm6348_vm13 = vcmp.eq.s32.totalorder %v2460_v50, 0  ;;  %vm6360_vm15 = vcmp.eq.s32.totalorder %v2460_v50, 31  ;;  %8396 = vst [vmem:[#allocation8_spill] sm:$0xff] %v8395_v10  ;;  %8399 = vst [vmem:[#allocation9_spill] sm:$0xff] %v8398_v15  ;;  %v7413_v15 = vld [vmem:[#allocation2 + $0xe0] sm:$0xf] }
 0x2e3   : > { %v8389_v63 = vsel %vm6360_vm15, 4294967295, %v8388_v63 }
 0x2ea   : > { %v1067_v46 = vpop.f32.mrb[6].mxu1  ;;  %v1138_v47 = vpop.f32.mrb[8].mxu0 }
 0x2eb   : > { %1147 = vst [vmem:[#allocation2 + $0x28] sm:$0xf] %v1067_v46  ;;  %1149 = vst [vmem:[#allocation2 + $0x38] sm:$0xf] %v1138_v47  ;;  %v1069_v48 = vpop.f32.mrb[7].mxu1  ;;  %v1140_v49 = vpop.f32.mrb[9].mxu0  ;;  %v2680_v46 = vsel %vm8280_vm9, %v2647_v26, %v2649_v23 }
 0x2ec   : > { %1148 = vst [vmem:[#allocation2 + $0x30] sm:$0xf] %v1069_v48  ;;  %1150 = vst [vmem:[#allocation2 + $0x40] sm:$0xf] %v1140_v49  ;;  %v2453_v47 = vand.u32 31, %v2435_v39  ;;  %v2783_v48 = vsel %vm8281_vm10, %v2750_v36, %v2752_v29  ;;  %v6332_v49 = vpop.permute.xlu1 %3284 }
 0x2ee   : > { %v1233_v53 = vpop.f32.mrb[8].mxu1  ;;  %vm6340_vm11 = vcmp.eq.s32.totalorder %v2453_v47, 0  ;;  %vm6344_vm12 = vcmp.eq.s32.totalorder %v2453_v47, 31 }
 0x2ef   : > { %v1234_v56 = vadd.f32 %v1233_v53, %v1158_v41  ;;  %v4974_v57 = vpop.f32.mrb[9].mxu1  ;;  %v2437_v41 = vadd.s32 384, %v6325_v38  ;;  %v2682_v53 = vsel %vm8280_vm9, %v2651_v28, %v6309_v24 }
 0x2f0   : > { %v6376_v5 = vpop.permute.xlu1 %3288 }
 0x2f1   : > { %vm1237_vm7 = vcmp.ge.f32.partialorder %v1234_v56, 0.0  ;;  %v1238_v60 = vmul.f32 0.2, %v1234_v56  ;;  %v2467_v51 = vand.u32 31, %v2437_v41  ;;  %8392 = vst [vmem:[#allocation6_spill] sm:$0xff] %v6376_v5 }
 0x2f3   : > { %v1239_v62 = vsel %vm1237_vm7, %v1234_v56, %v1238_v60  ;;  %vm6352_vm14 = vcmp.eq.s32.totalorder %v2467_v51, 0  ;;  %vm6364_vm3 = vcmp.eq.s32.totalorder %v2467_v51, 31  ;;  %vm8273_vm7 = vcmask 793600  }
 0x2f4   : > { %4781 = vmatmul.mubr.msk.f32.vlgmr.msra.gmra.mrb[10].mxu0 %vm1256_vm8, %v1239_v62  ;;  %4782 = vmatmul.mubr.msk.f32.vlgmr.msra.gmra.mrb[10].mxu1 %vm1256_vm8, %v1239_v62  ;;  %v8391_v0 = vsel %vm6364_vm3, 4294967295, %v8390_v0 }
 0x2f5   : > { %5188 = vmatpush1.bf16.msra.mxu0 %v5187_v59  ;;  %5192 = vmatpush1.bf16.msra.mxu1 %v5191_v61  ;;  %v8386_v59 = vmov 0  ;;  %v2831_v61 = vsel %vm6340_vm11, %v2680_v46, %v2783_v48 }
 0x2f6   : > { %1466 = vmatprep.mubr.f32.mxu0 %v8291_v11  ;;  %1537 = vmatprep.mubr.f32.mxu1 %v8291_v11  ;;  %v8387_v59 = vsel %vm6352_vm14, 4294967295, %v8386_v59  ;;  %2879 = vst [vmem:[#allocation3 + $0x88] sm:$0xf] %v2831_v61 }
 0x2f7   : > { %4975 = vmatprep.subr.mxu0 %v8291_v11  ;;  %1677 = vmatprep.subr.mxu1 %v1666_v16 }
 0x2f8   : > { %4783 = vmatmul.mubr.msk.f32.vlgmr.msra.gmra.mrb[12].mxu0 %vm1256_vm8, %v1239_v62  ;;  %4784 = vmatmul.mubr.msk.f32.vlgmr.msra.gmra.mrb[12].mxu1 %vm1256_vm8, %v1239_v62  ;;  %v2855_v62 = vsel %vm6344_vm12, %v2783_v48, %v2680_v46 }
 0x2f9   : > { %4976 = vmatpush3.msk.msra.mxu0 %vm8277_vm1, %v1586_v42  ;;  %4977 = vmatprep.mubr.msk.f32.mxu0 %vm8276_vm0, %v8291_v11  ;;  %v2754_v42 = vpop.permute.xlu0 %2753  ;;  %3074 = vst [vmem:[#allocation3 + $0x1c8] sm:$0xf] %v2855_v62 }
 0x2fa   : > { %1741 = vmatprep.mubr.f32.mxu1 %v8291_v11  ;;  %1748 = vmatprep.subr.mxu0 %v1668_v17  ;;  %v2784_v54 = vsel %vm8281_vm10, %v2752_v29, %v2754_v42  ;;  %v2785_v55 = vsel %vm8281_vm10, %v2754_v42, %v6317_v31 }
 0x2fb   : > { %1678 = vmatpush1.msra.mxu1 %v1665_v18  ;;  %v2833_v2 = vsel %vm6352_vm14, %v2682_v53, %v2785_v55  ;;  %v2856_v3 = vsel %vm6360_vm15, %v2784_v54, %v2681_v52  ;;  %v2857_v4 = vsel %vm6364_vm3, %v2785_v55, %v2682_v53  ;;  %v6395_v18 = vpop.permute.xlu1 %3174 }
 0x2fc   : > { %4978 = vmatmul.mubr.msk.f32.vlgmr.msra.gmra.mrb[14].mxu0 %vm8275_vm2, %v4785_v1  ;;  %1819 = vmatprep.subr.mxu1 %v1670_v20  ;;  %v2832_v1 = vsel %vm6348_vm13, %v2681_v52, %v2784_v54  ;;  %2881 = vst [vmem:[#allocation3 + $0x98] sm:$0xf] %v2833_v2  ;;  %3075 = vst [vmem:[#allocation3 + $0x1d0] sm:$0xf] %v2856_v3 }
 0x2fd   : > { %1812 = vmatprep.mubr.f32.mxu0 %v8291_v11  ;;  %1749 = vmatpush1.msra.mxu0 %v1667_v19  ;;  %v2748_v60 = vpop.permute.xlu0 %2747  ;;  %2880 = vst [vmem:[#allocation3 + $0x90] sm:$0xf] %v2832_v1  ;;  %3076 = vst [vmem:[#allocation3 + $0x1d8] sm:$0xf] %v2857_v4 }
 0x2fe   : > { %1890 = vmatprep.subr.mxu0 %v1672_v21  ;;  %v2782_v8 = vsel %vm8281_vm10, %v2748_v60, %v2750_v36  ;;  %8400 = vst [vmem:[#allocation10_spill] sm:$0xff] %v6395_v18 }
 0x2ff   : > { %v2830_v16 = vsel %vm6383_vm4, %v2679_v6, %v2782_v8  ;;  %v2854_v17 = vsel %vm6387_vm5, %v2782_v8, %v2679_v6  ;;  %v6399_v20 = vpop.permute.xlu1 %3280  ;;  %v2438_v6 = vadd.s32 512, %v6325_v38 }
 0x300   : > { %2878 = vst [vmem:[#allocation3 + $0x80] sm:$0xf] %v2830_v16  ;;  %3073 = vst [vmem:[#allocation3 + $0x1c0] sm:$0xf] %v2854_v17  ;;  %v2683_v16 = vsel %vm8280_vm9, %v6309_v24, %v6315_v30  ;;  %v2684_v17 = vsel %vm8280_vm9, %v6315_v30, %v6311_v25  ;;  %v8413_v30 = vmov 0 }
 0x301   : > { %v6381_v9 = vpop.permute.xlu0 %3176  ;;  %8402 = vst [vmem:[#allocation12_spill] sm:$0xff] %v6399_v20 }
 0x302   : > { %8393 = vst [vmem:[#allocation7_spill] sm:$0xff] %v6381_v9 }
 0x303   : > { %v3738_v22 = vpop.permute.xlu1 %3737 }
 0x305   : > { %v6397_v19 = vpop.permute.xlu0 %3180 }
 0x306   : > { %8401 = vst [vmem:[#allocation11_spill] sm:$0xff] %v6397_v19 }
 0x307   : > { %v6405_v26 = vpop.permute.xlu1 %3741 }
 0x308   : > { %8405 = vst [vmem:[#allocation15_spill] sm:$0xff] %v6405_v26 }
 0x309   : > { %v6401_v21 = vpop.permute.xlu0 %3282 }
 0x30a   : > { %8403 = vst [vmem:[#allocation13_spill] sm:$0xff] %v6401_v21 }
 0x30b   : > { %v3841_v29 = vpop.permute.xlu1 %3840 }
 0x30d   : > { %v6403_v23 = vpop.permute.xlu0 %3286 }
 0x30e   : > { %8404 = vst [vmem:[#allocation14_spill] sm:$0xff] %v6403_v23 }
 0x30f   : > { %v6407_v36 = vpop.permute.xlu1 %3844 }
 0x310   : > { %8406 = vst [vmem:[#allocation16_spill] sm:$0xff] %v6407_v36 }
 0x311   : > { %v3736_v28 = vpop.permute.xlu0 %3735 }
 0x312   : > { %v3769_v39 = vsel %vm8274_vm6, %v3736_v28, %v3738_v22 }
 0x313   : > { %v3734_v42 = vpop.permute.xlu1 %3733 }
 0x314   : > { %v3768_v52 = vsel %vm8274_vm6, %v3734_v42, %v3736_v28 }
 0x315   : > { %v3740_v35 = vpop.permute.xlu0 %3739 }
 0x316   : > { %v3770_v48 = vsel %vm8274_vm6, %v3738_v22, %v3740_v35  ;;  %v3771_v50 = vsel %vm8274_vm6, %v3740_v35, %v6405_v26  ;;  %v2474_v22 = vand.u32 31, %v2438_v6 }
 0x317   : > { %v3837_v55 = vpop.permute.xlu1 %3836 }
 0x318   : > { %vm6446_vm8 = vcmp.eq.s32.totalorder %v2474_v22, 0 }
 0x319   : > { %v3839_v40 = vpop.permute.xlu0 %3838 }
 0x31a   : > { %v3872_v41 = vsel %vm8273_vm7, %v3839_v40, %v3841_v29  ;;  %v3871_v2 = vsel %vm8273_vm7, %v3837_v55, %v3839_v40  ;;  %v8407_v40 = vmov 0 }
 0x31b   : > { %v3920_v46 = vsel %vm6340_vm11, %v3769_v39, %v3872_v41  ;;  %v3944_v47 = vsel %vm6344_vm12, %v3872_v41, %v3769_v39  ;;  %v3919_v3 = vsel %vm6383_vm4, %v3768_v52, %v3871_v2  ;;  %v3943_v4 = vsel %vm6387_vm5, %v3871_v2, %v3768_v52  ;;  %v2758_v28 = vpop.permute.xlu1 %2757 }
 0x31c   : > { %3968 = vst [vmem:[#allocation3 + $0x448] sm:$0xf] %v3920_v46  ;;  %4164 = vst [vmem:[#allocation3 + $0x588] sm:$0xf] %v3944_v47  ;;  %v2786_v35 = vsel %vm8281_vm10, %v6317_v31, %v2758_v28  ;;  %v8408_v40 = vsel %vm6446_vm8, 4294967295, %v8407_v40  ;;  %v8409_v41 = vmov 0  ;;  %v2686_v52 = vsel %vm8280_vm9, %v6319_v32, %v6313_v27 }
 0x31d   : > { %v3843_v51 = vpop.permute.xlu0 %3842  ;;  %3967 = vst [vmem:[#allocation3 + $0x440] sm:$0xf] %v3919_v3  ;;  %4163 = vst [vmem:[#allocation3 + $0x580] sm:$0xf] %v3943_v4  ;;  %v2834_v31 = vsel %vm6446_vm8, %v2683_v16, %v2786_v35  ;;  %v8421_v27 = vmov 0 }
 0x31e   : > { %v3873_v53 = vsel %vm8273_vm7, %v3841_v29, %v3843_v51  ;;  %v3874_v54 = vsel %vm8273_vm7, %v3843_v51, %v6407_v36  ;;  %v2481_v29 = vand.u32 31, %v2439_v7  ;;  %vm6450_vm7 = vcmp.eq.s32.totalorder %v2474_v22, 31  ;;  %2882 = vst [vmem:[#allocation3 + $0xa0] sm:$0xf] %v2834_v31 }
 0x31f   : > { %v3921_v60 = vsel %vm6348_vm13, %v3770_v48, %v3873_v53  ;;  %v3922_v61 = vsel %vm6352_vm14, %v3771_v50, %v3874_v54  ;;  %v3945_v62 = vsel %vm6360_vm15, %v3873_v53, %v3770_v48  ;;  %v3946_v1 = vsel %vm6364_vm3, %v3874_v54, %v3771_v50  ;;  %v2762_v53 = vpop.permute.xlu1 %2761 }
 0x320   : > { %3969 = vst [vmem:[#allocation3 + $0x450] sm:$0xf] %v3921_v60  ;;  %3970 = vst [vmem:[#allocation3 + $0x458] sm:$0xf] %v3922_v61  ;;  %v8410_v41 = vsel %vm6450_vm7, 4294967295, %v8409_v41  ;;  %vm6454_vm6 = vcmp.eq.s32.totalorder %v2481_v29, 0  ;;  %v2858_v42 = vsel %vm6450_vm7, %v2786_v35, %v2683_v16  ;;  %v2685_v51 = vsel %vm8280_vm9, %v6311_v25, %v6319_v32 }
 0x321   : > { %4165 = vst [vmem:[#allocation3 + $0x590] sm:$0xf] %v3945_v62  ;;  %4166 = vst [vmem:[#allocation3 + $0x598] sm:$0xf] %v3946_v1  ;;  %v2760_v8 = vpop.permute.xlu0 %2759  ;;  %vm6458_vm2 = vcmp.eq.s32.totalorder %v2481_v29, 31  ;;  %v2440_v48 = vadd.s32 768, %v6325_v38 }
 0x322   : > { %v2787_v39 = vsel %vm8281_vm10, %v2758_v28, %v2760_v8  ;;  %v8414_v30 = vsel %vm6458_vm2, 4294967295, %v8413_v30  ;;  %3077 = vst [vmem:[#allocation3 + $0x1e0] sm:$0xf] %v2858_v42  ;;  %v2441_v50 = vadd.s32 896, %v6325_v38  ;;  %v2788_v60 = vsel %vm8281_vm10, %v2760_v8, %v2762_v53 }
 0x323   : > { %v2835_v46 = vsel %vm6454_vm6, %v2684_v17, %v2787_v39  ;;  %v2859_v47 = vsel %vm6458_vm2, %v2787_v39, %v2684_v17  ;;  %v2488_v55 = vand.u32 31, %v2440_v48  ;;  %v8417_v38 = vmov 0 }
 0x324   : > { %2883 = vst [vmem:[#allocation3 + $0xa8] sm:$0xf] %v2835_v46  ;;  %3078 = vst [vmem:[#allocation3 + $0x1e8] sm:$0xf] %v2859_v47  ;;  %v2495_v61 = vand.u32 31, %v2441_v50  ;;  %v8419_v25 = vmov 0 }
 0x325   : > { %v2764_v54 = vpop.permute.xlu0 %2763  ;;  %vm6480_vm0 = vcmp.eq.s32.totalorder %v2488_v55, 0  ;;  %vm6484_vm1 = vcmp.eq.s32.totalorder %v2488_v55, 31 }
 0x326   : > { %v2789_v62 = vsel %vm8281_vm10, %v2762_v53, %v2764_v54  ;;  %v8418_v38 = vsel %vm6484_vm1, 4294967295, %v8417_v38  ;;  %vm6488_vm2 = vcmp.eq.s32.totalorder %v2495_v61, 0  ;;  %vm6492_vm9 = vcmp.eq.s32.totalorder %v2495_v61, 31 }
 0x327   : > { %v8420_v25 = vsel %vm6488_vm2, 4294967295, %v8419_v25  ;;  %v8422_v27 = vsel %vm6492_vm9, 4294967295, %v8421_v27  ;;  %v2836_v32 = vsel %vm6480_vm0, %v2685_v51, %v2788_v60  ;;  %v2860_v2 = vsel %vm6484_vm1, %v2788_v60, %v2685_v51 }
 0x328   : > { %v2837_v3 = vsel %vm6488_vm2, %v2686_v52, %v2789_v62  ;;  %v2861_v4 = vsel %vm6492_vm9, %v2789_v62, %v2686_v52  ;;  %2884 = vst [vmem:[#allocation3 + $0xb0] sm:$0xf] %v2836_v32  ;;  %3079 = vst [vmem:[#allocation3 + $0x1f0] sm:$0xf] %v2860_v2  ;;  %vm8294_vm9 = vcmask 64512   ;;  %v1671_v2 = vld [vmem:[%s8267_s2 + $0x2b0] sm:$0xff] }
 0x329   : > { %2885 = vst [vmem:[#allocation3 + $0xb8] sm:$0xf] %v2837_v3  ;;  %3080 = vst [vmem:[#allocation3 + $0x1f8] sm:$0xf] %v2861_v4  ;;  %vm8424_vm2 = vmmov 0   ;;  %vm8425_vm1 = vcmask 31744  }
 0x3c7   : > { %v1326_v6 = vpop.f32.mrb[10].mxu0  ;;  %v1397_v7 = vpop.f32.mrb[10].mxu1 }
 0x3c8   : > { %v1552_v8 = vrot.slane %v1326_v6, 4  ;;  %v1554_v16 = vrot.slane %v1397_v7, 4  ;;  %v1328_v17 = vpop.f32.mrb[11].mxu0  ;;  %v1399_v22 = vpop.f32.mrb[11].mxu1 }
 0x3c9   : > { %v1553_v28 = vrot.slane %v1328_v17, 4  ;;  %v1555_v29 = vrot.slane %v1399_v22, 4 }
 0x3ca   : > { %1568 = vst [vmem:[#allocation2 + $0x8] sm:$0xf0] %v1552_v8  ;;  %1570 = vst [vmem:[#allocation2 + $0x18] sm:$0xf0] %v1554_v16  ;;  %v4793_v8 = vld [vmem:[%s8268_s3 + $0xc] sm:$0xf] }
 0x3cb   : > { %1569 = vst [vmem:[#allocation2 + $0x10] sm:$0xf0] %v1553_v28  ;;  %1571 = vst [vmem:[#allocation2 + $0x20] sm:$0xf0] %v1555_v29  ;;  %v1468_v35 = vpop.f32.mrb[12].mxu0  ;;  %v1539_v39 = vpop.f32.mrb[12].mxu1 }
 0x3cc   : > { %v1556_v31 = vrot.slane %v1468_v35, 4  ;;  %v1558_v42 = vrot.slane %v1539_v39, 4  ;;  %v1470_v46 = vpop.f32.mrb[13].mxu0  ;;  %v1541_v47 = vpop.f32.mrb[13].mxu1  ;;  %v2059_v29 = vld [vmem:[%s8267_s2 + $0x2c8] sm:$0xff]  ;;  %v2061_v35 = vld [vmem:[%s8267_s2 + $0x2d8] sm:$0xff] }
 0x3cd   : > { %v1557_v48 = vrot.slane %v1470_v46, 4  ;;  %v1559_v50 = vrot.slane %v1541_v47, 4  ;;  %v2058_v39 = vld [vmem:[%s8267_s2 + $0x2c0] sm:$0xff]  ;;  %v6654_v46 = vpop.permute.xlu0 %3186  ;;  %v2063_v47 = vld [vmem:[%s8267_s2 + $0x2e8] sm:$0xff] }
 0x3ce   : > { %1572 = vst [vmem:[#allocation2 + $0x28] sm:$0xf0] %v1556_v31  ;;  %1574 = vst [vmem:[#allocation2 + $0x38] sm:$0xf0] %v1558_v42  ;;  %v2060_v31 = vld [vmem:[%s8267_s2 + $0x2d0] sm:$0xff]  ;;  %v6652_v42 = vpop.permute.xlu1 %3184 }
 0x3cf   : > { %1573 = vst [vmem:[#allocation2 + $0x30] sm:$0xf0] %v1557_v48  ;;  %1575 = vst [vmem:[#allocation2 + $0x40] sm:$0xf0] %v1559_v50  ;;  %v1658_v51 = vpop.f32.mrb[14].mxu0  ;;  %v2065_v48 = vld [vmem:[%s8267_s2 + $0x2f8] sm:$0xff] }
 0x3d0   : > { %v1659_v52 = vadd.f32 %v1658_v51, %v6202_v43  ;;  %v4979_v53 = vpop.f32.mrb[15].mxu0  ;;  %v1669_v43 = vld [vmem:[%s8267_s2 + $0x2a0] sm:$0xff]  ;;  %8426 = vst [vmem:[#allocation17_spill] sm:$0xff] %v6652_v42  ;;  %8427 = vst [vmem:[#allocation18_spill] sm:$0xff] %v6654_v46 }
 0x3d1   : > { %v2555_v54 = vld [vmem:[#allocation2 + $0x8] sm:$0xff]  ;;  %v2557_v55 = vld [vmem:[#allocation2 + $0x18] sm:$0xff]  ;;  %v6670_v53 = vpop.permute.xlu0 %3190 }
 0x3d2   : > { %vm1662_vm10 = vcmp.ge.f32.partialorder %v1659_v52, 0.0  ;;  %v1663_v60 = vmul.f32 0.2, %v1659_v52  ;;  %2610 = vrot.lane.b32.xlu0 %v2555_v54, %s5426_s21  ;;  %2399 = vrot.lane.b32.xlu1 %v2555_v54, %s5424_s18  ;;  %3507 = vst [vmem:[#allocation3 + $0x280] sm:$0xff] %v2555_v54  ;;  %3509 = vst [vmem:[#allocation3 + $0x290] sm:$0xff] %v2557_v55  ;;  %v2556_v61 = vld [vmem:[#allocation2 + $0x10] sm:$0xff] }
 0x3d3   : > { %v6507_v62 = vld [vmem:[#allocation2 + $0x20] sm:$0xff]  ;;  %3508 = vst [vmem:[#allocation3 + $0x288] sm:$0xff] %v2556_v61  ;;  %v6575_v16 = vrot.slane %v2557_v55, 4  ;;  %v6588_v17 = vrot.slane %v2556_v61, 4  ;;  %8429 = vst [vmem:[#allocation20_spill] sm:$0xff] %v6670_v53 }
 0x3d4   : > { %3510 = vst [vmem:[#allocation3 + $0x298] sm:$0xff] %v6507_v62  ;;  %v1664_v32 = vsel %vm1662_vm10, %v1659_v52, %v1663_v60  ;;  %vm8423_vm10 = vcmask 1043456   ;;  %v6595_v22 = vrot.slane %v6507_v62, 4  ;;  %v6668_v52 = vpop.permute.xlu1 %3188 }
 0x3d5   : > { %4789 = vmatmul.mubr.msk.f32.vlgmr.msra.gmra.mrb[14].mxu1 %vm8294_vm9, %v1664_v32  ;;  %4790 = vmatmul.mubr.msk.f32.vlgmr.msra.gmra.mrb[16].mxu0 %vm8294_vm9, %v1664_v32  ;;  %v6518_v3 = vld [vmem:[#allocation2 + $0x28] sm:$0xff]  ;;  %v6520_v4 = vld [vmem:[#allocation2 + $0x38] sm:$0xff]  ;;  %8428 = vst [vmem:[#allocation19_spill] sm:$0xff] %v6668_v52 }
 0x3d6   : > { %2614 = vrot.lane.b32.xlu0 %v2557_v55, %s5426_s21  ;;  %2713 = vrot.lane.b32.xlu1 %v2555_v54, %s5427_s22  ;;  %3511 = vst [vmem:[#allocation3 + $0x2a0] sm:$0xff] %v6518_v3  ;;  %3513 = vst [vmem:[#allocation3 + $0x2b0] sm:$0xff] %v6520_v4  ;;  %v6526_v6 = vld [vmem:[#allocation2 + $0x30] sm:$0xff]  ;;  %v6528_v7 = vld [vmem:[#allocation2 + $0x40] sm:$0xff]  ;;  %v6634_v28 = vrot.slane %v6518_v3, 4  ;;  %v8290_v50 = vrot.slane %v6520_v4, 4 }
 0x3d7   : > { %1820 = vmatpush1.msra.mxu1 %v1669_v43  ;;  %1883 = vmatprep.mubr.f32.mxu1 %v8291_v11  ;;  %3512 = vst [vmem:[#allocation3 + $0x2a8] sm:$0xff] %v6526_v6  ;;  %3514 = vst [vmem:[#allocation3 + $0x2b8] sm:$0xff] %v6528_v7  ;;  %v8289_v51 = vrot.slane %v6526_v6, 4 }
 0x3d8   : > { %1891 = vmatpush1.msra.mxu0 %v1671_v2  ;;  %1954 = vmatprep.mubr.f32.mxu0 %v8291_v11 }
 0x3d9   : > { %4980 = vmatprep.subr.mxu1 %v8291_v11  ;;  %4791 = vmatmul.mubr.msk.f32.vlgmr.msra.gmra.mrb[16].mxu1 %vm8294_vm9, %v1664_v32 }
 0x3da   : > { %4792 = vmatmul.mubr.msk.f32.vlgmr.msra.gmra.mrb[18].mxu0 %vm8294_vm9, %v1664_v32  ;;  %4981 = vmatpush3.msk.msra.mxu1 %vm8423_vm10, %v6204_v44  ;;  %v6569_v44 = vrot.slane %v2555_v54, 4 }
 0x3db   : > { %3246 = vrot.lane.b32.xlu0 %v2555_v54, %s5429_s14  ;;  %2717 = vrot.lane.b32.xlu1 %v2557_v55, %s5427_s22 }
 0x3dc   : > { %4982 = vmatprep.mubr.msk.f32.mxu1 %vm8424_vm2, %v8291_v11  ;;  %2133 = vmatprep.mubr.f32.mxu0 %v8291_v11  ;;  %vm8431_vm2 = vcmask 269312  }
 0x3dd   : > { %4983 = vmatmul.mubr.msk.f32.vlgmr.msra.gmra.mrb[18].mxu1 %vm8425_vm1, %v4793_v8  ;;  %2069 = vmatprep.subr.mxu0 %v2059_v29  ;;  %vm8293_vm1 = vcmask 1048320   ;;  %vm8432_vm10 = vmmov %vm8431_vm2 }
 0x3de   : > { %2204 = vmatprep.mubr.f32.mxu1 %v8291_v11  ;;  %2140 = vmatprep.subr.mxu1 %v2061_v35 }
 0x3df   : > { %3250 = vrot.lane.b32.xlu0 %v2557_v55, %s5429_s14  ;;  %3142 = vrot.lane.b32.xlu1 %v2557_v55, %s5428_s13 }
 0x3e0   : > { %2070 = vmatpush1.msra.mxu0 %v2058_v39  ;;  %2141 = vmatpush1.msra.mxu1 %v2060_v31 }
 0x3e1   : > { %2211 = vmatprep.subr.mxu0 %v2063_v47  ;;  %2282 = vmatprep.subr.mxu1 %v2065_v48 }
 0x3e3   : > { %3138 = vrot.lane.b32.xlu0 %v2555_v54, %s5428_s13  ;;  %3701 = vrot.lane.b32.xlu1 %v2557_v55, %s5430_s15 }
 0x3e7   : > { %3697 = vrot.lane.b32.xlu0 %v2555_v54, %s5430_s15  ;;  %3804 = vrot.lane.b32.xlu1 %v2557_v55, %s5431_s16 }
 0x3eb   : > { %3800 = vrot.lane.b32.xlu1 %v2555_v54, %s5431_s16  ;;  %2715 = vrot.lane.b32.xlu0 %v2556_v61, %s5427_s22  ;;  %v8288_v54 = vrot.slane %v6528_v7, 4 }
 0x3ef   : > { %2719 = vrot.lane.b32.xlu0 %v6507_v62, %s5427_s22  ;;  %2612 = vrot.lane.b32.xlu1 %v2556_v61, %s5426_s21 }
 0x3f3   : > { %3140 = vrot.lane.b32.xlu0 %v2556_v61, %s5428_s13  ;;  %2616 = vrot.lane.b32.xlu1 %v6507_v62, %s5426_s21 }
 0x3f7   : > { %3144 = vrot.lane.b32.xlu0 %v6507_v62, %s5428_s13  ;;  %3248 = vrot.lane.b32.xlu1 %v2556_v61, %s5429_s14 }
 0x3fb   : > { %3699 = vrot.lane.b32.xlu0 %v2556_v61, %s5430_s15  ;;  %3252 = vrot.lane.b32.xlu1 %v6507_v62, %s5429_s14 }
 0x3ff   : > { %3703 = vrot.lane.b32.xlu0 %v6507_v62, %s5430_s15  ;;  %2933 = vrot.lane.b32.xlu1 %v6569_v44, %s5432_s26 }
 0x403   : > { %3802 = vrot.lane.b32.xlu0 %v2556_v61, %s5431_s16  ;;  %2937 = vrot.lane.b32.xlu1 %v6575_v16, %s5432_s26 }
 0x407   : > { %3806 = vrot.lane.b32.xlu0 %v6507_v62, %s5431_s16  ;;  %4024 = vrot.lane.b32.xlu1 %v6575_v16, %s5433_s27 }
 0x40b   : > { %4020 = vrot.lane.b32.xlu0 %v6569_v44, %s5433_s27  ;;  %3146 = vrot.lane.b32.xlu1 %v6518_v3, %s5428_s13 }
 0x40f   : > { %2935 = vrot.lane.b32.xlu0 %v6588_v17, %s5432_s26  ;;  %3705 = vrot.lane.b32.xlu1 %v6518_v3, %s5430_s15 }
 0x413   : > { %2939 = vrot.lane.b32.xlu0 %v6595_v22, %s5432_s26  ;;  %3808 = vrot.lane.b32.xlu1 %v6518_v3, %s5431_s16 }
 0x417   : > { %4022 = vrot.lane.b32.xlu0 %v6588_v17, %s5433_s27  ;;  %2721 = vrot.lane.b32.xlu1 %v6518_v3, %s5427_s22 }
 0x41b   : > { %4026 = vrot.lane.b32.xlu0 %v6595_v22, %s5433_s27  ;;  %2725 = vrot.lane.b32.xlu1 %v6520_v4, %s5427_s22 }
 0x41f   : > { %3254 = vrot.lane.b32.xlu1 %v6518_v3, %s5429_s14  ;;  %2618 = vrot.lane.b32.xlu0 %v6518_v3, %s5426_s21 }
 0x423   : > { %3258 = vrot.lane.b32.xlu1 %v6520_v4, %s5429_s14  ;;  %2622 = vrot.lane.b32.xlu0 %v6520_v4, %s5426_s21 }
 0x427   : > { %3150 = vrot.lane.b32.xlu0 %v6520_v4, %s5428_s13  ;;  %2620 = vrot.lane.b32.xlu1 %v6526_v6, %s5426_s21 }
 0x42b   : > { %2624 = vrot.lane.b32.xlu1 %v6528_v7, %s5426_s21  ;;  %2419 = vrot.lane.b32.xlu0 %v6528_v7, %s5424_s18 }
 0x42f   : > { %3148 = vrot.lane.b32.xlu1 %v6526_v6, %s5428_s13  ;;  %2723 = vrot.lane.b32.xlu0 %v6526_v6, %s5427_s22 }
 0x433   : > { %3152 = vrot.lane.b32.xlu1 %v6528_v7, %s5428_s13  ;;  %2727 = vrot.lane.b32.xlu0 %v6528_v7, %s5427_s22 }
 0x437   : > { %4028 = vrot.lane.b32.xlu1 %v6634_v28, %s5433_s27  ;;  %3256 = vrot.lane.b32.xlu0 %v6526_v6, %s5429_s14 }
 0x43b   : > { %2941 = vrot.lane.b32.xlu1 %v6634_v28, %s5432_s26  ;;  %3260 = vrot.lane.b32.xlu0 %v6528_v7, %s5429_s14 }
 0x43f   : > { %2945 = vrot.lane.b32.xlu1 %v8290_v50, %s5432_s26  ;;  %2943 = vrot.lane.b32.xlu0 %v8289_v51, %s5432_s26 }
 0x443   : > { %2947 = vrot.lane.b32.xlu0 %v8288_v54, %s5432_s26 }
 0x444   : > { %v6682_v55 = vpop.permute.xlu0 %2610  ;;  %v2400_v60 = vpop.permute.xlu1 %2399 }
 0x445   : > { %2409 = vst.msk [vmem:[#allocation2] sm:$0xff] %vm8293_vm1, %v2400_v60  ;;  %vm8433_vm1 = vcmask 252928  }
 0x446   : > { %vm8434_vm9 = vmmov %vm8433_vm1 }
 0x448   : > { %v2615_v61 = vpop.permute.xlu0 %2614  ;;  %v6685_v62 = vpop.permute.xlu1 %2713 }
 0x44c   : > { %v6687_v32 = vld [vmem:[#allocation2] sm:$0xff] }
 0x44d   : > { %8430 = vst [vmem:[#allocation21_spill] sm:$0xff] %v6687_v32  ;;  %v6689_v43 = vpop.permute.xlu0 %3246  ;;  %v2718_v2 = vpop.permute.xlu1 %2717  ;;  %2608 = vrot.lane.b32.xlu1 %v6687_v32, %s5426_s21  ;;  %2711 = vrot.lane.b32.xlu0 %v6687_v32, %s5427_s22  ;;  %v8295_v29 = vrot.slane %v6687_v32, 4 }
 0x451   : > { %v6695_v3 = vpop.permute.xlu0 %3250  ;;  %v3143_v8 = vpop.permute.xlu1 %3142  ;;  %3244 = vrot.lane.b32.xlu1 %v6687_v32, %s5429_s14 }
 0x455   : > { %v6700_v35 = vpop.permute.xlu0 %3138  ;;  %v6702_v39 = vpop.permute.xlu1 %3701  ;;  %2931 = vrot.lane.b32.xlu1 %v8295_v29, %s5432_s26 }
 0x459   : > { %v3698_v31 = vpop.permute.xlu0 %3697  ;;  %v6707_v47 = vpop.permute.xlu1 %3804 }
 0x45d   : > { %v3801_v48 = vpop.permute.xlu1 %3800  ;;  %v2716_v60 = vpop.permute.xlu0 %2715 }
 0x45e   : > { %v6713_v50 = vsel %vm8431_vm2, %v6685_v62, %v2716_v60  ;;  %v2768_v11 = vsel %vm8432_vm10, %v2716_v60, %v2718_v2  ;;  %vm8307_vm10 = vcmask 7168  }
 0x461   : > { %v6709_v54 = vpop.permute.xlu0 %2719  ;;  %v2613_v51 = vpop.permute.xlu1 %2612 }
 0x462   : > { %v6718_v53 = vsel %vm8433_vm1, %v6682_v55, %v2613_v51  ;;  %v2665_v29 = vsel %vm8434_vm9, %v2613_v51, %v2615_v61  ;;  %vm8435_vm9 = vmmov %vm8431_vm2  ;;  %vm8306_vm2 = vcmask 1039360  }
 0x463   : > { %v2816_v26 = vsel %vm6348_vm13, %v2665_v29, %v2768_v11  ;;  %v2839_v52 = vsel %vm6344_vm12, %v6713_v50, %v6718_v53  ;;  %v2840_v60 = vsel %vm6360_vm15, %v2768_v11, %v2665_v29  ;;  %v6739_v36 = vsel %vm8435_vm9, %v2718_v2, %v6709_v54 }
 0x464   : > { %2864 = vst [vmem:[#allocation3 + $0x10] sm:$0xff] %v2816_v26  ;;  %3058 = vst [vmem:[#allocation3 + $0x148] sm:$0xff] %v2839_v52  ;;  %vm8442_vm9 = vcmask 777216  }
 0x465   : > { %3059 = vst [vmem:[#allocation3 + $0x150] sm:$0xff] %v2840_v60  ;;  %v6733_v51 = vpop.permute.xlu0 %3140  ;;  %v6735_v46 = vpop.permute.xlu1 %2616  ;;  %8436 = vst [vmem:[#allocation22_spill] sm:$0xff] %v6739_v36 }
 0x466   : > { %v6743_v20 = vsel %vm8433_vm1, %v2615_v61, %v6735_v46  ;;  %v3194_v29 = vsel %vm8306_vm2, %v6733_v51, %v3143_v8  ;;  %vm8443_vm1 = vmmov %vm8442_vm9 }
 0x467   : > { %8437 = vst [vmem:[#allocation23_spill] sm:$0xff] %v6743_v20  ;;  %v2841_v26 = vsel %vm6364_vm3, %v6739_v36, %v6743_v20 }
 0x468   : > { %3060 = vst [vmem:[#allocation3 + $0x158] sm:$0xff] %v2841_v26 }
 0x469   : > { %v3145_v52 = vpop.permute.xlu0 %3144  ;;  %v3249_v2 = vpop.permute.xlu1 %3248 }
 0x46a   : > { %v3195_v61 = vsel %vm8306_vm2, %v3143_v8, %v3145_v52  ;;  %v3300_v60 = vsel %vm8307_vm10, %v6689_v43, %v3249_v2  ;;  %v3301_v18 = vsel %vm8307_vm10, %v3249_v2, %v6695_v3  ;;  %vm8444_vm2 = vcmask 793600  }
 0x46b   : > { %v3348_v11 = vsel %vm6340_vm11, %v3194_v29, %v3300_v60  ;;  %v3349_v42 = vsel %vm6348_vm13, %v3195_v61, %v3301_v18  ;;  %v3372_v26 = vsel %vm6344_vm12, %v3300_v60, %v3194_v29  ;;  %v3373_v5 = vsel %vm6360_vm15, %v3301_v18, %v3195_v61  ;;  %vm8445_vm10 = vmmov %vm8444_vm2 }
 0x46c   : > { %v6768_v37 = vrot.slane %v3348_v11, 4  ;;  %v6770_v8 = vrot.slane %v3349_v42, 4  ;;  %v6772_v14 = vrot.slane %v3372_v26, 4  ;;  %v6774_v32 = vrot.slane %v3373_v5, 4 }
 0x46d   : > { %v3700_v2 = vpop.permute.xlu0 %3699  ;;  %v6776_v23 = vpop.permute.xlu1 %3252 }
 0x46e   : > { %8438 = vst [vmem:[#allocation24_spill] sm:$0xff] %v6768_v37  ;;  %8439 = vst [vmem:[#allocation25_spill] sm:$0xff] %v6770_v8  ;;  %v3752_v61 = vsel %vm8442_vm9, %v3698_v31, %v3700_v2  ;;  %v3753_v5 = vsel %vm8443_vm1, %v3700_v2, %v6702_v39  ;;  %vm8447_vm9 = vcmask 7168  }
 0x46f   : > { %8440 = vst [vmem:[#allocation26_spill] sm:$0xff] %v6772_v14  ;;  %8441 = vst [vmem:[#allocation27_spill] sm:$0xff] %v6774_v32 }
 0x470   : > { %3484 = vst [vmem:[#allocation3 + $0x1c8] sm:$0xf0] %v6768_v37  ;;  %3485 = vst [vmem:[#allocation3 + $0x1d0] sm:$0xf0] %v6770_v8 }
 0x471   : > { %3620 = vst [vmem:[#allocation3 + $0x308] sm:$0xf0] %v6772_v14  ;;  %3621 = vst [vmem:[#allocation3 + $0x310] sm:$0xf0] %v6774_v32  ;;  %v3704_v18 = vpop.permute.xlu0 %3703  ;;  %v6782_v11 = vpop.permute.xlu1 %2933 }
 0x475   : > { %v3803_v42 = vpop.permute.xlu0 %3802  ;;  %v2938_v29 = vpop.permute.xlu1 %2937 }
 0x476   : > { %v3855_v60 = vsel %vm8444_vm2, %v3801_v48, %v3803_v42  ;;  %v3856_v26 = vsel %vm8445_vm10, %v3803_v42, %v6707_v47  ;;  %vm8446_vm2 = vmmov %vm8443_vm1  ;;  %vm8448_vm1 = vcmask 1039360  }
 0x477   : > { %v3903_v8 = vsel %vm6383_vm4, %v3752_v61, %v3855_v60  ;;  %v3904_v32 = vsel %vm6340_vm11, %v3753_v5, %v3856_v26  ;;  %v3927_v14 = vsel %vm6387_vm5, %v3855_v60, %v3752_v61  ;;  %v3928_v31 = vsel %vm6344_vm12, %v3856_v26, %v3753_v5 }
 0x478   : > { %3951 = vst [vmem:[#allocation3 + $0x3c0] sm:$0xff] %v3903_v8  ;;  %3952 = vst [vmem:[#allocation3 + $0x3c8] sm:$0xff] %v3904_v32  ;;  %v3754_v42 = vsel %vm8446_vm2, %v6702_v39, %v3704_v18  ;;  %vm8326_vm2 = vcmask 261120  }
 0x479   : > { %4147 = vst [vmem:[#allocation3 + $0x500] sm:$0xff] %v3927_v14  ;;  %4148 = vst [vmem:[#allocation3 + $0x508] sm:$0xff] %v3928_v31  ;;  %v3807_v48 = vpop.permute.xlu0 %3806  ;;  %v4025_v2 = vpop.permute.xlu1 %4024  ;;  %v3302_v14 = vsel %vm8447_vm9, %v6695_v3, %v6776_v23  ;;  %vm8454_vm9 = vcmask 793600  }
 0x47a   : > { %v3857_v37 = vsel %vm8445_vm10, %v6707_v47, %v3807_v48  ;;  %vm8453_vm10 = vcmask 777216  }
 0x47b   : > { %v3905_v19 = vsel %vm6348_vm13, %v3754_v42, %v3857_v37  ;;  %v3929_v61 = vsel %vm6360_vm15, %v3857_v37, %v3754_v42 }
 0x47c   : > { %3953 = vst [vmem:[#allocation3 + $0x3d0] sm:$0xff] %v3905_v19  ;;  %4149 = vst [vmem:[#allocation3 + $0x510] sm:$0xff] %v3929_v61 }
 0x47d   : > { %v4021_v8 = vpop.permute.xlu0 %4020  ;;  %v3147_v32 = vpop.permute.xlu1 %3146 }
 0x47e   : > { %v3196_v5 = vsel %vm8448_vm1, %v3145_v52, %v3147_v32  ;;  %vm8317_vm1 = vcmask 785408  }
 0x47f   : > { %v3350_v39 = vsel %vm6352_vm14, %v3196_v5, %v3302_v14  ;;  %v3374_v47 = vsel %vm6364_vm3, %v3302_v14, %v3196_v5 }
 0x480   : > { %v6814_v60 = vrot.slane %v3350_v39, 4  ;;  %v6816_v37 = vrot.slane %v3374_v47, 4 }
 0x481   : > { %v2936_v19 = vpop.permute.xlu0 %2935  ;;  %v6818_v26 = vpop.permute.xlu1 %3705 }
 0x482   : > { %8449 = vst [vmem:[#allocation28_spill] sm:$0xff] %v6814_v60  ;;  %8450 = vst [vmem:[#allocation29_spill] sm:$0xff] %v6816_v37  ;;  %v2986_v3 = vsel %vm8326_vm2, %v6782_v11, %v2936_v19  ;;  %v2987_v52 = vsel %vm8326_vm2, %v2936_v19, %v2938_v29  ;;  %v3755_v61 = vsel %vm8453_vm10, %v3704_v18, %v6818_v26  ;;  %vm8455_vm10 = vcmask 269312  }
 0x483   : > { %8451 = vst [vmem:[#allocation30_spill] sm:$0xff] %v6818_v26  ;;  %3486 = vst [vmem:[#allocation3 + $0x1d8] sm:$0xf0] %v6814_v60 }
 0x484   : > { %3622 = vst [vmem:[#allocation3 + $0x318] sm:$0xf0] %v6816_v37  ;;  %3034 = vst [vmem:[#allocation3 + $0x88] sm:$0xf0] %v2986_v3 }
 0x485   : > { %3035 = vst [vmem:[#allocation3 + $0x90] sm:$0xf0] %v2987_v52  ;;  %v6825_v31 = vpop.permute.xlu0 %2939  ;;  %v6827_v42 = vpop.permute.xlu1 %3808 }
 0x486   : > { %8452 = vst [vmem:[#allocation31_spill] sm:$0xff] %v6827_v42  ;;  %v2988_v14 = vsel %vm8326_vm2, %v2938_v29, %v6825_v31  ;;  %v3858_v5 = vsel %vm8454_vm9, %v3807_v48, %v6827_v42  ;;  %vm8456_vm9 = vcmask 252928  }
 0x487   : > { %3036 = vst [vmem:[#allocation3 + $0x98] sm:$0xf0] %v2988_v14  ;;  %v3906_v39 = vsel %vm6352_vm14, %v3755_v61, %v3858_v5  ;;  %v3930_v47 = vsel %vm6364_vm3, %v3858_v5, %v3755_v61  ;;  %vm8459_vm3 = vcmask 1039360   ;;  %vm8460_vm14 = vcmask 269312  }
 0x488   : > { %3954 = vst [vmem:[#allocation3 + $0x3d8] sm:$0xff] %v3906_v39  ;;  %4150 = vst [vmem:[#allocation3 + $0x518] sm:$0xff] %v3930_v47 }
 0x489   : > { %v4023_v19 = vpop.permute.xlu0 %4022  ;;  %v2722_v3 = vpop.permute.xlu1 %2721  ;;  %vm8461_vm15 = vmmov %vm8460_vm14 }
 0x48a   : > { %v4075_v18 = vsel %vm8317_vm1, %v4021_v8, %v4023_v19  ;;  %v4076_v52 = vsel %vm8317_vm1, %v4023_v19, %v4025_v2  ;;  %v2770_v61 = vsel %vm8455_vm10, %v6709_v54, %v2722_v3  ;;  %vm8457_vm10 = vcmask 7168  }
 0x48b   : > { %4123 = vst [vmem:[#allocation3 + $0x440] sm:$0xf0] %v4075_v18  ;;  %4124 = vst [vmem:[#allocation3 + $0x448] sm:$0xf0] %v4076_v52 }
 0x48d   : > { %v4027_v29 = vpop.permute.xlu0 %4026  ;;  %v2726_v48 = vpop.permute.xlu1 %2725 }
 0x48e   : > { %v4077_v14 = vsel %vm8317_vm1, %v4025_v2, %v4027_v29  ;;  %vm8458_vm1 = vmmov %vm8456_vm9 }
 0x48f   : > { %4125 = vst [vmem:[#allocation3 + $0x450] sm:$0xf0] %v4077_v14 }
 0x491   : > { %v3255_v42 = vpop.permute.xlu1 %3254  ;;  %v2619_v26 = vpop.permute.xlu0 %2618 }
 0x492   : > { %v2667_v5 = vsel %vm8456_vm9, %v6735_v46, %v2619_v26  ;;  %v3303_v46 = vsel %vm8457_vm10, %v6776_v23, %v3255_v42  ;;  %vm8468_vm10 = vnez %v8420_v25 }
 0x493   : > { %v2818_v8 = vsel %vm6446_vm8, %v2667_v5, %v2770_v61  ;;  %v2842_v39 = vsel %vm6450_vm7, %v2770_v61, %v2667_v5 }
 0x494   : > { %2866 = vst [vmem:[#allocation3 + $0x20] sm:$0xff] %v2818_v8  ;;  %3061 = vst [vmem:[#allocation3 + $0x160] sm:$0xff] %v2842_v39 }
 0x495   : > { %v6850_v47 = vpop.permute.xlu1 %3258  ;;  %v2623_v2 = vpop.permute.xlu0 %2622 }
 0x499   : > { %v3151_v19 = vpop.permute.xlu0 %3150  ;;  %v2621_v18 = vpop.permute.xlu1 %2620 }
 0x49a   : > { %v2668_v54 = vsel %vm8456_vm9, %v2619_v26, %v2621_v18  ;;  %v2669_v61 = vsel %vm8458_vm1, %v2621_v18, %v2623_v2  ;;  %vm8469_vm9 = vnez %v8422_v27 }
 0x49d   : > { %v2625_v52 = vpop.permute.xlu1 %2624  ;;  %v2420_v14 = vpop.permute.xlu0 %2419 }
 0x49e   : > { %2429 = vst.msk [vmem:[#allocation2 + $0x48] sm:$0xff] %vm8326_vm2, %v2420_v14  ;;  %vm8473_vm2 = vcmask 785408  }
 0x4a1   : > { %v3149_v37 = vpop.permute.xlu1 %3148  ;;  %v2724_v60 = vpop.permute.xlu0 %2723 }
 0x4a2   : > { %v3197_v5 = vsel %vm8459_vm3, %v3147_v32, %v3149_v37  ;;  %v2771_v8 = vsel %vm8460_vm14, %v2722_v3, %v2724_v60  ;;  %v2772_v39 = vsel %vm8461_vm15, %v2724_v60, %v2726_v48  ;;  %vm8464_vm14 = vnez %v8414_v30  ;;  %vm8466_vm3 = vmmov %vm8458_vm1 }
 0x4a3   : > { %v3351_v36 = vsel %vm6446_vm8, %v3197_v5, %v3303_v46  ;;  %v3375_v14 = vsel %vm6450_vm7, %v3303_v46, %v3197_v5  ;;  %v2819_v23 = vsel %vm6454_vm6, %v2668_v54, %v2771_v8  ;;  %v2820_v26 = vsel %vm6480_vm0, %v2669_v61, %v2772_v39 }
 0x4a4   : > { %v6868_v20 = vrot.slane %v3351_v36, 4  ;;  %v6870_v18 = vrot.slane %v3375_v14, 4  ;;  %v2843_v32 = vsel %vm8464_vm14, %v2771_v8, %v2668_v54  ;;  %vm8465_vm15 = vnez %v8418_v38  ;;  %2867 = vst [vmem:[#allocation3 + $0x28] sm:$0xff] %v2819_v23  ;;  %2868 = vst [vmem:[#allocation3 + $0x30] sm:$0xff] %v2820_v26 }
 0x4a5   : > { %v2844_v60 = vsel %vm8465_vm15, %v2772_v39, %v2669_v61  ;;  %3062 = vst [vmem:[#allocation3 + $0x168] sm:$0xff] %v2843_v32  ;;  %v6876_v3 = vpop.permute.xlu1 %3152  ;;  %v2728_v46 = vpop.permute.xlu0 %2727  ;;  %v6878_v5 = vld [vmem:[#allocation2 + $0x48] sm:$0xff]  ;;  %v2670_v36 = vsel %vm8466_vm3, %v2623_v2, %v2625_v52  ;;  %vm8467_vm1 = vcmask 269312   ;;  %vm8470_vm3 = vcmask 1039360  }
 0x4a6   : > { %8462 = vst [vmem:[#allocation32_spill] sm:$0xff] %v6868_v20  ;;  %8463 = vst [vmem:[#allocation33_spill] sm:$0xff] %v6870_v18  ;;  %v2773_v54 = vsel %vm8467_vm1, %v2726_v48, %v2728_v46  ;;  %3154 = vrot.lane.b32.xlu0 %v6878_v5, %s5428_s13  ;;  %v3198_v2 = vsel %vm8470_vm3, %v3149_v37, %v3151_v19  ;;  %vm8474_vm7 = vcmask 7168  }
 0x4a7   : > { %3063 = vst [vmem:[#allocation3 + $0x170] sm:$0xff] %v2844_v60  ;;  %3487 = vst [vmem:[#allocation3 + $0x1e0] sm:$0xf0] %v6868_v20  ;;  %v2821_v61 = vsel %vm8468_vm10, %v2670_v36, %v2773_v54  ;;  %v2845_v8 = vsel %vm8469_vm9, %v2773_v54, %v2670_v36 }
 0x4a8   : > { %3623 = vst [vmem:[#allocation3 + $0x320] sm:$0xf0] %v6870_v18  ;;  %2869 = vst [vmem:[#allocation3 + $0x38] sm:$0xff] %v2821_v61  ;;  %v1743_v39 = vpop.f32.mrb[14].mxu1  ;;  %v1814_v14 = vpop.f32.mrb[16].mxu0 }
 0x4a9   : > { %3064 = vst [vmem:[#allocation3 + $0x178] sm:$0xff] %v2845_v8  ;;  %1961 = vst [vmem:[#allocation2 + $0x58] sm:$0xf] %v1743_v39  ;;  %v6891_v52 = vpop.permute.xlu1 %4028  ;;  %v3257_v48 = vpop.permute.xlu0 %3256 }
 0x4aa   : > { %1963 = vst [vmem:[#allocation2 + $0x68] sm:$0xf] %v1814_v14  ;;  %8471 = vst [vmem:[#allocation34_spill] sm:$0xff] %v6891_v52  ;;  %v4078_v26 = vsel %vm8473_vm2, %v4027_v29, %v6891_v52  ;;  %v3304_v32 = vsel %vm8474_vm7, %v3255_v42, %v3257_v48  ;;  %v1745_v46 = vpop.f32.mrb[15].mxu1  ;;  %v1816_v36 = vpop.f32.mrb[17].mxu0 }
 0x4ab   : > { %vm8472_vm1 = vmmov %vm8470_vm3  ;;  %4126 = vst [vmem:[#allocation3 + $0x458] sm:$0xf0] %v4078_v26  ;;  %v3352_v37 = vsel %vm6454_vm6, %v3198_v2, %v3304_v32 }
 0x4ac   : > { %v3199_v23 = vsel %vm8472_vm1, %v3151_v19, %v6876_v3  ;;  %vm8475_vm8 = vmmov %vm8474_vm7  ;;  %v3376_v19 = vsel %vm8464_vm14, %v3304_v32, %v3198_v2  ;;  %1962 = vst [vmem:[#allocation2 + $0x60] sm:$0xf] %v1745_v46  ;;  %v6908_v42 = vrot.slane %v3352_v37, 4  ;;  %v1885_v14 = vpop.f32.mrb[16].mxu1  ;;  %vm8480_vm7 = vcmask 261120  }
 0x4ad   : > { %v3305_v60 = vsel %vm8475_vm8, %v3257_v48, %v6850_v47  ;;  %1964 = vst [vmem:[#allocation2 + $0x70] sm:$0xf] %v1816_v36  ;;  %v6912_v8 = vrot.slane %v3376_v19, 4  ;;  %1965 = vst [vmem:[#allocation2 + $0x78] sm:$0xf] %v1885_v14  ;;  %v1956_v48 = vpop.f32.mrb[18].mxu0  ;;  %v2942_v26 = vpop.permute.xlu1 %2941 }
 0x4ae   : > { %v3353_v54 = vsel %vm6480_vm0, %v3199_v23, %v3305_v60  ;;  %v3377_v29 = vsel %vm8465_vm15, %v3305_v60, %v3199_v23  ;;  %8476 = vst [vmem:[#allocation35_spill] sm:$0xff] %v6908_v42  ;;  %3488 = vst [vmem:[#allocation3 + $0x1e8] sm:$0xf0] %v6908_v42  ;;  %v2989_v2 = vsel %vm8480_vm7, %v6825_v31, %v2942_v26  ;;  %v3261_v23 = vpop.permute.xlu0 %3260  ;;  %v1887_v32 = vpop.f32.mrb[17].mxu1  ;;  %v2062_v31 = vld [vmem:[%s8267_s2 + $0x2e0] sm:$0xff]  ;;  %vm8483_vm1 = vcmask 64512  }
 0x4af   : > { %v6910_v61 = vrot.slane %v3353_v54, 4  ;;  %8478 = vst [vmem:[#allocation37_spill] sm:$0xff] %v6912_v8  ;;  %v6914_v39 = vrot.slane %v3377_v29, 4  ;;  %3624 = vst [vmem:[#allocation3 + $0x328] sm:$0xf0] %v6912_v8  ;;  %v1958_v60 = vpop.f32.mrb[19].mxu0 }
 0x4b0   : > { %1967 = vst [vmem:[#allocation2 + $0x88] sm:$0xf] %v1956_v48  ;;  %3037 = vst [vmem:[#allocation3 + $0xa0] sm:$0xf0] %v2989_v2  ;;  %v2051_v46 = vpop.f32.mrb[18].mxu1  ;;  %v8547_v8 = vld [vmem:[#allocation14_spill] sm:$0xff] }
 0x4b1   : > { %8477 = vst [vmem:[#allocation36_spill] sm:$0xff] %v6910_v61  ;;  %8479 = vst [vmem:[#allocation38_spill] sm:$0xff] %v6914_v39  ;;  %v2052_v36 = vadd.f32 %v2051_v46, %v6206_v45  ;;  %v2946_v37 = vpop.permute.xlu1 %2945  ;;  %v4984_v54 = vpop.f32.mrb[19].mxu1  ;;  %v2064_v45 = vld [vmem:[%s8267_s2 + $0x2f0] sm:$0xff]  ;;  %vm8559_vm14 = vcmask 1039360  }
 0x4b2   : > { %3489 = vst [vmem:[#allocation3 + $0x1f0] sm:$0xf0] %v6910_v61  ;;  %3625 = vst [vmem:[#allocation3 + $0x330] sm:$0xf0] %v6914_v39  ;;  %v2944_v19 = vpop.permute.xlu0 %2943 }
 0x4b3   : > { %1966 = vst [vmem:[#allocation2 + $0x80] sm:$0xf] %v1887_v32  ;;  %1968 = vst [vmem:[#allocation2 + $0x90] sm:$0xf] %v1958_v60  ;;  %vm2055_vm8 = vcmp.ge.f32.partialorder %v2052_v36, 0.0  ;;  %v8486_v60 = vmov 0.0  }
 0x4b4   : > { %v2056_v29 = vmul.f32 0.2, %v2052_v36  ;;  %vm8481_vm2 = vmmov %vm8480_vm7 }
 0x4b5   : > { %v2990_v14 = vsel %vm8481_vm2, %v2942_v26, %v2944_v19  ;;  %vm8482_vm3 = vmmov %vm8481_vm2 }
 0x4b6   : > { %v2991_v48 = vsel %vm8482_vm3, %v2944_v19, %v2946_v37  ;;  %3038 = vst [vmem:[#allocation3 + $0xa8] sm:$0xf0] %v2990_v14  ;;  %v2057_v2 = vsel %vm2055_vm8, %v2052_v36, %v2056_v29  ;;  %v2948_v32 = vpop.permute.xlu0 %2947  ;;  %vm8484_vm7 = vmmov %vm8483_vm1  ;;  %vm8489_vm3 = vcmask 252928   ;;  %v8638_v58 = vld [vmem:[#allocation37_spill] sm:$0xff] }
 0x4b7   : > { %3039 = vst [vmem:[#allocation3 + $0xb0] sm:$0xf0] %v2991_v48  ;;  %4797 = vmatmul.mubr.msk.f32.vlgmr.msra.gmra.mrb[20].mxu0 %vm8483_vm1, %v2057_v2  ;;  %4798 = vmatmul.mubr.msk.f32.vlgmr.msra.gmra.mrb[20].mxu1 %vm8484_vm7, %v2057_v2  ;;  %vm8485_vm15 = vmmov %vm8481_vm2  ;;  %vm8492_vm7 = vcmask 7168  }
 0x4b8   : > { %v2992_v26 = vsel %vm8485_vm15, %v2946_v37, %v2948_v32  ;;  %2212 = vmatpush1.msra.mxu0 %v2062_v31  ;;  %2275 = vmatprep.mubr.f32.mxu0 %v8486_v60  ;;  %vm8487_vm2 = vmmov %vm8483_vm1  ;;  %vm8491_vm15 = vcmask 1039360  }
 0x4b9   : > { %3040 = vst [vmem:[#allocation3 + $0xb8] sm:$0xf0] %v2992_v26  ;;  %2283 = vmatpush1.msra.mxu1 %v2064_v45  ;;  %2346 = vmatprep.mubr.f32.mxu1 %v8486_v60  ;;  %vm8488_vm8 = vmmov %vm8483_vm1  ;;  %vm8490_vm1 = vcmask 269312   ;;  %v3193_v48 = vsel %vm8491_vm15, %v6700_v35, %v6733_v51 }
 0x4bb   : > { %4799 = vmatmul.mubr.msk.f32.vlgmr.msra.gmra.mrb[22].mxu0 %vm8487_vm2, %v2057_v2  ;;  %4800 = vmatmul.mubr.msk.f32.vlgmr.msra.gmra.mrb[22].mxu1 %vm8488_vm8, %v2057_v2  ;;  %vm8495_vm2 = vcmask 261120   ;;  %vm8496_vm8 = vmmov %vm8492_vm7 }
 0x4bc   : > { %v3306_v51 = vsel %vm8496_vm8, %v6850_v47, %v3261_v23 }
 0x4bf   : > { %v2609_v46 = vpop.permute.xlu1 %2608  ;;  %v2712_v36 = vpop.permute.xlu0 %2711 }
 0x4c0   : > { %v2663_v54 = vsel %vm8489_vm3, %v2609_v46, %v6682_v55  ;;  %v2766_v19 = vsel %vm8490_vm1, %v2712_v36, %v6685_v62  ;;  %vm8497_vm3 = vmmov %vm8491_vm15  ;;  %vm8500_vm1 = vcmask 1043456  }
 0x4c1   : > { %v2814_v37 = vsel %vm6383_vm4, %v2663_v54, %v2766_v19  ;;  %v2838_v29 = vsel %vm6387_vm5, %v2766_v19, %v2663_v54  ;;  %vm8501_vm15 = vmmov %vm8500_vm1 }
 0x4c2   : > { %2862 = vst [vmem:[#allocation3] sm:$0xff] %v2814_v37  ;;  %3057 = vst [vmem:[#allocation3 + $0x140] sm:$0xff] %v2838_v29 }
 0x4c3   : > { %v3245_v14 = vpop.permute.xlu1 %3244  ;;  %vm8504_vm8 = vmmov %vm8500_vm1 }
 0x4c4   : > { %v3299_v31 = vsel %vm8492_vm7, %v3245_v14, %v6689_v43  ;;  %vm8502_vm7 = vmmov %vm8500_vm1 }
 0x4c5   : > { %v3347_v55 = vsel %vm6383_vm4, %v3193_v48, %v3299_v31  ;;  %v3371_v62 = vsel %vm6387_vm5, %v3299_v31, %v3193_v48 }
 0x4c6   : > { %v6955_v2 = vrot.slane %v3347_v55, 4  ;;  %v6957_v45 = vrot.slane %v3371_v62, 4 }
 0x4c7   : > { %v2932_v32 = vpop.permute.xlu1 %2931 }
 0x4c8   : > { %8493 = vst [vmem:[#allocation39_spill] sm:$0xff] %v6955_v2  ;;  %8494 = vst [vmem:[#allocation40_spill] sm:$0xff] %v6957_v45  ;;  %v2985_v35 = vsel %vm8495_vm2, %v2932_v32, %v6782_v11 }
 0x4c9   : > { %3483 = vst [vmem:[#allocation3 + $0x1c0] sm:$0xf0] %v6955_v2  ;;  %3619 = vst [vmem:[#allocation3 + $0x300] sm:$0xf0] %v6957_v45 }
 0x4ca   : > { %3033 = vst [vmem:[#allocation3 + $0x80] sm:$0xf0] %v2985_v35  ;;  %vm8503_vm2 = vmmov %vm8500_vm1 }
 0x518   : > { %v3155_v43 = vpop.permute.xlu0 %3154 }
 0x519   : > { %v3200_v26 = vsel %vm8497_vm3, %v6876_v3, %v3155_v43  ;;  %vm8505_vm3 = vmmov %vm8500_vm1 }
 0x51a   : > { %v3354_v60 = vsel %vm8468_vm10, %v3200_v26, %v3306_v51  ;;  %v3378_v46 = vsel %vm8469_vm9, %v3306_v51, %v3200_v26  ;;  %vm8552_vm9 = vcmask 1043456   ;;  %vm8558_vm10 = vcmask 7168  }
 0x51b   : > { %v6971_v36 = vrot.slane %v3354_v60, 4  ;;  %v6973_v54 = vrot.slane %v3378_v46, 4 }
 0x51d   : > { %8498 = vst [vmem:[#allocation41_spill] sm:$0xff] %v6971_v36  ;;  %8499 = vst [vmem:[#allocation42_spill] sm:$0xff] %v6973_v54 }
 0x51e   : > { %3490 = vst [vmem:[#allocation3 + $0x1f8] sm:$0xf0] %v6971_v36  ;;  %3626 = vst [vmem:[#allocation3 + $0x338] sm:$0xf0] %v6973_v54  ;;  %v5409_v54 = vld [vmem:[#allocation2 + $0xe0] sm:$0xf] }
 0x51f   : > { %v2929_v36 = vrot.slane %v5409_v54, 4  ;;  %v5410_v54 = vld [vmem:[#allocation2 + $0xa0] sm:$0xf] }
 0x58a   : > { %v2135_v11 = vpop.f32.mrb[20].mxu0  ;;  %v2206_v19 = vpop.f32.mrb[20].mxu1 }
 0x58b   : > { %v2361_v47 = vrot.slane %v2135_v11, 4  ;;  %v2363_v23 = vrot.slane %v2206_v19, 4  ;;  %v2137_v37 = vpop.f32.mrb[21].mxu0  ;;  %v2208_v3 = vpop.f32.mrb[21].mxu1 }
 0x58c   : > { %v2362_v29 = vrot.slane %v2137_v37, 4  ;;  %v2364_v14 = vrot.slane %v2208_v3, 4 }
 0x58d   : > { %2377 = vst [vmem:[#allocation2 + $0x58] sm:$0xf0] %v2361_v47  ;;  %2379 = vst [vmem:[#allocation2 + $0x68] sm:$0xf0] %v2363_v23 }
 0x58e   : > { %2378 = vst [vmem:[#allocation2 + $0x60] sm:$0xf0] %v2362_v29  ;;  %2380 = vst [vmem:[#allocation2 + $0x70] sm:$0xf0] %v2364_v14  ;;  %v2277_v48 = vpop.f32.mrb[22].mxu0  ;;  %v2348_v31 = vpop.f32.mrb[22].mxu1 }
 0x58f   : > { %v2365_v55 = vrot.slane %v2277_v48, 4  ;;  %v2367_v62 = vrot.slane %v2348_v31, 4  ;;  %v2279_v32 = vpop.f32.mrb[23].mxu0  ;;  %v2350_v35 = vpop.f32.mrb[23].mxu1  ;;  %v5397_v48 = vld [vmem:[#allocation2 + $0xa8] sm:$0xf] }
 0x590   : > { %v2366_v43 = vrot.slane %v2279_v32, 4  ;;  %v2368_v51 = vrot.slane %v2350_v35, 4  ;;  %v2915_v31 = vrot.slane %v5397_v48, 4 }
 0x591   : > { %2381 = vst [vmem:[#allocation2 + $0x78] sm:$0xf0] %v2365_v55  ;;  %2383 = vst [vmem:[#allocation2 + $0x88] sm:$0xf0] %v2367_v62  ;;  %v5398_v62 = vld [vmem:[#allocation2 + $0xb8] sm:$0xf] }
 0x592   : > { %2382 = vst [vmem:[#allocation2 + $0x80] sm:$0xf0] %v2366_v43  ;;  %2384 = vst [vmem:[#allocation2 + $0x90] sm:$0xf0] %v2368_v51  ;;  %v2919_v32 = vrot.slane %v5398_v62, 4 }
 0x593   : > { %v5400_v51 = vld [vmem:[#allocation2 + $0xa8] sm:$0xf] }
 0x594   : > { %v2564_v26 = vld [vmem:[#allocation2 + $0x58] sm:$0xff]  ;;  %v6977_v60 = vld [vmem:[#allocation2 + $0x68] sm:$0xff] }
 0x595   : > { %2628 = vrot.lane.b32.xlu1 %v2564_v26, %s5426_s21  ;;  %2401 = vrot.lane.b32.xlu0 %v2564_v26, %s5424_s18  ;;  %3515 = vst [vmem:[#allocation3 + $0x2c0] sm:$0xff] %v2564_v26  ;;  %v2565_v46 = vld [vmem:[#allocation2 + $0x60] sm:$0xff]  ;;  %v6981_v11 = vld [vmem:[#allocation2 + $0x70] sm:$0xff]  ;;  %v2897_v3 = vrot.slane %v2564_v26, 4  ;;  %v2901_v29 = vrot.slane %v6977_v60, 4 }
 0x596   : > { %3516 = vst [vmem:[#allocation3 + $0x2c8] sm:$0xff] %v2565_v46  ;;  %v2899_v48 = vrot.slane %v2565_v46, 4  ;;  %v2903_v62 = vrot.slane %v6981_v11, 4 }
 0x597   : > { %v2898_v14 = vsel %vm8500_vm1, %v6569_v44, %v2897_v3  ;;  %v2902_v55 = vsel %vm8501_vm15, %v6575_v16, %v2901_v29  ;;  %v2916_v35 = vsel %vm8502_vm7, %v2897_v3, %v2915_v31  ;;  %v2920_v44 = vsel %vm8503_vm2, %v2901_v29, %v2919_v32  ;;  %v5399_v16 = vld [vmem:[#allocation2 + $0xb8] sm:$0xf]  ;;  %vm8506_vm15 = vmmov %vm8500_vm1 }
 0x598   : > { %v6983_v19 = vld [vmem:[#allocation2 + $0x78] sm:$0xff]  ;;  %v6985_v47 = vld [vmem:[#allocation2 + $0x88] sm:$0xff]  ;;  %v4006_v43 = vrot.slane %v5399_v16, 4  ;;  %vm8507_vm7 = vmmov %vm8500_vm1 }
 0x599   : > { %2632 = vrot.lane.b32.xlu1 %v6977_v60, %s5426_s21  ;;  %3264 = vrot.lane.b32.xlu0 %v2564_v26, %s5429_s14  ;;  %3519 = vst [vmem:[#allocation3 + $0x2e0] sm:$0xff] %v6983_v19  ;;  %3521 = vst [vmem:[#allocation3 + $0x2f0] sm:$0xff] %v6985_v47  ;;  %v6992_v23 = vld [vmem:[#allocation2 + $0x80] sm:$0xff]  ;;  %v6994_v37 = vld [vmem:[#allocation2 + $0x90] sm:$0xff] }
 0x59a   : > { %3520 = vst [vmem:[#allocation3 + $0x2e8] sm:$0xff] %v6992_v23  ;;  %3522 = vst [vmem:[#allocation3 + $0x2f8] sm:$0xff] %v6994_v37 }
 0x59b   : > { %vm8508_vm2 = vmmov %vm8500_vm1 }
 0x59d   : > { %2731 = vrot.lane.b32.xlu1 %v2564_v26, %s5427_s22  ;;  %3268 = vrot.lane.b32.xlu0 %v6977_v60, %s5429_s14 }
 0x5a1   : > { %2735 = vrot.lane.b32.xlu1 %v6977_v60, %s5427_s22  ;;  %3156 = vrot.lane.b32.xlu0 %v2564_v26, %s5428_s13 }
 0x5a5   : > { %3160 = vrot.lane.b32.xlu1 %v6977_v60, %s5428_s13  ;;  %3715 = vrot.lane.b32.xlu0 %v2564_v26, %s5430_s15 }
 0x5a9   : > { %3719 = vrot.lane.b32.xlu1 %v6977_v60, %s5430_s15  ;;  %3818 = vrot.lane.b32.xlu0 %v2564_v26, %s5431_s16  ;;  %v4002_v26 = vrot.slane %v5400_v51, 4 }
 0x5ab   : > { %v4003_v31 = vsel %vm8505_vm3, %v2897_v3, %v4002_v26  ;;  %v3991_v3 = vsel %vm8506_vm15, %v6595_v22, %v2903_v62  ;;  %vm8510_vm3 = vmmov %vm8500_vm1 }
 0x5ac   : > { %vm8515_vm15 = vmmov %vm8508_vm2 }
 0x5ad   : > { %3822 = vrot.lane.b32.xlu1 %v6977_v60, %s5431_s16  ;;  %2630 = vrot.lane.b32.xlu0 %v2565_v46, %s5426_s21 }
 0x5b1   : > { %3266 = vrot.lane.b32.xlu1 %v2565_v46, %s5429_s14  ;;  %2634 = vrot.lane.b32.xlu0 %v6981_v11, %s5426_s21 }
 0x5b5   : > { %3270 = vrot.lane.b32.xlu1 %v6981_v11, %s5429_s14  ;;  %2733 = vrot.lane.b32.xlu0 %v2565_v46, %s5427_s22 }
 0x5b9   : > { %2951 = vrot.lane.b32.xlu1 %v2898_v14, %s5432_s26  ;;  %2737 = vrot.lane.b32.xlu0 %v6981_v11, %s5427_s22 }
 0x5bd   : > { %2955 = vrot.lane.b32.xlu1 %v2902_v55, %s5432_s26  ;;  %3158 = vrot.lane.b32.xlu0 %v2565_v46, %s5428_s13 }
 0x5c1   : > { %2969 = vrot.lane.b32.xlu1 %v2916_v35, %s5432_s26  ;;  %3162 = vrot.lane.b32.xlu0 %v6981_v11, %s5428_s13  ;;  %v5402_v35 = vld [vmem:[#allocation2 + $0xb0] sm:$0xf] }
 0x5c5   : > { %2973 = vrot.lane.b32.xlu1 %v2920_v44, %s5432_s26  ;;  %3717 = vrot.lane.b32.xlu0 %v2565_v46, %s5430_s15  ;;  %v5403_v44 = vld [vmem:[#allocation2 + $0xc0] sm:$0xf] }
 0x5c6   : > { %v2921_v16 = vrot.slane %v5403_v44, 4 }
 0x5c8   : > { %v2922_v22 = vsel %vm8510_vm3, %v2903_v62, %v2921_v16  ;;  %v5406_v16 = vld [vmem:[#allocation2 + $0xc8] sm:$0xf]  ;;  %vm8521_vm3 = vmmov %vm8508_vm2 }
 0x5c9   : > { %4038 = vrot.lane.b32.xlu1 %v2898_v14, %s5433_s27  ;;  %3721 = vrot.lane.b32.xlu0 %v6981_v11, %s5430_s15  ;;  %v4007_v14 = vsel %vm8504_vm8, %v2901_v29, %v4006_v43  ;;  %v5401_v29 = vld [vmem:[#allocation2 + $0xb0] sm:$0xf]  ;;  %v5404_v43 = vld [vmem:[#allocation2 + $0xc0] sm:$0xf]  ;;  %vm8509_vm8 = vmmov %vm8500_vm1 }
 0x5ca   : > { %v2917_v32 = vrot.slane %v5401_v29, 4  ;;  %v4008_v51 = vrot.slane %v5404_v43, 4  ;;  %v2923_v43 = vrot.slane %v5406_v16, 4  ;;  %v8522_v16 = vrot.slane %v6526_v6, 4 }
 0x5cc   : > { %v2918_v26 = vsel %vm8508_vm2, %v2899_v48, %v2917_v32  ;;  %v5405_v32 = vld [vmem:[#allocation2 + $0xc8] sm:$0xf] }
 0x5cd   : > { %2636 = vrot.lane.b32.xlu1 %v6983_v19, %s5426_s21  ;;  %3820 = vrot.lane.b32.xlu0 %v2565_v46, %s5431_s16  ;;  %v4004_v46 = vrot.slane %v5402_v35, 4  ;;  %v4010_v35 = vrot.slane %v5405_v32, 4  ;;  %v5407_v32 = vld [vmem:[#allocation2 + $0xd8] sm:$0xf] }
 0x5d1   : > { %2640 = vrot.lane.b32.xlu1 %v6985_v47, %s5426_s21  ;;  %3824 = vrot.lane.b32.xlu0 %v6981_v11, %s5431_s16 }
 0x5d5   : > { %3164 = vrot.lane.b32.xlu1 %v6983_v19, %s5428_s13  ;;  %4042 = vrot.lane.b32.xlu0 %v2902_v55, %s5433_s27  ;;  %v3987_v55 = vsel %vm8500_vm1, %v6588_v17, %v2899_v48  ;;  %v4005_v17 = vsel %vm8507_vm7, %v2899_v48, %v4004_v46  ;;  %vm8512_vm1 = vcmask 1048320   ;;  %v7111_v46 = vrot.slane %v6985_v47, 4  ;;  %vm8518_vm7 = vmmov %vm8508_vm2 }
 0x5d7   : > { %8514 = vst [vmem:[#allocation45_spill] sm:$0xff] %v7111_v46 }
 0x5d9   : > { %3723 = vrot.lane.b32.xlu1 %v6983_v19, %s5430_s15  ;;  %4060 = vrot.lane.b32.xlu0 %v4007_v14, %s5433_s27  ;;  %v4009_v14 = vsel %vm8509_vm8, %v2903_v62, %v4008_v51  ;;  %v2905_v62 = vrot.slane %v6983_v19, 4  ;;  %v7122_v51 = vrot.slane %v6992_v23, 4  ;;  %vm8340_vm8 = vcmask 424960  }
 0x5dd   : > { %3826 = vrot.lane.b32.xlu1 %v6983_v19, %s5431_s16  ;;  %4056 = vrot.lane.b32.xlu0 %v4003_v31, %s5433_s27 }
 0x5e1   : > { %4040 = vrot.lane.b32.xlu1 %v3987_v55, %s5433_s27  ;;  %2953 = vrot.lane.b32.xlu0 %v3987_v55, %s5432_s26 }
 0x5e5   : > { %4044 = vrot.lane.b32.xlu1 %v3991_v3, %s5433_s27  ;;  %2957 = vrot.lane.b32.xlu0 %v3991_v3, %s5432_s26 }
 0x5e9   : > { %4058 = vrot.lane.b32.xlu1 %v4005_v17, %s5433_s27  ;;  %2971 = vrot.lane.b32.xlu0 %v2918_v26, %s5432_s26  ;;  %v8517_v17 = vrot.slane %v6520_v4, 4  ;;  %v7139_v4 = vrot.slane %v6994_v37, 4 }
 0x5eb   : > { %v2910_v26 = vsel %vm8518_vm7, %v8517_v17, %v7111_v46 }
 0x5ed   : > { %4062 = vrot.lane.b32.xlu1 %v4009_v14, %s5433_s27  ;;  %2975 = vrot.lane.b32.xlu0 %v2922_v22, %s5432_s26 }
 0x5f1   : > { %2739 = vrot.lane.b32.xlu1 %v6983_v19, %s5427_s22  ;;  %3168 = vrot.lane.b32.xlu0 %v6985_v47, %s5428_s13 }
 0x5f5   : > { %2743 = vrot.lane.b32.xlu1 %v6985_v47, %s5427_s22  ;;  %2638 = vrot.lane.b32.xlu0 %v6992_v23, %s5426_s21 }
 0x5f9   : > { %3272 = vrot.lane.b32.xlu1 %v6983_v19, %s5429_s14  ;;  %2642 = vrot.lane.b32.xlu0 %v6994_v37, %s5426_s21  ;;  %v2906_v19 = vsel %vm8515_vm15, %v6634_v28, %v2905_v62  ;;  %v4011_v28 = vsel %vm8508_vm2, %v2905_v62, %v4010_v35  ;;  %v2924_v35 = vsel %vm8521_vm3, %v2905_v62, %v2923_v43  ;;  %v5408_v62 = vld [vmem:[#allocation2 + $0xd0] sm:$0xf] }
 0x5fa   : > { %v2925_v43 = vrot.slane %v5408_v62, 4 }
 0x5fd   : > { %3276 = vrot.lane.b32.xlu1 %v6985_v47, %s5429_s14  ;;  %2741 = vrot.lane.b32.xlu0 %v6992_v23, %s5427_s22 }
 0x601   : > { %2421 = vrot.lane.b32.xlu1 %v6994_v37, %s5424_s18  ;;  %2745 = vrot.lane.b32.xlu0 %v6994_v37, %s5427_s22 }
 0x605   : > { %3166 = vrot.lane.b32.xlu1 %v6992_v23, %s5428_s13  ;;  %3274 = vrot.lane.b32.xlu0 %v6992_v23, %s5429_s14 }
 0x607   : > { %v7098_v48 = vpop.permute.xlu1 %2628  ;;  %v2402_v31 = vpop.permute.xlu0 %2401 }
 0x608   : > { %8511 = vst [vmem:[#allocation43_spill] sm:$0xff] %v7098_v48  ;;  %2410 = vst.msk [vmem:[#allocation2 + $0x50] sm:$0xff] %vm8512_vm1, %v2402_v31  ;;  %v7136_v31 = vld [vmem:[%s8270_s5 + $0x8] sm:$0xff] }
 0x609   : > { %3170 = vrot.lane.b32.xlu1 %v6994_v37, %s5428_s13  ;;  %3278 = vrot.lane.b32.xlu0 %v6994_v37, %s5429_s14  ;;  %8520 = vst [vmem:[#allocation48_spill] sm:$0xff] %v7136_v31  ;;  %vm8523_vm1 = vmmov %vm8508_vm2 }
 0x60a   : > { %v2908_v17 = vsel %vm8523_vm1, %v8522_v16, %v7122_v51  ;;  %4806 = vmatprep.mubr.msk.f32.mxu1 %vm8340_vm8, %v7136_v31  ;;  %4803 = vmatprep.mubr.msk.f32.mxu0 %vm8340_vm8, %v7136_v31  ;;  %vm8524_vm15 = vmmov %vm8523_vm1  ;;  %vm8539_vm8 = vnez %v8387_v59 }
 0x60b   : > { %v7106_v55 = vpop.permute.xlu1 %2632  ;;  %v7108_v29 = vpop.permute.xlu0 %3264  ;;  %vm8526_vm7 = vmmov %vm8523_vm1 }
 0x60c   : > { %8513 = vst [vmem:[#allocation44_spill] sm:$0xff] %v7108_v29  ;;  %vm8527_vm2 = vmmov %vm8523_vm1 }
 0x60d   : > { %2959 = vrot.lane.b32.xlu1 %v2906_v19, %s5432_s26  ;;  %4046 = vrot.lane.b32.xlu0 %v2906_v19, %s5433_s27  ;;  %v2927_v19 = vrot.slane %v5407_v32, 4  ;;  %v8525_v32 = vrot.slane %v6528_v7, 4  ;;  %v2926_v62 = vsel %vm8527_vm2, %v7122_v51, %v2925_v43  ;;  %vm8528_vm3 = vmmov %vm8523_vm1  ;;  %vm8531_vm2 = vcmask 269312  }
 0x60f   : > { %v7117_v3 = vpop.permute.xlu1 %2731  ;;  %v7119_v44 = vpop.permute.xlu0 %3268  ;;  %v2928_v6 = vsel %vm8524_vm15, %v7111_v46, %v2927_v19  ;;  %v2912_v16 = vsel %vm8526_vm7, %v8525_v32, %v7139_v4  ;;  %v2563_v52 = vld [vmem:[#allocation2 + $0x50] sm:$0xff]  ;;  %v2930_v32 = vsel %vm8528_vm3, %v7139_v4, %v2929_v36  ;;  %vm8529_vm15 = vcmask 252928   ;;  %vm8532_vm3 = vmmov %vm8531_vm2 }
 0x610   : > { %8516 = vst [vmem:[#allocation46_spill] sm:$0xff] %v7117_v3  ;;  %vm8530_vm7 = vmmov %vm8529_vm15 }
 0x611   : > { %2963 = vrot.lane.b32.xlu1 %v2910_v26, %s5432_s26  ;;  %4064 = vrot.lane.b32.xlu0 %v4011_v28, %s5433_s27 }
 0x613   : > { %v2736_v14 = vpop.permute.xlu1 %2735  ;;  %v7131_v22 = vpop.permute.xlu0 %3156 }
 0x614   : > { %8519 = vst [vmem:[#allocation47_spill] sm:$0xff] %v7131_v22 }
 0x615   : > { %2977 = vrot.lane.b32.xlu1 %v2924_v35, %s5432_s26  ;;  %2961 = vrot.lane.b32.xlu0 %v2908_v17, %s5432_s26 }
 0x617   : > { %v7152_v26 = vpop.permute.xlu1 %3160  ;;  %v7154_v28 = vpop.permute.xlu0 %3715 }
 0x619   : > { %2981 = vrot.lane.b32.xlu1 %v2928_v6, %s5432_s26  ;;  %2965 = vrot.lane.b32.xlu0 %v2912_v16, %s5432_s26  ;;  %v2895_v6 = vrot.slane %v2563_v52, 4  ;;  %v2913_v16 = vrot.slane %v5410_v54, 4 }
 0x61b   : > { %v7164_v35 = vpop.permute.xlu1 %3719  ;;  %v7166_v17 = vpop.permute.xlu0 %3818 }
 0x61d   : > { %2979 = vrot.lane.b32.xlu0 %v2926_v62, %s5432_s26  ;;  %2729 = vrot.lane.b32.xlu1 %v2563_v52, %s5427_s22  ;;  %v2914_v62 = vsel %vm8523_vm1, %v2895_v6, %v2913_v16  ;;  %vm8533_vm1 = vnez %v8389_v63  ;;  %v7779_v63 = vld [vmem:[%s8270_s5] sm:$0xff] }
 0x61f   : > { %v7172_v7 = vpop.permute.xlu1 %3822  ;;  %v2631_v19 = vpop.permute.xlu0 %2630 }
 0x621   : > { %2983 = vrot.lane.b32.xlu0 %v2930_v32, %s5432_s26  ;;  %3290 = vrot.lane.b32.xlu1 %v6186_v33, %s5429_s14  ;;  %v2672_v32 = vsel %vm8529_vm15, %v7098_v48, %v2631_v19  ;;  %v7192_v33 = vsel %vm8530_vm7, %v2631_v19, %v7106_v55  ;;  %vm8536_vm15 = vcmask 1039360   ;;  %vm8537_vm7 = vcmask 7168   ;;  %v4175_v19 = vld [vmem:[#allocation3 + $0x10] sm:$0xff] }
 0x623   : > { %v7179_v43 = vpop.permute.xlu1 %3266  ;;  %v7181_v45 = vpop.permute.xlu0 %2634 }
 0x625   : > { %2626 = vrot.lane.b32.xlu0 %v2563_v52, %s5426_s21  ;;  %2967 = vrot.lane.b32.xlu1 %v2914_v62, %s5432_s26 }
 0x627   : > { %v7186_v2 = vpop.permute.xlu1 %3270  ;;  %v2734_v36 = vpop.permute.xlu0 %2733 }
 0x628   : > { %v2775_v54 = vsel %vm8531_vm2, %v7117_v3, %v2734_v36  ;;  %v7197_v22 = vsel %vm8532_vm3, %v2734_v36, %v2736_v14  ;;  %v8534_v36 = vsel %vm6340_vm11, %v6718_v53, %v6713_v50  ;;  %vm8538_vm2 = vcmask 252928  }
 0x629   : > { %v2823_v16 = vsel %vm6340_vm11, %v2672_v32, %v2775_v54  ;;  %v2824_v62 = vsel %vm6348_vm13, %v7192_v33, %v7197_v22  ;;  %v2847_v48 = vsel %vm6344_vm12, %v2775_v54, %v2672_v32  ;;  %3292 = vrot.lane.b32.xlu0 %v6275_v12, %s5429_s14  ;;  %3294 = vrot.lane.b32.xlu1 %v6277_v13, %s5429_s14 }
 0x62a   : > { %3066 = vst [vmem:[#allocation3 + $0x188] sm:$0xff] %v2847_v48  ;;  %v5193_v3 = vpack.c.bf16 %v2823_v16, %v8534_v36  ;;  %v3210_v54 = vsel %vm8536_vm15, %v6381_v9, %v6321_v34  ;;  %v3316_v12 = vsel %vm8537_vm7, %v6401_v21, %v6332_v49  ;;  %v7233_v13 = vsel %vm8538_vm2, %v7106_v55, %v7181_v45  ;;  %v7248_v16 = vld [vmem:[#allocation2 + $0x30] sm:$0xff]  ;;  %v8541_v55 = vld [vmem:[#allocation23_spill] sm:$0xff] }
 0x62b   : > { %v7220_v31 = vpop.permute.xlu1 %2951  ;;  %v7222_v32 = vpop.permute.xlu0 %2737  ;;  %vm8540_vm15 = vnez %v8391_v0  ;;  %v8544_v21 = vld [vmem:[#allocation11_spill] sm:$0xff]  ;;  %vm8545_vm7 = vcmask 1039360   ;;  %v3364_v48 = vsel %vm6340_vm11, %v3210_v54, %v3316_v12  ;;  %v5239_v46 = vpack.c.bf16 %v2824_v62, %v4175_v19 }
 0x62c   : > { %8535 = vst [vmem:[#allocation49_spill] sm:$0xff] %v7220_v31  ;;  %v7237_v50 = vsel %vm8532_vm3, %v2736_v14, %v7222_v32  ;;  %5194 = vmatprep.subr.bf16.mxu0 %v5193_v3  ;;  %v8542_v3 = vld [vmem:[#allocation22_spill] sm:$0xff]  ;;  %v3211_v9 = vsel %vm8545_vm7, %v6321_v34, %v8544_v21  ;;  %vm8548_vm2 = vcmask 7168  }
 0x62d   : > { %v2825_v53 = vsel %vm8539_vm8, %v7233_v13, %v7237_v50  ;;  %3262 = vrot.lane.b32.xlu0 %v2563_v52, %s5429_s14  ;;  %3707 = vrot.lane.b32.xlu1 %v7248_v16, %s5430_s15  ;;  %v8543_v14 = vsel %vm8539_vm8, %v8541_v55, %v8542_v3  ;;  %v3388_v52 = vsel %vm6344_vm12, %v3316_v12, %v3210_v54  ;;  %vm8549_vm3 = vmmov %vm8548_vm2  ;;  %v8550_v3 = vld [vmem:[#allocation21_spill] sm:$0xff]  ;;  %v3445_v12 = vrot.slane %v3364_v48, 4 }
 0x62e   : > { %v5237_v36 = vpack.c.bf16 %v2825_v53, %v8543_v14  ;;  %v3317_v53 = vsel %vm8548_vm2, %v6332_v49, %v8547_v8  ;;  %v3308_v55 = vsel %vm8549_vm3, %v7108_v29, %v7179_v43  ;;  %v8551_v14 = vrot.slane %v8550_v3, 4  ;;  %v7284_v49 = vld [vmem:[#allocation2 + $0x40] sm:$0xff]  ;;  %vm8554_vm2 = vmmov %vm8552_vm9 }
 0x62f   : > { %v7264_v39 = vpop.permute.xlu1 %2955  ;;  %v7266_v61 = vpop.permute.xlu0 %3158  ;;  %v3581_v29 = vrot.slane %v3388_v52, 4  ;;  %v8555_v52 = vld [vmem:[#allocation26_spill] sm:$0xff]  ;;  %vm8556_vm3 = vmmov %vm8554_vm2 }
 0x630   : > { %8546 = vst [vmem:[#allocation23_spill] sm:$0xff] %v7266_v61  ;;  %v3202_v34 = vsel %vm8545_vm7, %v7266_v61, %v7152_v26  ;;  %v2896_v54 = vsel %vm8552_vm9, %v8551_v14, %v2895_v6  ;;  %5238 = vmatprep.subr.bf16.mxu1 %v5237_v36  ;;  %v3365_v6 = vsel %vm6348_vm13, %v3211_v9, %v3317_v53  ;;  %vm8557_vm7 = vmmov %vm8554_vm2 }
 0x631   : > { %v3356_v62 = vsel %vm6340_vm11, %v3202_v34, %v3308_v55  ;;  %v3380_v19 = vsel %vm6344_vm12, %v3308_v55, %v3202_v34  ;;  %2949 = vrot.lane.b32.xlu0 %v2896_v54, %s5432_s26  ;;  %5240 = vmatpush1.bf16.msra.mxu1 %v5239_v46  ;;  %v3389_v36 = vsel %vm8533_vm1, %v3317_v53, %v3211_v9  ;;  %v8553_v34 = vld [vmem:[#allocation24_spill] sm:$0xff]  ;;  %s4816_s26 = sshll.u32 %s8798_s25, 6 }
 0x632   : > { %v3429_v42 = vrot.slane %v3356_v62, 4  ;;  %v3565_v61 = vrot.slane %v3380_v19, 4  ;;  %3711 = vrot.lane.b32.xlu1 %v7284_v49, %s5430_s15  ;;  %v3309_v62 = vsel %vm8558_vm10, %v7179_v43, %v7119_v44  ;;  %v8560_v53 = vld [vmem:[#allocation4_spill] sm:$0xff]  ;;  %v3583_v43 = vrot.slane %v3389_v36, 4  ;;  %vm8563_vm10 = vmmov %vm8554_vm2  ;;  %s8252_s12 = scalar_lea.vmem %s8272_s7, %s4816_s26 }
 0x633   : > { %v7293_v3 = vpop.permute.xlu1 %2969  ;;  %v7295_v55 = vpop.permute.xlu0 %3162 }
 0x634   : > { %v3430_v46 = vsel %vm8552_vm9, %v8553_v34, %v3429_v42  ;;  %v3446_v48 = vsel %vm8554_vm2, %v3429_v42, %v3445_v12  ;;  %v3566_v14 = vsel %vm8556_vm3, %v8555_v52, %v3565_v61  ;;  %v3582_v54 = vsel %vm8557_vm7, %v3565_v61, %v3581_v29  ;;  %vm8565_vm9 = vmmov %vm8554_vm2 }
 0x635   : > { %3492 = vst [vmem:[#allocation3 + $0x208] sm:$0xff] %v3430_v46  ;;  %3500 = vst [vmem:[#allocation3 + $0x248] sm:$0xff] %v3446_v48  ;;  %v3203_v9 = vsel %vm8559_vm14, %v7152_v26, %v7295_v55  ;;  %3296 = vrot.lane.b32.xlu0 %v8560_v53, %s5429_s14  ;;  %v3447_v29 = vrot.slane %v3365_v6, 4  ;;  %v7319_v26 = vld [vmem:[#allocation2 + $0x38] sm:$0xff]  ;;  %vm8566_vm3 = vcmask 777216  }
 0x636   : > { %3628 = vst [vmem:[#allocation3 + $0x348] sm:$0xff] %v3566_v14  ;;  %3636 = vst [vmem:[#allocation3 + $0x388] sm:$0xff] %v3582_v54  ;;  %v3357_v42 = vsel %vm6348_vm13, %v3203_v9, %v3309_v62  ;;  %v3381_v61 = vsel %vm8533_vm1, %v3309_v62, %v3203_v9  ;;  %3810 = vrot.lane.b32.xlu1 %v7248_v16, %s5431_s16  ;;  %v8561_v48 = vld [vmem:[#allocation25_spill] sm:$0xff]  ;;  %v8564_v54 = vld [vmem:[#allocation27_spill] sm:$0xff] }
 0x637   : > { %v3431_v19 = vrot.slane %v3357_v42, 4  ;;  %v3567_v12 = vrot.slane %v3381_v61, 4  ;;  %v7317_v34 = vpop.permute.xlu1 %2973  ;;  %v3718_v46 = vpop.permute.xlu0 %3717  ;;  %vm8562_vm14 = vmmov %vm8554_vm2 }
 0x638   : > { %v3760_v61 = vsel %vm8566_vm3, %v7154_v28, %v3718_v46  ;;  %vm8567_vm7 = vmmov %vm8566_vm3 }
 0x639   : > { %v7323_v52 = vsel %vm8562_vm14, %v8561_v48, %v3431_v19  ;;  %v7326_v14 = vsel %vm8563_vm10, %v3431_v19, %v3447_v29  ;;  %v7330_v62 = vsel %vm8565_vm9, %v8564_v54, %v3567_v12  ;;  %v7333_v6 = vsel %vm8554_vm2, %v3567_v12, %v3583_v43  ;;  %3709 = vrot.lane.b32.xlu0 %v7319_v26, %s5430_s15  ;;  %vm8574_vm9 = vmmov %vm8566_vm3 }
 0x63a   : > { %3814 = vrot.lane.b32.xlu1 %v7284_v49, %s5431_s16  ;;  %v3761_v29 = vsel %vm8567_vm7, %v3718_v46, %v7164_v35  ;;  %vm8568_vm14 = vcmask 793600   ;;  %v8570_v46 = vld [vmem:[#allocation5_spill] sm:$0xff] }
 0x63b   : > { %v7339_v36 = vpop.permute.xlu1 %4038  ;;  %v3722_v9 = vpop.permute.xlu0 %3721  ;;  %vm8569_vm10 = vmmov %vm8568_vm14 }
 0x63c   : > { %vm8576_vm2 = vmmov %vm8569_vm10 }
 0x63d   : > { %3713 = vrot.lane.b32.xlu0 %v6878_v5, %s5430_s15 }
 0x63e   : > { %3725 = vrot.lane.b32.xlu1 %v6992_v23, %s5430_s15 }
 0x63f   : > { %v7345_v53 = vpop.permute.xlu1 %2636  ;;  %v3821_v42 = vpop.permute.xlu0 %3820 }
 0x640   : > { %v3863_v43 = vsel %vm8568_vm14, %v7166_v17, %v3821_v42  ;;  %v3864_v19 = vsel %vm8569_vm10, %v3821_v42, %v7172_v7  ;;  %vm8582_vm14 = vcmask 1043456  }
 0x641   : > { %v3911_v12 = vsel %vm6383_vm4, %v3760_v61, %v3863_v43  ;;  %v3912_v48 = vsel %vm6340_vm11, %v3761_v29, %v3864_v19  ;;  %v3935_v54 = vsel %vm6387_vm5, %v3863_v43, %v3760_v61  ;;  %v3936_v28 = vsel %vm6344_vm12, %v3864_v19, %v3761_v29  ;;  %3812 = vrot.lane.b32.xlu0 %v7319_v26, %s5431_s16  ;;  %v8572_v61 = vld [vmem:[#allocation6_spill] sm:$0xff]  ;;  %vm8583_vm10 = vmmov %vm8582_vm14 }
 0x642   : > { %3959 = vst [vmem:[#allocation3 + $0x400] sm:$0xff] %v3911_v12  ;;  %3960 = vst [vmem:[#allocation3 + $0x408] sm:$0xff] %v3912_v48  ;;  %3729 = vrot.lane.b32.xlu1 %v6994_v37, %s5430_s15  ;;  %vm8571_vm11 = vcmask 1039360   ;;  %vm8573_vm12 = vcmask 7168   ;;  %v7377_v29 = vsel %vm8574_vm9, %v7164_v35, %v3722_v9  ;;  %v7391_v12 = vld [vmem:[#allocation2 + $0xd0] sm:$0xf]  ;;  %vm8623_vm5 = vnez %v8422_v27 }
 0x643   : > { %4155 = vst [vmem:[#allocation3 + $0x540] sm:$0xff] %v3935_v54  ;;  %4156 = vst [vmem:[#allocation3 + $0x548] sm:$0xff] %v3936_v28  ;;  %v7367_v17 = vpop.permute.xlu1 %2640  ;;  %v3825_v56 = vpop.permute.xlu0 %3824  ;;  %v3212_v42 = vsel %vm8571_vm11, %v8544_v21, %v8570_v46  ;;  %v3318_v57 = vsel %vm8573_vm12, %v8547_v8, %v8572_v61  ;;  %v8581_v46 = vld [vmem:[#allocation28_spill] sm:$0xff] }
 0x644   : > { %8575 = vst [vmem:[#allocation22_spill] sm:$0xff] %v7377_v29  ;;  %v7381_v43 = vsel %vm8576_vm2, %v7172_v7, %v3825_v56  ;;  %v3366_v8 = vsel %vm8539_vm8, %v3212_v42, %v3318_v57  ;;  %v3390_v35 = vsel %vm8540_vm15, %v3318_v57, %v3212_v42  ;;  %vm8578_vm3 = vmmov %vm8573_vm12 }
 0x645   : > { %8577 = vst [vmem:[#allocation11_spill] sm:$0xff] %v7381_v43  ;;  %3816 = vrot.lane.b32.xlu0 %v6878_v5, %s5431_s16  ;;  %v3310_v54 = vsel %vm8578_vm3, %v7119_v44, %v7186_v2  ;;  %vm8579_vm7 = vmmov %vm8571_vm11  ;;  %v3449_v42 = vrot.slane %v3366_v8, 4  ;;  %v3585_v57 = vrot.slane %v3390_v35, 4  ;;  %vm8588_vm3 = vcmask 785408  }
 0x646   : > { %3743 = vrot.lane.b32.xlu1 %v7391_v12, %s5430_s15  ;;  %vm8585_vm11 = vmmov %vm8583_vm10 }
 0x647   : > { %v7401_v7 = vpop.permute.xlu1 %3164  ;;  %v4043_v48 = vpop.permute.xlu0 %4042  ;;  %vm8586_vm12 = vmmov %vm8583_vm10 }
 0x648   : > { %v3204_v28 = vsel %vm8579_vm7, %v7295_v55, %v7401_v7  ;;  %vm8590_vm7 = vmmov %vm8588_vm3 }
 0x649   : > { %v3358_v21 = vsel %vm8539_vm8, %v3204_v28, %v3310_v54  ;;  %v3382_v19 = vsel %vm8540_vm15, %v3310_v54, %v3204_v28  ;;  %3727 = vrot.lane.b32.xlu0 %v6985_v47, %s5430_s15  ;;  %v8584_v28 = vld [vmem:[#allocation29_spill] sm:$0xff] }
 0x64a   : > { %v3433_v10 = vrot.slane %v3358_v21, 4  ;;  %v3569_v61 = vrot.slane %v3382_v19, 4  ;;  %3747 = vrot.lane.b32.xlu1 %v7413_v15, %s5430_s15  ;;  %v7435_v19 = vld [vmem:[#allocation2 + $0xd8] sm:$0xf] }
 0x64b   : > { %v7419_v44 = vpop.permute.xlu1 %3723  ;;  %v4061_v55 = vpop.permute.xlu0 %4060 }
 0x64c   : > { %8580 = vst [vmem:[#allocation14_spill] sm:$0xff] %v7419_v44  ;;  %v7423_v18 = vsel %vm8582_vm14, %v8581_v46, %v3433_v10  ;;  %v7426_v54 = vsel %vm8583_vm10, %v3433_v10, %v3449_v42  ;;  %v7430_v20 = vsel %vm8585_vm11, %v8584_v28, %v3569_v61  ;;  %v7433_v21 = vsel %vm8586_vm12, %v3569_v61, %v3585_v57  ;;  %v7451_v61 = vld [vmem:[#allocation2 + $0xe8] sm:$0xf]  ;;  %vm8595_vm11 = vmmov %vm8588_vm3 }
 0x64d   : > { %3745 = vrot.lane.b32.xlu0 %v7435_v19, %s5430_s15  ;;  %v7445_v10 = vsel %vm8574_vm9, %v3722_v9, %v7419_v44  ;;  %vm8592_vm14 = vcmask 261120   ;;  %v4192_v44 = vld [vmem:[#allocation3 + $0x98] sm:$0xff]  ;;  %vm8598_vm9 = vmmov %vm8588_vm3 }
 0x64e   : > { %3828 = vrot.lane.b32.xlu1 %v6992_v23, %s5431_s16  ;;  %vm8594_vm10 = vmmov %vm8592_vm14 }
 0x64f   : > { %v7441_v46 = vpop.permute.xlu1 %3826  ;;  %v4057_v8 = vpop.permute.xlu0 %4056  ;;  %vm8597_vm12 = vmmov %vm8594_vm10 }
 0x650   : > { %8587 = vst [vmem:[#allocation21_spill] sm:$0xff] %v7441_v46  ;;  %v7449_v35 = vsel %vm8576_vm2, %v3825_v56, %v7441_v46  ;;  %vm8600_vm2 = vmmov %vm8588_vm3 }
 0x651   : > { %3749 = vrot.lane.b32.xlu0 %v7451_v61, %s5430_s15 }
 0x652   : > { %3832 = vrot.lane.b32.xlu1 %v6994_v37, %s5431_s16 }
 0x653   : > { %v4041_v9 = vpop.permute.xlu1 %4040  ;;  %v2954_v56 = vpop.permute.xlu0 %2953 }
 0x654   : > { %v7467_v57 = vsel %vm8588_vm3, %v7339_v36, %v4041_v9  ;;  %v7470_v28 = vsel %vm8590_vm7, %v4041_v9, %v4043_v48  ;;  %v7474_v42 = vsel %vm8592_vm14, %v7220_v31, %v2954_v56  ;;  %v2995_v23 = vsel %vm8594_vm10, %v2954_v56, %v7264_v39  ;;  %v4191_v56 = vld [vmem:[#allocation3 + $0x90] sm:$0xff]  ;;  %vm8602_vm3 = vmmov %vm8594_vm10 }
 0x655   : > { %8589 = vst [vmem:[#allocation24_spill] sm:$0xff] %v7467_v57  ;;  %8591 = vst [vmem:[#allocation26_spill] sm:$0xff] %v7470_v28  ;;  %3830 = vrot.lane.b32.xlu0 %v6985_v47, %s5431_s16  ;;  %v5243_v31 = vpack.c.bf16 %v2995_v23, %v4191_v56  ;;  %v4216_v56 = vld [vmem:[#allocation3 + $0x158] sm:$0xff] }
 0x656   : > { %8593 = vst [vmem:[#allocation4_spill] sm:$0xff] %v7474_v42  ;;  %3846 = vrot.lane.b32.xlu1 %v7391_v12, %s5431_s16  ;;  %v3980_v42 = vrot.slane %v7248_v16, 4  ;;  %vm8603_vm7 = vmmov %vm8602_vm3  ;;  %v4215_v16 = vld [vmem:[#allocation3 + $0x150] sm:$0xff] }
 0x657   : > { %v7482_v37 = vpop.permute.xlu1 %4044  ;;  %v7484_v36 = vpop.permute.xlu0 %2957  ;;  %vm8604_vm14 = vmmov %vm8600_vm2 }
 0x658   : > { %v7488_v9 = vsel %vm8595_vm11, %v4043_v48, %v7482_v37  ;;  %v2996_v46 = vsel %vm8597_vm12, %v7264_v39, %v7484_v36  ;;  %vm8605_vm10 = vmmov %vm8602_vm3  ;;  %vm8607_vm11 = vcmask 252928   ;;  %vm8608_vm12 = vcmask 269312  }
 0x659   : > { %8596 = vst [vmem:[#allocation25_spill] sm:$0xff] %v7488_v9  ;;  %3848 = vrot.lane.b32.xlu0 %v7435_v19, %s5431_s16  ;;  %v5241_v47 = vpack.c.bf16 %v2996_v46, %v4192_v44 }
 0x65a   : > { %3850 = vrot.lane.b32.xlu1 %v7413_v15, %s5431_s16 }
 0x65b   : > { %v4059_v43 = vpop.permute.xlu1 %4058  ;;  %v2972_v29 = vpop.permute.xlu0 %2971  ;;  %5242 = vmatprep.subr.bf16.mxu1 %v5241_v47 }
 0x65c   : > { %v7499_v48 = vsel %vm8598_vm9, %v4057_v8, %v4059_v43  ;;  %v7502_v39 = vsel %vm8600_vm2, %v4059_v43, %v4061_v55  ;;  %v7506_v9 = vsel %vm8602_vm3, %v7293_v3, %v2972_v29  ;;  %v3003_v44 = vsel %vm8603_vm7, %v2972_v29, %v7317_v34  ;;  %5244 = vmatpush1.bf16.msra.mxu1 %v5243_v31 }
 0x65d   : > { %8599 = vst [vmem:[#allocation27_spill] sm:$0xff] %v7499_v48  ;;  %8601 = vst [vmem:[#allocation28_spill] sm:$0xff] %v7502_v39  ;;  %3852 = vrot.lane.b32.xlu0 %v7451_v61, %s5431_s16  ;;  %v3981_v43 = vrot.slane %v7319_v26, 4  ;;  %v3982_v29 = vrot.slane %v7284_v49, 4  ;;  %v5247_v57 = vpack.c.bf16 %v4215_v16, %v3003_v44  ;;  %v4232_v48 = vld [vmem:[#allocation3 + $0x1d8] sm:$0xff]  ;;  %v3983_v49 = vrot.slane %v6878_v5, 4 }
 0x65e   : > { %4030 = vrot.lane.b32.xlu1 %v3980_v42, %s5433_s27  ;;  %vm8609_vm9 = vnez %v8408_v40  ;;  %vm8610_vm2 = vnez %v8410_v41  ;;  %vm8611_vm3 = vcmask 1043456  }
 0x65f   : > { %v7518_v8 = vpop.permute.xlu1 %4062  ;;  %v7520_v23 = vpop.permute.xlu0 %2975  ;;  %vm8613_vm7 = vmmov %vm8611_vm3 }
 0x660   : > { %v7525_v31 = vsel %vm8604_vm14, %v4061_v55, %v7518_v8  ;;  %v3004_v47 = vsel %vm8605_vm10, %v7317_v34, %v7520_v23  ;;  %v8606_v34 = vsel %vm8540_vm15, %v7237_v50, %v7233_v13  ;;  %v3995_v50 = vsel %vm8611_vm3, %v3980_v42, %v7122_v51  ;;  %vm8614_vm14 = vmmov %vm8611_vm3 }
 0x661   : > { %4032 = vrot.lane.b32.xlu0 %v3981_v43, %s5433_s27  ;;  %v5245_v46 = vpack.c.bf16 %v4216_v56, %v3004_v47  ;;  %v5249_v39 = vpack.c.bf16 %v4232_v48, %v8606_v34  ;;  %v7545_v47 = vsel %vm8607_vm11, %v7181_v45, %v7345_v53  ;;  %v4231_v45 = vld [vmem:[#allocation3 + $0x1d0] sm:$0xff]  ;;  %v5253_v42 = vpack.c.bf16 %v7426_v54, %v7423_v18  ;;  %vm8615_vm10 = vmmov %vm8611_vm3 }
 0x662   : > { %4034 = vrot.lane.b32.xlu1 %v3982_v29, %s5433_s27  ;;  %v4012_v56 = vrot.slane %v7391_v12, 4  ;;  %v5255_v34 = vpack.c.bf16 %v7326_v14, %v7323_v52  ;;  %v4255_v12 = vld [vmem:[#allocation3 + $0x290] sm:$0xff]  ;;  %vm8617_vm3 = vcmask 269312  }
 0x663   : > { %v2740_v28 = vpop.permute.xlu1 %2739  ;;  %v7535_v55 = vpop.permute.xlu0 %3168  ;;  %5246 = vmatprep.subr.bf16.mxu1 %v5245_v46  ;;  %v5259_v54 = vpack.c.bf16 %v6977_v60, %v4255_v12  ;;  %v4295_v12 = vld [vmem:[#allocation3 + $0x3d0] sm:$0xff] }
 0x664   : > { %v7549_v44 = vsel %vm8608_vm12, %v7222_v32, %v2740_v28  ;;  %5248 = vmatpush1.bf16.msra.mxu1 %v5247_v57  ;;  %v8612_v32 = vsel %vm8533_vm1, %v7197_v22, %v7192_v33  ;;  %v4016_v22 = vrot.slane %v7413_v15, 4  ;;  %v4013_v18 = vsel %vm8614_vm14, %v7122_v51, %v4012_v56  ;;  %vm8616_vm12 = vmmov %vm8607_vm11  ;;  %v4296_v56 = vld [vmem:[#allocation3 + $0x3d8] sm:$0xff] }
 0x665   : > { %v2850_v13 = vsel %vm8610_vm2, %v7549_v44, %v7545_v47  ;;  %4036 = vrot.lane.b32.xlu0 %v3983_v49, %s5433_s27  ;;  %5250 = vmatprep.subr.bf16.mxu1 %v5249_v39  ;;  %v5251_v57 = vpack.c.bf16 %v4231_v45, %v8612_v32  ;;  %v3999_v39 = vsel %vm8613_vm7, %v3982_v29, %v7139_v4  ;;  %v4272_v29 = vld [vmem:[#allocation3 + $0x318] sm:$0xff]  ;;  %vm8618_vm7 = vmmov %vm8617_vm3 }
 0x666   : > { %3069 = vst [vmem:[#allocation3 + $0x1a0] sm:$0xff] %v2850_v13  ;;  %4048 = vrot.lane.b32.xlu1 %v3995_v50, %s5433_s27  ;;  %v4256_v13 = vld [vmem:[#allocation3 + $0x298] sm:$0xff]  ;;  %v4017_v15 = vsel %vm8615_vm10, %v7139_v4, %v4016_v22  ;;  %v5261_v14 = vpack.c.bf16 %v7430_v20, %v4272_v29  ;;  %vm8619_vm14 = vnez %v8414_v30  ;;  %vm8620_vm10 = vnez %v8418_v38 }
 0x667   : > { %v2744_v48 = vpop.permute.xlu1 %2743  ;;  %v2639_v46 = vpop.permute.xlu0 %2638  ;;  %v5257_v45 = vpack.c.bf16 %v6981_v11, %v4256_v13  ;;  %v4357_v13 = vld [vmem:[%s8271_s6] sm:$0xff]  ;;  %v5265_v22 = vpack.c.bf16 %v4296_v56, %v7433_v21  ;;  %v8624_v29 = vsel %vm8539_vm8, %v7445_v10, %v7449_v35  ;;  %v4336_v20 = vld [vmem:[#allocation3 + $0x518] sm:$0xff]  ;;  %v8750_v38 = vsel %vm8609_vm9, %v7545_v47, %v7549_v44 }
 0x668   : > { %5252 = vmatpush1.bf16.msra.mxu1 %v5251_v57  ;;  %v7591_v11 = vsel %vm8607_vm11, %v7345_v53, %v2639_v46  ;;  %v7595_v51 = vsel %vm8616_vm12, %v2639_v46, %v7367_v17  ;;  %v4271_v46 = vld [vmem:[#allocation3 + $0x310] sm:$0xff]  ;;  %vm8621_vm12 = vcmask 261120   ;;  %v5411_v44 = vld [vmem:[%s8270_s5 + $0x8] sm:$0xff] }
 0x669   : > { %5254 = vmatprep.subr.bf16.mxu1 %v5253_v42  ;;  %v5263_v42 = vpack.c.bf16 %v7330_v62, %v4271_v46 }
 0x66a   : > { %4052 = vrot.lane.b32.xlu1 %v3999_v39, %s5433_s27 }
 0x66b   : > { %v3273_v33 = vpop.permute.xlu1 %3272  ;;  %v2643_v50 = vpop.permute.xlu0 %2642 }
 0x66c   : > { %5256 = vmatpush1.bf16.msra.mxu1 %v5255_v34 }
 0x66d   : > { %5258 = vmatprep.subr.bf16.mxu1 %v5257_v45  ;;  %v7627_v45 = vsel %vm8607_vm11, %v7367_v17, %v2643_v50  ;;  %v5267_v17 = vpack.c.bf16 %v4295_v12, %v7333_v6  ;;  %v4312_v50 = vld [vmem:[#allocation3 + $0x458] sm:$0xff]  ;;  %vm8625_vm11 = vcmask 7168  }
 0x66e   : > { %4066 = vrot.lane.b32.xlu1 %v4013_v18, %s5433_s27 }
 0x66f   : > { %v7584_v32 = vpop.permute.xlu1 %3276  ;;  %v2742_v52 = vpop.permute.xlu0 %2741 }
 0x670   : > { %v7598_v57 = vsel %vm8617_vm3, %v2740_v28, %v2742_v52  ;;  %v7601_v60 = vsel %vm8618_vm7, %v2742_v52, %v2744_v48  ;;  %5260 = vmatpush1.bf16.msra.mxu1 %v5259_v54  ;;  %vm8622_vm7 = vnez %v8420_v25  ;;  %v5269_v52 = vpack.c.bf16 %v4312_v50, %v8624_v29  ;;  %v8629_v50 = vld [vmem:[#allocation22_spill] sm:$0xff] }
 0x671   : > { %v2828_v4 = vsel %vm6480_vm0, %v7595_v51, %v7601_v60  ;;  %5262 = vmatprep.subr.bf16.mxu1 %v5261_v14 }
 0x672   : > { %4070 = vrot.lane.b32.xlu1 %v4017_v15, %s5433_s27  ;;  %v3311_v15 = vsel %vm8625_vm11, %v7186_v2, %v3273_v33 }
 0x673   : > { %v2422_v39 = vpop.permute.xlu1 %2421  ;;  %v2746_v34 = vpop.permute.xlu0 %2745 }
 0x674   : > { %2430 = vst.msk [vmem:[#allocation2 + $0x98] sm:$0xff] %vm8621_vm12, %v2422_v39  ;;  %v7631_v18 = vsel %vm8617_vm3, %v2744_v48, %v2746_v34  ;;  %5264 = vmatpush1.bf16.msra.mxu1 %v5263_v42  ;;  %vm8626_vm12 = vcmask 1039360  }
 0x675   : > { %v2829_v62 = vsel %vm8622_vm7, %v7627_v45, %v7631_v18  ;;  %v2853_v21 = vsel %vm8623_vm5, %v7631_v18, %v7627_v45  ;;  %5266 = vmatprep.subr.bf16.mxu1 %v5265_v22  ;;  %vm8627_vm3 = vmmov %vm8626_vm12  ;;  %v8689_v18 = vld [vmem:[#allocation18_spill] sm:$0xff] }
 0x676   : > { %4360 = vperm.xlu1 %5392, %v4357_v13   ;;  %vm8628_vm5 = vmmov %vm8625_vm11  ;;  %v4311_v13 = vld [vmem:[#allocation3 + $0x450] sm:$0xff] }
 0x677   : > { %v3167_v54 = vpop.permute.xlu1 %3166  ;;  %v3275_v48 = vpop.permute.xlu0 %3274 }
 0x678   : > { %v3205_v14 = vsel %vm8626_vm12, %v7401_v7, %v3167_v54  ;;  %v3206_v46 = vsel %vm8627_vm3, %v3167_v54, %v7535_v55  ;;  %v3312_v6 = vsel %vm8628_vm5, %v3273_v33, %v3275_v48  ;;  %5268 = vmatpush1.bf16.msra.mxu1 %v5267_v17  ;;  %v8630_v54 = vld [vmem:[#allocation11_spill] sm:$0xff]  ;;  %vm8633_vm5 = vcmask 1043456  }
 0x679   : > { %v3359_v42 = vsel %vm8609_vm9, %v3205_v14, %v3311_v15  ;;  %v3383_v59 = vsel %vm8610_vm2, %v3311_v15, %v3205_v14  ;;  %v3360_v56 = vsel %vm6454_vm6, %v3206_v46, %v3312_v6  ;;  %v3384_v2 = vsel %vm8619_vm14, %v3312_v6, %v3206_v46  ;;  %5270 = vmatprep.subr.bf16.mxu1 %v5269_v52  ;;  %v8632_v15 = vld [vmem:[#allocation32_spill] sm:$0xff]  ;;  %v8634_v46 = vld [vmem:[#allocation33_spill] sm:$0xff]  ;;  %vm8635_vm8 = vmmov %vm8633_vm5 }
 0x67a   : > { %v7662_v7 = vrot.slane %v3359_v42, 4  ;;  %v7664_v39 = vrot.slane %v3383_v59, 4  ;;  %v7666_v34 = vrot.slane %v3360_v56, 4  ;;  %v7668_v33 = vrot.slane %v3384_v2, 4  ;;  %v8636_v42 = vld [vmem:[#allocation35_spill] sm:$0xff]  ;;  %vm8637_vm11 = vmmov %vm8633_vm5 }
 0x67b   : > { %v7670_v22 = vpop.permute.xlu1 %3170  ;;  %v3279_v12 = vpop.permute.xlu0 %3278  ;;  %v7672_v17 = vld [vmem:[#allocation2 + $0x98] sm:$0xff]  ;;  %v8631_v29 = vsel %vm6348_vm13, %v8629_v50, %v8630_v54  ;;  %vm8639_vm12 = vmmov %vm8633_vm5  ;;  %vm8640_vm13 = vcmask 7168   ;;  %v8656_v0 = vsel %vm8533_vm1, %v8630_v54, %v8629_v50  ;;  %v4180_v50 = vld [vmem:[#allocation3 + $0x38] sm:$0xff] }
 0x67c   : > { %v5271_v52 = vpack.c.bf16 %v4311_v13, %v8631_v29  ;;  %v7682_v14 = vsel %vm8633_vm5, %v8632_v15, %v7662_v7  ;;  %v7687_v6 = vsel %vm8635_vm8, %v8634_v46, %v7664_v39  ;;  %v7692_v59 = vsel %vm8637_vm11, %v8636_v42, %v7666_v34  ;;  %3172 = vrot.lane.b32.xlu0 %v7672_v17, %s5428_s13  ;;  %vm8641_vm5 = vmmov %vm8640_vm13 }
 0x67d   : > { %v7697_v56 = vsel %vm8639_vm12, %v8638_v58, %v7668_v33  ;;  %v3313_v2 = vsel %vm8640_vm13, %v3275_v48, %v7584_v32  ;;  %v3207_v13 = vsel %vm8627_vm3, %v7535_v55, %v7670_v22  ;;  %v7708_v29 = vsel %vm8641_vm5, %v7584_v32, %v3279_v12  ;;  %v8642_v55 = vld [vmem:[#allocation45_spill] sm:$0xff]  ;;  %vm8646_vm13 = vmmov %vm8635_vm8 }
 0x67e   : > { %5272 = vmatpush1.bf16.msra.mxu1 %v5271_v52  ;;  %v3361_v15 = vsel %vm6480_vm0, %v3207_v13, %v3313_v2  ;;  %v3385_v46 = vsel %vm8620_vm10, %v3313_v2, %v3207_v13  ;;  %v4014_v42 = vrot.slane %v7435_v19, 4  ;;  %v3997_v32 = vsel %vm8635_vm8, %v3981_v43, %v8642_v55  ;;  %v8645_v52 = vld [vmem:[#allocation36_spill] sm:$0xff]  ;;  %v8648_v13 = vld [vmem:[#allocation38_spill] sm:$0xff]  ;;  %vm8649_vm3 = vmmov %vm8635_vm8 }
 0x67f   : > { %v7715_v58 = vrot.slane %v3361_v15, 4  ;;  %v7717_v48 = vrot.slane %v3385_v46, 4  ;;  %v2960_v53 = vpop.permute.xlu1 %2959  ;;  %v7719_v16 = vpop.permute.xlu0 %4046  ;;  %vm8643_vm11 = vcmask 261120   ;;  %vm8644_vm12 = vcmask 785408   ;;  %vm8650_vm5 = vmmov %vm8649_vm3 }
 0x680   : > { %v7727_v12 = vsel %vm8643_vm11, %v7484_v36, %v2960_v53  ;;  %v4086_v19 = vsel %vm8644_vm12, %v7482_v37, %v7719_v16  ;;  %4050 = vrot.lane.b32.xlu0 %v3997_v32, %s5433_s27  ;;  %v4015_v36 = vsel %vm8650_vm5, %v8642_v55, %v4014_v42  ;;  %vm8651_vm8 = vmmov %vm8644_vm12  ;;  %v8652_v32 = vld [vmem:[#allocation25_spill] sm:$0xff] }
 0x681   : > { %v7736_v2 = vsel %vm8646_vm13, %v8645_v52, %v7715_v58  ;;  %v3576_v26 = vsel %vm8649_vm3, %v8648_v13, %v7717_v48  ;;  %v5275_v52 = vpack.c.bf16 %v7525_v31, %v8652_v32  ;;  %vm8654_vm12 = vmmov %vm8643_vm11  ;;  %v4335_v31 = vld [vmem:[#allocation3 + $0x510] sm:$0xff] }
 0x682   : > { %8647 = vst [vmem:[#allocation29_spill] sm:$0xff] %v7736_v2  ;;  %3633 = vst [vmem:[#allocation3 + $0x370] sm:$0xff] %v3576_v26  ;;  %v8653_v26 = vsel %vm8540_vm15, %v7449_v35, %v7445_v10  ;;  %v5279_v10 = vpack.c.bf16 %v8656_v0, %v4335_v31  ;;  %v4000_v35 = vrot.slane %v7672_v17, 4  ;;  %v4179_v32 = vld [vmem:[#allocation3 + $0x30] sm:$0xff]  ;;  %v8734_v2 = vld [vmem:[#allocation24_spill] sm:$0xff] }
 0x683   : > { %v2964_v43 = vpop.permute.xlu1 %2963  ;;  %v7741_v15 = vpop.permute.xlu0 %4064  ;;  %v5277_v42 = vpack.c.bf16 %v8653_v26, %v4336_v20  ;;  %vm8655_vm13 = vmmov %vm8643_vm11  ;;  %v5327_v5 = vpack.c.bf16 %v2828_v4, %v4179_v32  ;;  %v4018_v26 = vrot.slane %v7451_v61, 4 }
 0x684   : > { %v4094_v37 = vsel %vm8651_vm8, %v7518_v8, %v7741_v15  ;;  %4068 = vrot.lane.b32.xlu0 %v4015_v36, %s5433_s27  ;;  %vm8657_vm15 = vmmov %vm8643_vm11  ;;  %v4352_v36 = vld [vmem:[#allocation3 + $0x598] sm:$0xf] }
 0x685   : > { %v5273_v46 = vpack.c.bf16 %v4094_v37, %v4086_v19  ;;  %vm8658_vm1 = vmmov %vm8649_vm3 }
 0x686   : > { %vm8659_vm5 = vmmov %vm8643_vm11 }
 0x687   : > { %v2978_v28 = vpop.permute.xlu1 %2977  ;;  %v2962_v13 = vpop.permute.xlu0 %2961  ;;  %5274 = vmatprep.subr.bf16.mxu1 %v5273_v46  ;;  %v4001_v46 = vsel %vm8658_vm1, %v3983_v49, %v4000_v35  ;;  %vm8660_vm8 = vmmov %vm8659_vm5  ;;  %v4196_v49 = vld [vmem:[#allocation3 + $0xb8] sm:$0xff] }
 0x688   : > { %v7758_v55 = vsel %vm8643_vm11, %v7520_v23, %v2978_v28  ;;  %v7761_v8 = vsel %vm8654_vm12, %v2960_v53, %v2962_v13  ;;  %v2999_v19 = vsel %vm8655_vm13, %v2962_v13, %v2964_v43  ;;  %3731 = vrot.lane.b32.xlu0 %v7672_v17, %s5430_s15  ;;  %5276 = vmatpush1.bf16.msra.mxu1 %v5275_v52  ;;  %vm8661_vm11 = vmmov %vm8658_vm1  ;;  %vm8663_vm12 = vcmask 424960  }
 0x689   : > { %5278 = vmatprep.subr.bf16.mxu1 %v5277_v42  ;;  %vm8664_vm13 = vmmov %vm8658_vm1 }
 0x68a   : > { %v4019_v0 = vsel %vm8664_vm13, %v4000_v35, %v4018_v26  ;;  %vm8670_vm1 = vmmov %vm8659_vm5  ;;  %v8671_v26 = vld [vmem:[#allocation46_spill] sm:$0xff]  ;;  %vm8677_vm13 = vcmask 252928  }
 0x68b   : > { %v2982_v23 = vpop.permute.xlu1 %2981  ;;  %v2966_v20 = vpop.permute.xlu0 %2965 }
 0x68c   : > { %v3000_v53 = vsel %vm8657_vm15, %v2964_v43, %v2966_v20  ;;  %3834 = vrot.lane.b32.xlu0 %v7672_v17, %s5431_s16  ;;  %5280 = vmatpush1.bf16.msra.mxu1 %v5279_v10  ;;  %v4351_v43 = vld [vmem:[#allocation3 + $0x590] sm:$0xf]  ;;  %v5325_v17 = vpack.c.bf16 %v2829_v62, %v4180_v50  ;;  %v8662_v62 = vld [vmem:[#allocation48_spill] sm:$0xff]  ;;  %v8665_v20 = vld [vmem:[#allocation17_spill] sm:$0xff]  ;;  %vm8667_vm15 = vcmask 1039360  }
 0x68d   : > { %4804 = vmatprep.subr.msk.mxu1 %vm8649_vm3, %v4352_v36  ;;  %v4195_v10 = vld [vmem:[#allocation3 + $0xb0] sm:$0xff]  ;;  %v8666_v36 = vld [vmem:[#allocation5_spill] sm:$0xff]  ;;  %vm8669_vm3 = vcmask 7168  }
 0x68e   : > { %v3213_v4 = vsel %vm8667_vm15, %v8666_v36, %v8665_v20  ;;  %v8668_v50 = vld [vmem:[#allocation6_spill] sm:$0xff]  ;;  %v8676_v36 = vld [vmem:[#allocation43_spill] sm:$0xff] }
 0x68f   : > { %v2730_v54 = vpop.permute.xlu1 %2729  ;;  %v2980_v37 = vpop.permute.xlu0 %2979 }
 0x690   : > { %v7790_v52 = vsel %vm8659_vm5, %v2978_v28, %v2980_v37  ;;  %v3007_v13 = vsel %vm8660_vm8, %v2980_v37, %v2982_v23  ;;  %4054 = vrot.lane.b32.xlu0 %v4001_v46, %s5433_s27  ;;  %4805 = vmatpush1.msk.msra.mxu1 %vm8661_vm11, %v4351_v43  ;;  %v5329_v28 = vpack.c.bf16 %v3000_v53, %v4196_v49  ;;  %v4220_v46 = vld [vmem:[#allocation3 + $0x178] sm:$0xff]  ;;  %v4219_v49 = vld [vmem:[#allocation3 + $0x170] sm:$0xff]  ;;  %vm8672_vm5 = vcmask 269312   ;;  %vm8673_vm8 = vmmov %vm8661_vm11 }
 0x691   : > { %4527 = vmatmul.mubr.f32.vlgmr.msra.gmra.mrb[24].mxu1 %v7779_v63  ;;  %5326 = vmatprep.subr.bf16.mxu1 %v5325_v17  ;;  %v5331_v53 = vpack.c.bf16 %v2999_v19, %v4195_v10  ;;  %v5335_v19 = vpack.c.bf16 %v4219_v49, %v3007_v13  ;;  %vm8674_vm11 = vmmov %vm8673_vm8  ;;  %v8707_v13 = vld [vmem:[#allocation49_spill] sm:$0xff] }
 0x692   : > { %5328 = vmatpush1.bf16.msra.mxu1 %v5327_v5  ;;  %4812 = vmatprep.mubr.msk.f32.mxu1 %vm8663_vm12, %v8662_v62  ;;  %vm8675_vm12 = vmmov %vm8670_vm1 }
 0x693   : > { %v3291_v42 = vpop.permute.xlu1 %3290  ;;  %v2984_v31 = vpop.permute.xlu0 %2983  ;;  %5330 = vmatprep.subr.bf16.mxu1 %v5329_v28  ;;  %v7818_v28 = vsel %vm8672_vm5, %v2730_v54, %v8671_v26  ;;  %v4235_v26 = vld [vmem:[#allocation3 + $0x1f0] sm:$0xff]  ;;  %vm8688_vm5 = vcmask 7168  }
 0x694   : > { %v3319_v61 = vsel %vm8669_vm3, %v8668_v50, %v3291_v42  ;;  %v3008_v37 = vsel %vm8670_vm1, %v2982_v23, %v2984_v31  ;;  %4072 = vrot.lane.b32.xlu0 %v4019_v0, %s5433_s27  ;;  %vm8681_vm3 = vnez %v8422_v27  ;;  %vm8684_vm1 = vcmask 1039360  }
 0x695   : > { %v3367_v43 = vsel %vm8609_vm9, %v3213_v4, %v3319_v61  ;;  %v3391_v35 = vsel %vm8610_vm2, %v3319_v61, %v3213_v4  ;;  %v5333_v17 = vpack.c.bf16 %v4220_v46, %v3008_v37  ;;  %v4236_v4 = vld [vmem:[#allocation3 + $0x1f8] sm:$0xff]  ;;  %v4173_v61 = vld [vmem:[#allocation3] sm:$0xff]  ;;  %v4190_v46 = vld [vmem:[#allocation3 + $0x88] sm:$0xff] }
 0x696   : > { %v3451_v32 = vrot.slane %v3367_v43, 4  ;;  %v3587_v5 = vrot.slane %v3391_v35, 4  ;;  %5332 = vmatpush1.bf16.msra.mxu1 %v5331_v53  ;;  %v8682_v43 = vld [vmem:[#allocation7_spill] sm:$0xff]  ;;  %v8683_v35 = vld [vmem:[#allocation10_spill] sm:$0xff] }
 0x697   : > { %v2968_v23 = vpop.permute.xlu1 %2967  ;;  %v2627_v62 = vpop.permute.xlu0 %2626  ;;  %5334 = vmatprep.subr.bf16.mxu1 %v5333_v17  ;;  %v3209_v17 = vsel %vm8684_vm1, %v8683_v35, %v8682_v43 }
 0x698   : > { %v7822_v31 = vsel %vm8673_vm8, %v7662_v7, %v3451_v32  ;;  %v7826_v0 = vsel %vm8674_vm11, %v7664_v39, %v3587_v5  ;;  %v7830_v10 = vsel %vm8675_vm12, %v2968_v23, %v7293_v3  ;;  %v7834_v54 = vsel %vm8677_vm13, %v2627_v62, %v8676_v36  ;;  %v8679_v7 = vld [vmem:[#allocation9_spill] sm:$0xff]  ;;  %v8685_v5 = vld [vmem:[#allocation4_spill] sm:$0xff]  ;;  %vm8690_vm8 = vmmov %vm8684_vm1 }
 0x699   : > { %v2822_v50 = vsel %vm6383_vm4, %v7834_v54, %v7818_v28  ;;  %vm8680_vm15 = vnez %v8679_v7  ;;  %v5337_v3 = vpack.c.bf16 %v4236_v4, %v2853_v21  ;;  %v5197_v49 = vpack.c.bf16 %v8685_v5, %v4190_v46  ;;  %v8686_v23 = vld [vmem:[#allocation13_spill] sm:$0xff]  ;;  %v8687_v62 = vld [vmem:[#allocation12_spill] sm:$0xff]  ;;  %vm8691_vm11 = vmmov %vm8688_vm5 }
 0x69a   : > { %v2846_v39 = vsel %vm8680_vm15, %v7818_v28, %v7834_v54  ;;  %5336 = vmatpush1.bf16.msra.mxu1 %v5335_v19  ;;  %v5195_v53 = vpack.c.bf16 %v2822_v50, %v4173_v61  ;;  %v3315_v45 = vsel %vm8688_vm5, %v8687_v62, %v8686_v23  ;;  %v3214_v21 = vsel %vm8690_vm8, %v8665_v20, %v8689_v18  ;;  %vm8694_vm12 = vmmov %vm8684_vm1  ;;  %v8696_v62 = vld [vmem:[#allocation23_spill] sm:$0xff]  ;;  %v4278_v7 = vld [vmem:[#allocation3 + $0x348] sm:$0xff] }
 0x69b   : > { %v3293_v32 = vpop.permute.xlu0 %3292  ;;  %5338 = vmatprep.subr.bf16.mxu1 %v5337_v3  ;;  %v3295_v19 = vpop.permute.xlu1 %3294  ;;  %v8692_v4 = vsel %vm8620_vm10, %v7601_v60, %v7595_v51  ;;  %v8693_v3 = vld [vmem:[#allocation19_spill] sm:$0xff]  ;;  %vm8695_vm13 = vmmov %vm8688_vm5  ;;  %v3363_v35 = vsel %vm6383_vm4, %v3209_v17, %v3315_v45  ;;  %vm8698_vm5 = vcmask 1043456  }
 0x69c   : > { %v3320_v36 = vsel %vm8691_vm11, %v3291_v42, %v3293_v32  ;;  %5196 = vmatpush1.bf16.msra.mxu0 %v5195_v53  ;;  %v5339_v50 = vpack.c.bf16 %v4235_v26, %v8692_v4  ;;  %v3215_v61 = vsel %vm8694_vm12, %v8689_v18, %v8693_v3  ;;  %v3321_v46 = vsel %vm8695_vm13, %v3293_v32, %v3295_v19  ;;  %vm8699_vm8 = vmmov %vm8698_vm5 }
 0x69d   : > { %v3368_v43 = vsel %vm6454_vm6, %v3214_v21, %v3320_v36  ;;  %v3392_v20 = vsel %vm8619_vm14, %v3320_v36, %v3214_v21  ;;  %5198 = vmatprep.subr.bf16.mxu0 %v5197_v49  ;;  %v3369_v42 = vsel %vm6480_vm0, %v3215_v61, %v3321_v46  ;;  %v3393_v51 = vsel %vm8620_vm10, %v3321_v46, %v3215_v61  ;;  %v8697_v49 = vld [vmem:[#allocation47_spill] sm:$0xff]  ;;  %vm8701_vm12 = vmmov %vm8698_vm5 }
 0x69e   : > { %v3453_v60 = vrot.slane %v3368_v43, 4  ;;  %v3589_v53 = vrot.slane %v3392_v20, 4  ;;  %5340 = vmatpush1.bf16.msra.mxu1 %v5339_v50  ;;  %v3387_v32 = vsel %vm8680_vm15, %v3315_v45, %v3209_v17  ;;  %v3455_v5 = vrot.slane %v3369_v42, 4  ;;  %v8700_v50 = vld [vmem:[#allocation44_spill] sm:$0xff]  ;;  %vm8703_vm13 = vmmov %vm8698_vm5 }
 0x69f   : > { %v3591_v26 = vrot.slane %v3393_v51, 4  ;;  %v3263_v23 = vpop.permute.xlu0 %3262  ;;  %v3201_v18 = vsel %vm8684_vm1, %v8697_v49, %v8696_v62  ;;  %v3708_v4 = vpop.permute.xlu1 %3707  ;;  %v3443_v46 = vrot.slane %v3363_v35, 4  ;;  %v3579_v42 = vrot.slane %v3387_v32, 4  ;;  %vm8705_vm1 = vmmov %vm8698_vm5  ;;  %v4253_v20 = vld [vmem:[#allocation3 + $0x280] sm:$0xff] }
 0x6a0   : > { %v7888_v21 = vsel %vm8698_vm5, %v7666_v34, %v3453_v60  ;;  %v7892_v36 = vsel %vm8699_vm8, %v7668_v33, %v3589_v53  ;;  %v3307_v61 = vsel %vm8691_vm11, %v3263_v23, %v8700_v50  ;;  %v7898_v17 = vsel %vm8701_vm12, %v7715_v58, %v3455_v5  ;;  %v8704_v58 = vld [vmem:[#allocation39_spill] sm:$0xff]  ;;  %vm8706_vm5 = vmmov %vm8705_vm1  ;;  %v8709_v23 = vld [vmem:[#allocation40_spill] sm:$0xff] }
 0x6a1   : > { %8702 = vst [vmem:[#allocation22_spill] sm:$0xff] %v7898_v17  ;;  %v7902_v45 = vsel %vm8703_vm13, %v7717_v48, %v3591_v26  ;;  %v3355_v34 = vsel %vm6383_vm4, %v3201_v18, %v3307_v61  ;;  %v3379_v33 = vsel %vm8680_vm15, %v3307_v61, %v3201_v18  ;;  %vm8708_vm4 = vcmask 261120   ;;  %v4189_v26 = vld [vmem:[#allocation3 + $0x80] sm:$0xff]  ;;  %vm8710_vm8 = vmmov %vm8705_vm1  ;;  %v4214_v18 = vld [vmem:[#allocation3 + $0x148] sm:$0xff] }
 0x6a2   : > { %v3427_v43 = vrot.slane %v3355_v34, 4  ;;  %v3563_v51 = vrot.slane %v3379_v33, 4  ;;  %vm8711_vm11 = vmmov %vm8705_vm1  ;;  %v5201_v50 = vpack.c.bf16 %v4214_v18, %v7506_v9  ;;  %v4222_v34 = vld [vmem:[#allocation3 + $0x188] sm:$0xff]  ;;  %vm8712_vm12 = vcmask 7168  }
 0x6a3   : > { %v2950_v60 = vpop.permute.xlu0 %2949  ;;  %vm8714_vm13 = vcmask 777216   ;;  %v4230_v9 = vld [vmem:[#allocation3 + $0x1c8] sm:$0xff] }
 0x6a4   : > { %v3428_v53 = vsel %vm8705_vm1, %v8704_v58, %v3427_v43  ;;  %v3444_v48 = vsel %vm8706_vm5, %v3427_v43, %v3443_v46  ;;  %v7913_v5 = vpop.permute.xlu1 %3711  ;;  %v2993_v35 = vsel %vm8708_vm4, %v2950_v60, %v8707_v13  ;;  %v7919_v62 = vsel %vm8710_vm8, %v8709_v23, %v3563_v51  ;;  %v4213_v43 = vld [vmem:[#allocation3 + $0x140] sm:$0xff]  ;;  %v8713_v60 = vld [vmem:[#allocation30_spill] sm:$0xff]  ;;  %v8716_v13 = vld [vmem:[#allocation31_spill] sm:$0xff] }
 0x6a5   : > { %v7922_v49 = vsel %vm8711_vm11, %v3563_v51, %v3579_v42  ;;  %v5199_v32 = vpack.c.bf16 %v2993_v35, %v4189_v26  ;;  %v7930_v58 = vsel %vm8714_vm13, %v8713_v60, %v3708_v4  ;;  %vm8717_vm1 = vcmask 793600   ;;  %v4246_v18 = vld [vmem:[#allocation3 + $0x248] sm:$0xff]  ;;  %vm8719_vm5 = vmmov %vm8714_vm13 }
 0x6a6   : > { %8715 = vst [vmem:[#allocation11_spill] sm:$0xff] %v7930_v58  ;;  %v5203_v51 = vpack.c.bf16 %v4213_v43, %v7830_v10  ;;  %v5205_v26 = vpack.c.bf16 %v4230_v9, %v4222_v34  ;;  %v4262_v34 = vld [vmem:[#allocation3 + $0x2c8] sm:$0xff]  ;;  %vm8720_vm15 = vmmov %vm8719_vm5 }
 0x6a7   : > { %v3297_v61 = vpop.permute.xlu0 %3296  ;;  %5200 = vmatpush1.bf16.msra.mxu0 %v5199_v32  ;;  %v4238_v32 = vld [vmem:[#allocation3 + $0x208] sm:$0xff]  ;;  %vm8721_vm4 = vmmov %vm8717_vm1 }
 0x6a8   : > { %v3811_v46 = vpop.permute.xlu1 %3810  ;;  %v7926_v33 = vsel %vm8712_vm12, %v3295_v19, %v3297_v61  ;;  %5202 = vmatprep.subr.bf16.mxu0 %v5201_v50  ;;  %v4229_v61 = vld [vmem:[#allocation3 + $0x1c0] sm:$0xff]  ;;  %v5209_v60 = vpack.c.bf16 %v4246_v18, %v4238_v32  ;;  %v5211_v19 = vpack.c.bf16 %v3444_v48, %v3428_v53  ;;  %vm8722_vm8 = vmmov %vm8717_vm1 }
 0x6a9   : > { %v7934_v42 = vsel %vm8717_vm1, %v8716_v13, %v3811_v46  ;;  %v5207_v43 = vpack.c.bf16 %v4229_v61, %v2846_v39  ;;  %v4286_v61 = vld [vmem:[#allocation3 + $0x388] sm:$0xff]  ;;  %vm8724_vm11 = vmmov %vm8719_vm5 }
 0x6aa   : > { %8718 = vst [vmem:[#allocation32_spill] sm:$0xff] %v7934_v42  ;;  %v3907_v35 = vsel %vm8609_vm9, %v7930_v58, %v7934_v42  ;;  %vm8725_vm12 = vmmov %vm8717_vm1  ;;  %v8733_v42 = vld [vmem:[#allocation27_spill] sm:$0xff] }
 0x6ab   : > { %v3710_v23 = vpop.permute.xlu0 %3709  ;;  %5204 = vmatpush1.bf16.msra.mxu0 %v5203_v51  ;;  %v7946_v50 = vpack.c.bf16 %v3907_v35, %v7826_v0  ;;  %v4261_v51 = vld [vmem:[#allocation3 + $0x2c0] sm:$0xff]  ;;  %v4254_v0 = vld [vmem:[#allocation3 + $0x288] sm:$0xff]  ;;  %vm8727_vm13 = vmmov %vm8719_vm5 }
 0x6ac   : > { %v3815_v10 = vpop.permute.xlu1 %3814  ;;  %5206 = vmatprep.subr.bf16.mxu0 %v5205_v26  ;;  %v5213_v35 = vpack.c.bf16 %v4262_v34, %v4254_v0  ;;  %v5215_v37 = vpack.c.bf16 %v4261_v51, %v4253_v20  ;;  %v7956_v58 = vsel %vm8719_vm5, %v3708_v4, %v3710_v23  ;;  %v7960_v28 = vsel %vm8720_vm15, %v3710_v23, %v7913_v5  ;;  %v4269_v51 = vld [vmem:[#allocation3 + $0x300] sm:$0xff]  ;;  %vm8736_vm15 = vmmov %vm8719_vm5 }
 0x6ad   : > { %v4333_v20 = vld [vmem:[#allocation3 + $0x500] sm:$0xff] }
 0x6af   : > { %v3714_v13 = vpop.permute.xlu0 %3713  ;;  %5208 = vmatpush1.bf16.msra.mxu0 %v5207_v43 }
 0x6b0   : > { %v7953_v9 = vpop.permute.xlu1 %3725  ;;  %5210 = vmatprep.subr.bf16.mxu0 %v5209_v60  ;;  %v7991_v43 = vsel %vm8724_vm11, %v7913_v5, %v3714_v13  ;;  %v4294_v5 = vld [vmem:[#allocation3 + $0x3c8] sm:$0xff]  ;;  %vm8739_vm11 = vmmov %vm8717_vm1 }
 0x6b1   : > { %v5221_v13 = vpack.c.bf16 %v4294_v5, %v4286_v61 }
 0x6b3   : > { %v3813_v26 = vpop.permute.xlu0 %3812  ;;  %5212 = vmatpush1.bf16.msra.mxu0 %v5211_v19  ;;  %v4270_v19 = vld [vmem:[#allocation3 + $0x308] sm:$0xff] }
 0x6b4   : > { %v7962_v54 = vpop.permute.xlu1 %3729  ;;  %v7965_v39 = vsel %vm8721_vm4, %v3811_v46, %v3813_v26  ;;  %v7968_v53 = vsel %vm8722_vm8, %v3813_v26, %v3815_v10  ;;  %5214 = vmatprep.subr.bf16.mxu0 %v5213_v35  ;;  %v5217_v23 = vpack.c.bf16 %v4278_v7, %v4270_v19  ;;  %v4293_v7 = vld [vmem:[#allocation3 + $0x3c0] sm:$0xff]  ;;  %v4310_v19 = vld [vmem:[#allocation3 + $0x448] sm:$0xff]  ;;  %v8732_v46 = vld [vmem:[#allocation15_spill] sm:$0xff] }
 0x6b5   : > { %v3909_v4 = vsel %vm6480_vm0, %v7960_v28, %v7968_v53  ;;  %vm8737_vm4 = vmmov %vm8719_vm5 }
 0x6b6   : > { %v7987_v32 = vpack.c.bf16 %v3909_v4, %v7902_v45  ;;  %v5219_v45 = vpack.c.bf16 %v7919_v62, %v4269_v51  ;;  %v5223_v4 = vpack.c.bf16 %v4293_v7, %v7922_v49  ;;  %v8726_v62 = vld [vmem:[#allocation14_spill] sm:$0xff]  ;;  %v8728_v51 = vld [vmem:[#allocation21_spill] sm:$0xff]  ;;  %vm8738_vm8 = vmmov %vm8717_vm1 }
 0x6b7   : > { %v3817_v18 = vpop.permute.xlu0 %3816  ;;  %5216 = vmatpush1.bf16.msra.mxu0 %v5215_v37  ;;  %v4309_v37 = vld [vmem:[#allocation3 + $0x440] sm:$0xff]  ;;  %v8011_v61 = vsel %vm8727_vm13, %v8726_v62, %v7953_v9  ;;  %v4342_v7 = vld [vmem:[#allocation3 + $0x548] sm:$0xff]  ;;  %vm8742_vm13 = vmmov %vm8737_vm4 }
 0x6b8   : > { %8723 = vst [vmem:[#allocation33_spill] sm:$0xff] %v7987_v32  ;;  %v3744_v60 = vpop.permute.xlu1 %3743  ;;  %v7994_v34 = vsel %vm8725_vm12, %v3815_v10, %v3817_v18  ;;  %5218 = vmatprep.subr.bf16.mxu0 %v5217_v23  ;;  %v4302_v10 = vld [vmem:[#allocation3 + $0x408] sm:$0xff]  ;;  %v4301_v18 = vld [vmem:[#allocation3 + $0x400] sm:$0xff]  ;;  %vm8741_vm12 = vmmov %vm8717_vm1 }
 0x6b9   : > { %v5225_v23 = vpack.c.bf16 %v4310_v19, %v4302_v10  ;;  %v5227_v5 = vpack.c.bf16 %v4309_v37, %v4301_v18  ;;  %v8729_v19 = vld [vmem:[#allocation28_spill] sm:$0xff]  ;;  %v4334_v18 = vld [vmem:[#allocation3 + $0x508] sm:$0xff]  ;;  %v3772_v49 = vsel %vm8719_vm5, %v8732_v46, %v3744_v60  ;;  %vm8745_vm5 = vmmov %vm8738_vm8 }
 0x6ba   : > { %v4341_v37 = vld [vmem:[#allocation3 + $0x540] sm:$0xff] }
 0x6bb   : > { %v3728_v35 = vpop.permute.xlu0 %3727  ;;  %5220 = vmatpush1.bf16.msra.mxu0 %v5219_v45 }
 0x6bc   : > { %v8005_v26 = vpop.permute.xlu1 %3747  ;;  %5222 = vmatprep.subr.bf16.mxu0 %v5221_v13  ;;  %v8735_v13 = vpack.c.bf16 %v8733_v42, %v8734_v2  ;;  %v8037_v17 = vsel %vm8736_vm15, %v7953_v9, %v3728_v35  ;;  %v8740_v2 = vld [vmem:[#allocation16_spill] sm:$0xff]  ;;  %vm8746_vm15 = vcmask 1043456  }
 0x6bf   : > { %v3746_v48 = vpop.permute.xlu0 %3745  ;;  %5224 = vmatpush1.bf16.msra.mxu0 %v5223_v4 }
 0x6c0   : > { %v3829_v0 = vpop.permute.xlu1 %3828  ;;  %5226 = vmatprep.subr.bf16.mxu0 %v5225_v23  ;;  %v8730_v23 = vld [vmem:[#allocation26_spill] sm:$0xff] }
 0x6c1   : > { %v8015_v45 = vsel %vm8717_vm1, %v8728_v51, %v3829_v0  ;;  %v8731_v62 = vpack.c.bf16 %v8729_v19, %v8730_v23  ;;  %v5233_v51 = vpack.c.bf16 %v4342_v7, %v4334_v18  ;;  %v8041_v19 = vsel %vm8737_vm4, %v3728_v35, %v7962_v54  ;;  %vm8743_vm1 = vmmov %vm8737_vm4 }
 0x6c2   : > { %vm8747_vm4 = vmmov %vm8745_vm5  ;;  %v8785_v30 = vsel %vm8610_vm2, %v8015_v45, %v8011_v61 }
 0x6c3   : > { %v3750_v10 = vpop.permute.xlu0 %3749  ;;  %5228 = vmatpush1.bf16.msra.mxu0 %v5227_v5  ;;  %v5235_v5 = vpack.c.bf16 %v4341_v37, %v4333_v20  ;;  %v3774_v37 = vsel %vm8743_vm1, %v3746_v48, %v8005_v26 }
 0x6c4   : > { %v8025_v4 = vpop.permute.xlu1 %3832  ;;  %5230 = vmatprep.subr.bf16.mxu0 %v8731_v62 }
 0x6c7   : > { %v3831_v32 = vpop.permute.xlu0 %3830  ;;  %5232 = vmatpush1.bf16.msra.mxu0 %v8735_v13 }
 0x6c8   : > { %v3847_v23 = vpop.permute.xlu1 %3846  ;;  %v8044_v7 = vsel %vm8738_vm8, %v3829_v0, %v3831_v32  ;;  %v8048_v46 = vsel %vm8739_vm11, %v3831_v32, %v8025_v4  ;;  %5234 = vmatprep.subr.bf16.mxu0 %v5233_v51  ;;  %v3773_v0 = vsel %vm8742_vm13, %v3744_v60, %v3746_v48  ;;  %v4350_v51 = vld [vmem:[#allocation3 + $0x588] sm:$0xf]  ;;  %v8744_v60 = vsel %vm8620_vm10, %v7968_v53, %v7960_v28  ;;  %v4349_v53 = vld [vmem:[#allocation3 + $0x580] sm:$0xf]  ;;  %vm8749_vm8 = vmmov %vm8746_vm15 }
 0x6c9   : > { %v3875_v42 = vsel %vm8741_vm12, %v8740_v2, %v3847_v23  ;;  %v3916_v9 = vsel %vm6454_vm6, %v8037_v17, %v8044_v7  ;;  %v3940_v32 = vsel %vm8619_vm14, %v8044_v7, %v8037_v17  ;;  %v3941_v62 = vsel %vm8620_vm10, %v8048_v46, %v8041_v19  ;;  %vm8752_vm11 = vmmov %vm8747_vm4 }
 0x6ca   : > { %v3923_v35 = vsel %vm8609_vm9, %v3772_v49, %v3875_v42  ;;  %v3947_v13 = vsel %vm8610_vm2, %v3875_v42, %v3772_v49  ;;  %v8080_v2 = vpack.c.bf16 %v3941_v62, %v8744_v60  ;;  %vm8754_vm12 = vcmask 785408  }
 0x6cb   : > { %3971 = vst [vmem:[#allocation3 + $0x460] sm:$0xf] %v3923_v35  ;;  %4167 = vst [vmem:[#allocation3 + $0x5a0] sm:$0xf] %v3947_v13  ;;  %v3849_v18 = vpop.permute.xlu0 %3848  ;;  %5236 = vmatpush1.bf16.msra.mxu0 %v5235_v5  ;;  %v4178_v35 = vld [vmem:[#allocation3 + $0x28] sm:$0xff]  ;;  %vm8755_vm13 = vcmask 424960   ;;  %v8792_v25 = vsel %vm6480_vm0, %v8041_v19, %v8048_v46 }
 0x6cc   : > { %v3851_v49 = vpop.permute.xlu1 %3850  ;;  %v3876_v42 = vsel %vm8745_vm5, %v3847_v23, %v3849_v18  ;;  %4801 = vmatprep.subr.msk.mxu0 %vm8746_vm15, %v4350_v51  ;;  %v8748_v23 = vsel %vm6454_vm6, %v7591_v11, %v7598_v57 }
 0x6cd   : > { %v3877_v20 = vsel %vm8747_vm4, %v3849_v18, %v3851_v49  ;;  %v3924_v48 = vsel %vm6454_vm6, %v3773_v0, %v3876_v42  ;;  %v3948_v5 = vsel %vm8619_vm14, %v3876_v42, %v3773_v0  ;;  %v5281_v62 = vpack.c.bf16 %v8748_v23, %v4178_v35  ;;  %v4177_v18 = vld [vmem:[#allocation3 + $0x20] sm:$0xff] }
 0x6ce   : > { %v3925_v13 = vsel %vm6480_vm0, %v3774_v37, %v3877_v20  ;;  %v3949_v28 = vsel %vm8620_vm10, %v3877_v20, %v3774_v37  ;;  %3972 = vst [vmem:[#allocation3 + $0x468] sm:$0xf] %v3924_v48  ;;  %4168 = vst [vmem:[#allocation3 + $0x5a8] sm:$0xf] %v3948_v5  ;;  %v5283_v20 = vpack.c.bf16 %v8750_v38, %v4177_v18  ;;  %v4194_v37 = vld [vmem:[#allocation3 + $0xa8] sm:$0xff]  ;;  %v8753_v5 = vld [vmem:[#allocation34_spill] sm:$0xff] }
 0x6cf   : > { %3973 = vst [vmem:[#allocation3 + $0x470] sm:$0xf] %v3925_v13  ;;  %4169 = vst [vmem:[#allocation3 + $0x5b0] sm:$0xf] %v3949_v28  ;;  %v3853_v0 = vpop.permute.xlu0 %3852  ;;  %4802 = vmatpush1.msk.msra.mxu0 %vm8749_vm8, %v4349_v53  ;;  %v5285_v48 = vpack.c.bf16 %v7761_v8, %v4194_v37  ;;  %v4193_v8 = vld [vmem:[#allocation3 + $0xa0] sm:$0xff] }
 0x6d0   : > { %vm8751_vm10 = vmmov %vm8743_vm1  ;;  %v4031_v60 = vpop.permute.xlu1 %4030  ;;  %v3878_v42 = vsel %vm8752_vm11, %v3851_v49, %v3853_v0  ;;  %4456 = vmatmul.mubr.f32.vlgmr.msra.gmra.mrb[24].mxu0 %v7779_v63  ;;  %5282 = vmatprep.subr.bf16.mxu0 %v5281_v62  ;;  %v4218_v49 = vld [vmem:[#allocation3 + $0x168] sm:$0xff]  ;;  %v4217_v18 = vld [vmem:[#allocation3 + $0x160] sm:$0xff]  ;;  %vm8769_vm11 = vcmask 1043456  }
 0x6d1   : > { %v3775_v51 = vsel %vm8751_vm10, %v8005_v26, %v3750_v10  ;;  %v4079_v35 = vsel %vm8754_vm12, %v8753_v5, %v4031_v60  ;;  %5284 = vmatpush1.bf16.msra.mxu0 %v5283_v20  ;;  %4809 = vmatprep.mubr.msk.f32.mxu0 %vm8755_vm13, %v5411_v44  ;;  %v5287_v10 = vpack.c.bf16 %v7727_v12, %v4193_v8  ;;  %vm8756_vm1 = vmmov %vm8754_vm12  ;;  %v4234_v20 = vld [vmem:[#allocation3 + $0x1e8] sm:$0xff]  ;;  %v4265_v44 = vld [vmem:[#allocation3 + $0x2e0] sm:$0xff]  ;;  %vm8765_vm10 = vcmask 1039360  }
 0x6d2   : > { %v3926_v13 = vsel %vm8622_vm7, %v3775_v51, %v3878_v42  ;;  %v3950_v47 = vsel %vm8681_vm3, %v3878_v42, %v3775_v51  ;;  %4127 = vst [vmem:[#allocation3 + $0x460] sm:$0xf0] %v4079_v35  ;;  %5286 = vmatprep.subr.bf16.mxu0 %v5285_v48  ;;  %v5289_v23 = vpack.c.bf16 %v4218_v49, %v7790_v52  ;;  %vm8757_vm5 = vmmov %vm8756_vm1  ;;  %v4233_v48 = vld [vmem:[#allocation3 + $0x1e0] sm:$0xff]  ;;  %v4274_v49 = vld [vmem:[#allocation3 + $0x328] sm:$0xff] }
 0x6d3   : > { %3974 = vst [vmem:[#allocation3 + $0x478] sm:$0xf] %v3926_v13  ;;  %4170 = vst [vmem:[#allocation3 + $0x5b8] sm:$0xf] %v3950_v47  ;;  %v4033_v26 = vpop.permute.xlu0 %4032  ;;  %v5291_v38 = vpack.c.bf16 %v4217_v18, %v7758_v55  ;;  %v8759_v51 = vsel %vm8619_vm14, %v7598_v57, %v7591_v11  ;;  %v5297_v35 = vpack.c.bf16 %v7888_v21, %v7692_v59  ;;  %v4266_v13 = vld [vmem:[#allocation3 + $0x2e8] sm:$0xff]  ;;  %v4273_v21 = vld [vmem:[#allocation3 + $0x320] sm:$0xff] }
 0x6d4   : > { %v4035_v28 = vpop.permute.xlu1 %4034  ;;  %v4080_v53 = vsel %vm8756_vm1, %v4031_v60, %v4033_v26  ;;  %vm8758_vm15 = vmmov %vm8756_vm1  ;;  %v5293_v52 = vpack.c.bf16 %v4234_v20, %v8759_v51  ;;  %v4225_v60 = vld [vmem:[#allocation3 + $0x1a0] sm:$0xff]  ;;  %v4258_v11 = vld [vmem:[#allocation3 + $0x2a8] sm:$0xff]  ;;  %v8762_v8 = vpack.c.bf16 %v7822_v31, %v7682_v14  ;;  %v5305_v59 = vpack.c.bf16 %v7697_v56, %v4274_v49 }
 0x6d5   : > { %v4081_v62 = vsel %vm8757_vm5, %v4033_v26, %v4035_v28  ;;  %4128 = vst [vmem:[#allocation3 + $0x468] sm:$0xf0] %v4080_v53  ;;  %5288 = vmatpush1.bf16.msra.mxu0 %v5287_v10  ;;  %vm8760_vm4 = vmmov %vm8756_vm1  ;;  %v5295_v55 = vpack.c.bf16 %v4233_v48, %v4225_v60  ;;  %v5301_v47 = vpack.c.bf16 %v4266_v13, %v4258_v11  ;;  %v4257_v26 = vld [vmem:[#allocation3 + $0x2a0] sm:$0xff]  ;;  %v8768_v51 = vld [vmem:[#allocation41_spill] sm:$0xff] }
 0x6d6   : > { %4129 = vst [vmem:[#allocation3 + $0x470] sm:$0xf0] %v4081_v62  ;;  %5290 = vmatprep.subr.bf16.mxu0 %v5289_v23  ;;  %vm8761_vm8 = vmmov %vm8756_vm1  ;;  %v5303_v10 = vpack.c.bf16 %v4265_v44, %v4257_v26  ;;  %v8764_v23 = vld [vmem:[#allocation20_spill] sm:$0xff]  ;;  %v8771_v60 = vld [vmem:[#allocation42_spill] sm:$0xff]  ;;  %v8775_v44 = vsel %vm8622_vm7, %v7991_v43, %v7994_v34 }
 0x6d7   : > { %v4037_v0 = vpop.permute.xlu0 %4036  ;;  %vm8770_vm12 = vmmov %vm8769_vm11  ;;  %v4355_v19 = vld [vmem:[#allocation3 + $0x5b0] sm:$0xf] }
 0x6d8   : > { %v4049_v37 = vpop.permute.xlu1 %4048  ;;  %v4082_v12 = vsel %vm8758_vm15, %v4035_v28, %v4037_v0  ;;  %v5307_v28 = vpack.c.bf16 %v7687_v6, %v4273_v21  ;;  %v3216_v6 = vsel %vm8765_vm10, %v8693_v3, %v8764_v23  ;;  %v8767_v3 = vsel %vm8609_vm9, %v8011_v61, %v8015_v45  ;;  %vm8772_vm9 = vmmov %vm8769_vm11 }
 0x6d9   : > { %v8132_v42 = vsel %vm8760_vm4, %v7719_v16, %v4049_v37  ;;  %4130 = vst [vmem:[#allocation3 + $0x478] sm:$0xf0] %v4082_v12  ;;  %5292 = vmatpush1.bf16.msra.mxu0 %v5291_v38  ;;  %v4313_v31 = vld [vmem:[#allocation3 + $0x460] sm:$0xff]  ;;  %v3394_v62 = vsel %vm8681_vm3, %v7926_v33, %v3216_v6  ;;  %vm8773_vm13 = vmmov %vm8772_vm9 }
 0x6da   : > { %5294 = vmatprep.subr.bf16.mxu0 %v5293_v52  ;;  %v5315_v18 = vpack.c.bf16 %v4313_v31, %v8767_v3  ;;  %v3593_v38 = vrot.slane %v3394_v62, 4  ;;  %vm8774_vm5 = vmmov %vm8756_vm1  ;;  %v8783_v3 = vld [vmem:[#allocation11_spill] sm:$0xff] }
 0x6db   : > { %vm8776_vm15 = vmmov %vm8756_vm1  ;;  %v4356_v1 = vld [vmem:[#allocation3 + $0x5b8] sm:$0xf] }
 0x6dc   : > { %v8134_v5 = vpop.permute.xlu1 %4052  ;;  %v4314_v14 = vld [vmem:[#allocation3 + $0x468] sm:$0xff]  ;;  %vm8777_vm4 = vmmov %vm8756_vm1 }
 0x6dd   : > { %5296 = vmatpush1.bf16.msra.mxu0 %v5295_v55  ;;  %v5313_v56 = vpack.c.bf16 %v4314_v14, %v3916_v9 }
 0x6de   : > { %5298 = vmatprep.subr.bf16.mxu0 %v5297_v35  ;;  %v4268_v35 = vld [vmem:[#allocation3 + $0x2f8] sm:$0xff] }
 0x6e0   : > { %v4067_v57 = vpop.permute.xlu1 %4066  ;;  %v4316_v61 = vld [vmem:[#allocation3 + $0x478] sm:$0xff] }
 0x6e1   : > { %v4095_v16 = vsel %vm8761_vm8, %v7741_v15, %v4067_v57  ;;  %5300 = vmatpush1.bf16.msra.mxu0 %v8762_v8  ;;  %v8763_v15 = vsel %vm6454_vm6, %v7956_v58, %v7965_v39  ;;  %vm8766_vm6 = vmmov %vm8765_vm10  ;;  %vm8787_vm8 = vcmask 793600  }
 0x6e2   : > { %5302 = vmatprep.subr.bf16.mxu0 %v5301_v47  ;;  %v5309_v53 = vpack.c.bf16 %v8763_v15, %v7892_v36  ;;  %v3370_v36 = vsel %vm8622_vm7, %v3216_v6, %v7926_v33  ;;  %v4260_v47 = vld [vmem:[#allocation3 + $0x2b8] sm:$0xff]  ;;  %v8779_v15 = vld [vmem:[#allocation29_spill] sm:$0xff]  ;;  %v5319_v31 = vpack.c.bf16 %v4095_v16, %v8132_v42  ;;  %v4275_v42 = vld [vmem:[#allocation3 + $0x330] sm:$0xff] }
 0x6e3   : > { %v3457_v33 = vrot.slane %v3370_v36, 4  ;;  %v5345_v49 = vpack.c.bf16 %v4268_v35, %v4260_v47  ;;  %v4276_v6 = vld [vmem:[#allocation3 + $0x338] sm:$0xff]  ;;  %v8782_v16 = vld [vmem:[#allocation32_spill] sm:$0xff]  ;;  %vm8788_vm10 = vmmov %vm8772_vm9 }
 0x6e4   : > { %v4071_v26 = vpop.permute.xlu1 %4070 }
 0x6e5   : > { %5304 = vmatpush1.bf16.msra.mxu0 %v5303_v10 }
 0x6e6   : > { %5306 = vmatprep.subr.bf16.mxu0 %v5305_v59  ;;  %v4267_v59 = vld [vmem:[#allocation3 + $0x2f0] sm:$0xff] }
 0x6e9   : > { %5308 = vmatpush1.bf16.msra.mxu0 %v5307_v28  ;;  %v8778_v28 = vld [vmem:[#allocation22_spill] sm:$0xff] }
 0x6ea   : > { %5310 = vmatprep.subr.bf16.mxu0 %v5309_v53  ;;  %v8780_v53 = vpack.c.bf16 %v8778_v28, %v8779_v15 }
 0x6ed   : > { %5312 = vmatpush1.bf16.msra.mxu0 %v7946_v50 }
 0x6ee   : > { %v3173_v24 = vpop.permute.xlu0 %3172  ;;  %5314 = vmatprep.subr.bf16.mxu0 %v5313_v56  ;;  %v4259_v56 = vld [vmem:[#allocation3 + $0x2b0] sm:$0xff] }
 0x6ef   : > { %v3208_v9 = vsel %vm8766_vm6, %v7670_v22, %v3173_v24  ;;  %v5347_v23 = vpack.c.bf16 %v4267_v59, %v4259_v56  ;;  %vm8790_vm6 = vmmov %vm8772_vm9 }
 0x6f0   : > { %v3362_v50 = vsel %vm8622_vm7, %v3208_v9, %v7708_v29  ;;  %v3386_v0 = vsel %vm8681_vm3, %v7708_v29, %v3208_v9  ;;  %v4283_v9 = vld [vmem:[#allocation3 + $0x370] sm:$0xff]  ;;  %vm8795_vm0 = vmmov %vm8790_vm6 }
 0x6f1   : > { %v3441_v20 = vrot.slane %v3362_v50, 4  ;;  %v3577_v12 = vrot.slane %v3386_v0, 4  ;;  %5316 = vmatpush1.bf16.msra.mxu0 %v5315_v18  ;;  %v8784_v18 = vsel %vm8610_vm2, %v8782_v16, %v8783_v3  ;;  %v5351_v17 = vpack.c.bf16 %v4283_v9, %v4275_v42  ;;  %v4354_v50 = vld [vmem:[#allocation3 + $0x5a8] sm:$0xf]  ;;  %vm8789_vm2 = vmmov %vm8756_vm1 }
 0x6f2   : > { %v4051_v22 = vpop.permute.xlu0 %4050 }
 0x6f3   : > { %v3442_v40 = vsel %vm8769_vm11, %v8768_v51, %v3441_v20  ;;  %v3458_v52 = vsel %vm8770_vm12, %v3441_v20, %v3457_v33  ;;  %v3578_v48 = vsel %vm8772_vm9, %v8771_v60, %v3577_v12  ;;  %v3594_v55 = vsel %vm8773_vm13, %v3577_v12, %v3593_v38  ;;  %v4353_v38 = vld [vmem:[#allocation3 + $0x5a0] sm:$0xf]  ;;  %v8791_v20 = vld [vmem:[#allocation33_spill] sm:$0xff]  ;;  %vm8796_vm11 = vmmov %vm8795_vm0 }
 0x6f4   : > { %v4088_v13 = vsel %vm8756_vm1, %v4049_v37, %v4051_v22  ;;  %v4089_v29 = vsel %vm8774_vm5, %v4051_v22, %v8134_v5  ;;  %v5341_v11 = vpack.c.bf16 %v3458_v52, %v3442_v40  ;;  %v5353_v8 = vpack.c.bf16 %v8775_v44, %v3594_v55 }
 0x6f5   : > { %v5349_v24 = vpack.c.bf16 %v3578_v48, %v4276_v6  ;;  %v8794_v52 = vsel %vm8681_vm3, %v7994_v34, %v7991_v43  ;;  %v4361_v46 = vpop.permute.xlu1 %4360 }
 0x6f6   : > { %v4069_v10 = vpop.permute.xlu0 %4068  ;;  %5342 = vmatprep.subr.bf16.mxu1 %v5341_v11 }
 0x6f7   : > { %v4096_v21 = vsel %vm8776_vm15, %v4067_v57, %v4069_v10  ;;  %v4097_v37 = vsel %vm8777_vm4, %v4069_v10, %v4071_v26  ;;  %5344 = vmatpush1.bf16.msra.mxu1 %v8780_v53  ;;  %v8781_v57 = vsel %vm8619_vm14, %v7965_v39, %v7956_v58  ;;  %v5323_v58 = vpack.c.bf16 %v8785_v30, %v8784_v18 }
 0x6f8   : > { %5346 = vmatprep.subr.bf16.mxu1 %v5345_v49  ;;  %v5317_v14 = vpack.c.bf16 %v4096_v21, %v4088_v13  ;;  %v5321_v62 = vpack.c.bf16 %v3940_v32, %v8781_v57  ;;  %vm8786_vm14 = vcmask 777216  }
 0x6fa   : > { %v3732_v36 = vpop.permute.xlu0 %3731  ;;  %5318 = vmatprep.subr.bf16.mxu0 %v5317_v14 }
 0x6fb   : > { %5320 = vmatpush1.bf16.msra.mxu0 %v5319_v31  ;;  %5348 = vmatpush1.bf16.msra.mxu1 %v5347_v23  ;;  %v3767_v7 = vsel %vm8786_vm14, %v7962_v54, %v3732_v36  ;;  %v4315_v54 = vld [vmem:[#allocation3 + $0x470] sm:$0xff] }
 0x6fc   : > { %5322 = vmatprep.subr.bf16.mxu0 %v5321_v62  ;;  %5350 = vmatprep.subr.bf16.mxu1 %v5349_v24  ;;  %v5359_v12 = vpack.c.bf16 %v4315_v54, %v8792_v25 }
 0x6fe   : > { %v3835_v39 = vpop.permute.xlu0 %3834 }
 0x6ff   : > { %v3870_v32 = vsel %vm8787_vm8, %v8025_v4, %v3835_v39  ;;  %5324 = vmatpush1.bf16.msra.mxu0 %v5323_v58  ;;  %5352 = vmatpush1.bf16.msra.mxu1 %v5351_v17 }
 0x700   : > { %v3918_v0 = vsel %vm8622_vm7, %v3767_v7, %v3870_v32  ;;  %v3942_v41 = vsel %vm8681_vm3, %v3870_v32, %v3767_v7  ;;  %4807 = vmatprep.subr.msk.mxu0 %vm8788_vm10, %v4354_v50  ;;  %5354 = vmatprep.subr.bf16.mxu1 %v5353_v8  ;;  %vm8793_vm7 = vmmov %vm8756_vm1 }
 0x701   : > { %v5357_v45 = vpack.c.bf16 %v4316_v61, %v3918_v0  ;;  %v5365_v60 = vpack.c.bf16 %v3942_v41, %v8794_v52 }
 0x702   : > { %v4055_v33 = vpop.permute.xlu0 %4054 }
 0x703   : > { %v4090_v4 = vsel %vm8789_vm2, %v8134_v5, %v4055_v33  ;;  %4808 = vmatpush1.msk.msra.mxu0 %vm8790_vm6, %v4353_v38  ;;  %5356 = vmatpush1.bf16.msra.mxu1 %v8791_v20  ;;  %v5363_v5 = vpack.c.bf16 %v4097_v37, %v4089_v29 }
 0x704   : > { %4598 = vmatmul.mubr.f32.vlgmr.msra.gmra.mrb[26].mxu0 %v7779_v63  ;;  %5358 = vmatprep.subr.bf16.mxu1 %v5357_v45 }
 0x706   : > { %v4073_v22 = vpop.permute.xlu0 %4072 }
 0x707   : > { %v4098_v51 = vsel %vm8793_vm7, %v4071_v26, %v4073_v22  ;;  %5360 = vmatpush1.bf16.msra.mxu1 %v5359_v12 }
 0x708   : > { %v5361_v40 = vpack.c.bf16 %v4098_v51, %v4090_v4 }
 0x70a   : > { %5362 = vmatprep.subr.bf16.mxu1 %v5361_v40 }
 0x70b   : > { %5364 = vmatpush1.bf16.msra.mxu1 %v5363_v5 }
 0x70c   : > { %5366 = vmatprep.subr.bf16.mxu1 %v5365_v60 }
 0x70f   : > { %5368 = vmatpush1.bf16.msra.mxu1 %v8080_v2 }
 0x710   : > { %4810 = vmatprep.subr.msk.mxu1 %vm8795_vm0, %v4356_v1 }
 0x713   : > { %4811 = vmatpush1.msk.msra.mxu1 %vm8796_vm11, %v4355_v19 }
 0x714   : > { %4669 = vmatmul.mubr.f32.vlgmr.msra.gmra.mrb[26].mxu1 %v7779_v63 }
 0x764   : > { %v4528_v48 = vpop.f32.mrb[24].mxu1 }
 0x765   : > { %v4529_v27 = vadd.f32 %v4528_v48, %v4361_v46  ;;  %v4530_v55 = vpop.f32.mrb[25].mxu1 }
 0x766   : > { %v4531_v35 = vadd.f32 %v4530_v55, %v4361_v46 }
 0x767   : > { %vm4677_vm3 = vcmp.ge.f32.partialorder %v4529_v27, 0.0  ;;  %v4685_v43 = vmul.f32 0.2, %v4529_v27 }
 0x768   : > { %vm4678_vm12 = vcmp.ge.f32.partialorder %v4531_v35, 0.0  ;;  %v4686_v34 = vmul.f32 0.2, %v4531_v35 }
 0x769   : > { %v4693_v63 = vsel %vm4677_vm3, %v4529_v27, %v4685_v43 }
 0x76a   : > { %4701 = vst [vmem:[%s8252_s12 + $0x10] sm:$0xff] %v4693_v63  ;;  %v4694_v2 = vsel %vm4678_vm12, %v4531_v35, %v4686_v34 }
 0x76b   : > { %4702 = vst [vmem:[%s8252_s12 + $0x18] sm:$0xff] %v4694_v2 }
 0x7a3   : > { %v4457_v13 = vpop.f32.mrb[24].mxu0 }
 0x7a4   : > { %v4458_v29 = vadd.f32 %v4457_v13, %v4361_v46  ;;  %v4459_v11 = vpop.f32.mrb[25].mxu0 }
 0x7a5   : > { %v4460_v47 = vadd.f32 %v4459_v11, %v4361_v46 }
 0x7a6   : > { %vm4675_vm9 = vcmp.ge.f32.partialorder %v4458_v29, 0.0  ;;  %v4683_v44 = vmul.f32 0.2, %v4458_v29 }
 0x7a7   : > { %vm4676_vm13 = vcmp.ge.f32.partialorder %v4460_v47, 0.0  ;;  %v4684_v8 = vmul.f32 0.2, %v4460_v47 }
 0x7a8   : > { %v4691_v26 = vsel %vm4675_vm9, %v4458_v29, %v4683_v44 }
 0x7a9   : > { %4699 = vst [vmem:[%s8252_s12] sm:$0xff] %v4691_v26  ;;  %v4692_v10 = vsel %vm4676_vm13, %v4460_v47, %v4684_v8 }
 0x7aa   : > { %4700 = vst [vmem:[%s8252_s12 + $0x8] sm:$0xff] %v4692_v10 }
 0x7d7   : > { %v4599_v49 = vpop.f32.mrb[26].mxu0 }
 0x7d8   : > { %v4600_v59 = vadd.f32 %v4599_v49, %v4361_v46  ;;  %v4601_v21 = vpop.f32.mrb[27].mxu0 }
 0x7d9   : > { %v4602_v37 = vadd.f32 %v4601_v21, %v4361_v46 }
 0x7da   : > { %vm4679_vm1 = vcmp.ge.f32.partialorder %v4600_v59, 0.0  ;;  %v4687_v28 = vmul.f32 0.2, %v4600_v59 }
 0x7db   : > { %vm4680_vm5 = vcmp.ge.f32.partialorder %v4602_v37, 0.0  ;;  %v4688_v15 = vmul.f32 0.2, %v4602_v37 }
 0x7dc   : > { %v4695_v53 = vsel %vm4679_vm1, %v4600_v59, %v4687_v28 }
 0x7dd   : > { %4703 = vst [vmem:[%s8252_s12 + $0x20] sm:$0xff] %v4695_v53  ;;  %v4696_v14 = vsel %vm4680_vm5, %v4602_v37, %v4688_v15 }
 0x7de   : > { %4704 = vst [vmem:[%s8252_s12 + $0x28] sm:$0xff] %v4696_v14 }
 0x7e7   : > { %v4670_v56 = vpop.f32.mrb[26].mxu1 }
 0x7e8   : > { %v4671_v31 = vadd.f32 %v4670_v56, %v4361_v46  ;;  %v4672_v23 = vpop.f32.mrb[27].mxu1 }
 0x7e9   : > { %v4673_v6 = vadd.f32 %v4672_v23, %v4361_v46 }
 0x7ea   : > { %vm4681_vm15 = vcmp.ge.f32.partialorder %v4671_v31, 0.0  ;;  %v4689_v36 = vmul.f32 0.2, %v4671_v31 }
 0x7eb   : > { %vm4682_vm4 = vcmp.ge.f32.partialorder %v4673_v6, 0.0  ;;  %v4690_v57 = vmul.f32 0.2, %v4673_v6 }
 0x7ec   : > { %v4697_v62 = vsel %vm4681_vm15, %v4671_v31, %v4689_v36 }
 0x7ed   : > { %4705 = vst [vmem:[%s8252_s12 + $0x30] sm:$0xff] %v4697_v62  ;;  %v4698_v24 = vsel %vm4682_vm4, %v4673_v6, %v4690_v57 }
 0x7ee   : > { %4706 = vst [vmem:[%s8252_s12 + $0x38] sm:$0xff] %v4698_v24 }
 0x7ef PF: > { %s17_s24 = sadd.s32 1, %s5418_s24  }
 0x7f0   : > { %p14_p4 = scmp.ge.s32.totalorder %s17_s24, 4  }
 0x7f2   :  { %16 = sbr.rel (!%p14_p4) target bundleno = 1 (0x1), region = 84 }

</bundles_post_ra>
